<compile_context>
chip_gen: v6e
topology: v6e:2x2x1
jax: 0.10.0
libtpu: 0.0.40
codegen_flags: <defaults>
</compile_context>

<pallas_src>
import math

import jax
import jax.numpy as jnp
from jax.experimental import pallas as pl
from jax.experimental.pallas import tpu as pltpu

# ---------------- small config consistent with CLIP.__init__ -------------------
EMBED_DIM = 32
IMAGE_RES = 16
VISION_LAYERS = 2
VISION_WIDTH = 32
VISION_PATCH = 4
VISION_HEADS = 2
CONTEXT_LEN = 8
VOCAB_SIZE = 64
T_WIDTH = 32
T_HEADS = 2
T_LAYERS = 2
BATCH = 2
LN_EPS = 1e-5
NEG_INF = -1e9

# bf16 matmul operands (f32 accumulate) for v6e/v7x MXU; use jnp.float32 on v5e for
# exact fp32 reference numerics.
MXU_DTYPE = jnp.bfloat16


def _mx(a):
    return a.astype(MXU_DTYPE)


def _ln(v, w, b):
    """fp32 LayerNorm (matches the fp32-upcasting LayerNorm subclass)."""
    mu = jnp.mean(v, axis=-1, keepdims=True)
    var = jnp.mean(jnp.square(v - mu), axis=-1, keepdims=True)
    return (v - mu) * jax.lax.rsqrt(var + LN_EPS) * w + b


# =============================== Pallas kernel =================================

def _make_tower_kernel(names, *, num_heads, num_layers, apply_pre_ln, fuse_logits):
    """Fused transformer tower as a single (grid-less) kernel.

    Inputs: flattened (B*L, D) activations, additive attention mask, one-hot pooling
    selector, all per-layer weights stacked along a leading layer axis, final-LN +
    output-projection weights, and (text tower only) the image features + logit scale
    for the fused CLIP logits epilogue.
    """

    def kernel(*refs):
        r = dict(zip(names, refs))
        out_ref = refs[len(names)]

        x = r['x0'][...].astype(jnp.float32)                 # (BL, D) fp32
        if apply_pre_ln:                                     # vision tower only
            x = _ln(x, r['pre_w'][...], r['pre_b'][...])
        mask = r['mask'][...]                                # (BL, BL) additive bias

        BL, D = x.shape
        H = num_heads
        dh = D // H
        scale = dh ** -0.5

        # Fully unrolled layer loop (static trip count; weights indexed statically).
        for l in range(num_layers):
            # ---- pre-LN multi-head self-attention, fused QKV ----
            y = _ln(x, r['ln1_w'][l], r['ln1_b'][l])
            qkv = jnp.dot(_mx(y), r['wqkv'][l],
                          preferred_element_type=jnp.float32) + r['bqkv'][l]   # (BL, 3D)
            q = qkv[:, 0 * D:1 * D] * scale
            k = qkv[:, 1 * D:2 * D]
            v = qkv[:, 2 * D:3 * D]

            # Split heads only for the score / context contractions.
            qh = jnp.stack([q[:, h * dh:(h + 1) * dh] for h in range(H)], axis=0)
            kh = jnp.stack([k[:, h * dh:(h + 1) * dh] for h in range(H)], axis=0)
            vh = jnp.stack([v[:, h * dh:(h + 1) * dh] for h in range(H)], axis=0)

            s = jnp.einsum('hmk,hnk->hmn', _mx(qh), _mx(kh),
                           preferred_element_type=jnp.float32)        # (H, BL, BL)
            s = s + mask[None]
            s = s - jnp.max(s, axis=-1, keepdims=True)
            e = jnp.exp(s)
            p = e * pl.reciprocal(jnp.sum(e, axis=-1, keepdims=True), approx=True)

            ctx = jnp.einsum('hmn,hnk->hmk', _mx(p), _mx(vh),
                             preferred_element_type=jnp.float32)      # (H, BL, dh)
            ctx2 = jnp.concatenate([ctx[h] for h in range(H)], axis=-1)  # (BL, D)
            x = x + jnp.dot(_mx(ctx2), r['wo'][l],
                            preferred_element_type=jnp.float32) + r['bo'][l]

            # ---- MLP: c_fc -> QuickGELU -> c_proj ----
            y2 = _ln(x, r['ln2_w'][l], r['ln2_b'][l])
            h1 = jnp.dot(_mx(y2), r['wfc'][l],
                         preferred_element_type=jnp.float32) + r['bfc'][l]
            h1 = h1 * jax.nn.sigmoid(1.702 * h1)                       # QuickGELU
            x = x + jnp.dot(_mx(h1), r['wproj'][l],
                            preferred_element_type=jnp.float32) + r['bproj'][l]

        # ---- epilogue: token pool (masked VPU reduce), final LN, projection ----
        sel = r['sel'][...]                                            # (B, BL) one-hot
        pooled = jnp.sum(sel[:, :, None] * x[None, :, :], axis=1)      # (B, D)
        pooled = _ln(pooled, r['lnf_w'][...], r['lnf_b'][...])
        feats = jnp.dot(_mx(pooled), r['wout'][...],
                        preferred_element_type=jnp.float32)            # (B, E)

        if fuse_logits:
            # CLIP head fused into the text tower: normalise both modalities,
            # scale, cross-modal similarity.  rsqrt+eps keeps zero rows finite.
            img = r['img_feat'][...].astype(jnp.float32)
            img = img * jax.lax.rsqrt(jnp.sum(img * img, axis=1, keepdims=True) + 1e-12)
            txt = feats * jax.lax.rsqrt(jnp.sum(feats * feats, axis=1, keepdims=True) + 1e-12)
            sc = jnp.exp(r['logit_scale'][0, 0])
            out_ref[...] = sc * jax.lax.dot_general(
                img, txt, (((1,), (1,)), ((), ())),
                preferred_element_type=jnp.float32)
        else:
            out_ref[...] = feats

    return kernel


# =============================== pallas_call wrapper ============================

def tower_forward(x0, mask, sel, tp, *, num_heads, apply_pre_ln,
                  img_feat=None, logit_scale=None):
    """x0: (B*L, D) activations; mask: (B*L, B*L); sel: (B, B*L) one-hot pooling."""
    B = sel.shape[0]
    num_layers = tp['wqkv'].shape[0]
    E = tp['wout'].shape[1]
    fuse_logits = img_feat is not None

    names = ['x0', 'mask', 'sel']
    args = [x0, mask, sel]
    if apply_pre_ln:
        names += ['pre_w', 'pre_b']
        args += [tp['pre_w'], tp['pre_b']]
    layer_names = ['ln1_w', 'ln1_b', 'wqkv', 'bqkv', 'wo', 'bo',
                   'ln2_w', 'ln2_b', 'wfc', 'bfc', 'wproj', 'bproj']
    names += layer_names
    args += [tp[n] for n in layer_names]
    names += ['lnf_w', 'lnf_b', 'wout']
    args += [tp['lnf_w'], tp['lnf_b'], tp['wout']]
    if fuse_logits:
        names += ['img_feat', 'logit_scale']
        args += [img_feat, logit_scale]

    kernel = _make_tower_kernel(tuple(names), num_heads=num_heads,
                                num_layers=num_layers,
                                apply_pre_ln=apply_pre_ln,
                                fuse_logits=fuse_logits)
    out_shape = (B, B) if fuse_logits else (B, E)
    # No grid: full-array VMEM residency (all weights + activations are ~KBs here).
    return pl.pallas_call(
        kernel,
        out_shape=jax.ShapeDtypeStruct(out_shape, jnp.float32),
    )(*args)


# =============================== model glue ====================================

def _block_causal_mask(B, L):
    # 0 where (same sample AND key_pos <= query_pos), else -1e9.
    idx = jnp.arange(B * L)
    b = idx // L
    p = idx % L
    ok = (b[:, None] == b[None, :]) & (p[None, :] <= p[:, None])
    return jnp.where(ok, 0.0, NEG_INF).astype(jnp.float32)


def _block_diag_mask(B, Lpad, Lvalid):
    # 0 where (same sample AND both positions valid), else -1e9.  Pad query rows get a
    # uniform -1e9 bias (softmax stays finite); pad key columns are never attended.
    idx = jnp.arange(B * Lpad)
    b = idx // Lpad
    p = idx % Lpad
    valid = p < Lvalid
    ok = (b[:, None] == b[None, :]) & valid[:, None] & valid[None, :]
    return jnp.where(ok, 0.0, NEG_INF).astype(jnp.float32)


def encode_text(params, text, image_features):
    B, L = text.shape
    # stem in plain XLA: token-embedding gather + positional embedding
    x = jnp.take(params['token_embedding'], text, axis=0) + params['positional_embedding'][None]
    x = x.reshape(B * L, T_WIDTH).astype(jnp.float32)
    eot = jnp.argmax(text, axis=-1)                      # x[arange(B), text.argmax(-1)]
    sel = jax.nn.one_hot(jnp.arange(B) * L + eot, B * L, dtype=jnp.float32)
    mask = _block_causal_mask(B, L)
    # Returns the (B, B) logits_per_image directly (CLIP head fused into the epilogue).
    return tower_forward(x, mask, sel, params['text'], num_heads=T_HEADS,
                         apply_pre_ln=False,
                         img_feat=image_features, logit_scale=params['logit_scale'])


def encode_image(params, image):
    B, C, Himg, Wimg = image.shape
    P = VISION_PATCH
    g = Himg // P
    Lv = g * g + 1
    D = VISION_WIDTH
    # conv1 (kernel=P, stride=P, no bias) == patch flatten + matmul (stem, plain XLA)
    patches = image.reshape(B, C, g, P, g, P).transpose(0, 2, 4, 1, 3, 5)
    patches = patches.reshape(B, g * g, C * P * P)
    xp = patches @ params['conv1_w']                                   # (B, g*g, width)
    cls = jnp.broadcast_to(params['class_embedding'][None, None, :], (B, 1, D))
    x = jnp.concatenate([cls, xp], axis=1) + params['visual_pos'][None]  # (B, Lv, D)

    # Pad the per-sample sequence so B*Lpad is a multiple of 8 (sublane alignment).
    pad_unit = 8 // math.gcd(B, 8)
    Lpad = ((Lv + pad_unit - 1) // pad_unit) * pad_unit
    x = jnp.pad(x, ((0, 0), (0, Lpad - Lv), (0, 0)))
    x = x.reshape(B * Lpad, D)

    sel = jax.nn.one_hot(jnp.arange(B) * Lpad, B * Lpad, dtype=jnp.float32)  # class token
    mask = _block_diag_mask(B, Lpad, Lv)
    return tower_forward(x, mask, sel, params['visual'], num_heads=VISION_HEADS,
                         apply_pre_ln=True)


def clip_forward(params, image, text):
    image_features = encode_image(params, image)                    # (B, E), un-normalised
    logits_per_image = encode_text(params, text, image_features)    # (B, B), fused head
    logits_per_text = logits_per_image.T
    return logits_per_image, logits_per_text


# =============================== parameter init =================================

def init_params(key):
    keys = iter(jax.random.split(key, 64))

    def nrm(shape, std, dtype=jnp.float32):
        return (std * jax.random.normal(next(keys), shape, jnp.float32)).astype(dtype)

    def tower(width, layers, heads, out_std, with_pre_ln):
        proj_std = width ** -0.5 * (2 * layers) ** -0.5
        attn_std = width ** -0.5
        fc_std = (2 * width) ** -0.5
        ffn = 4 * width
        # Weights stored (in, out), QKV fused along the output dim, everything stacked
        # along a leading `layers` axis.  Matmul weights in MXU_DTYPE, the rest fp32.
        p = dict(
            ln1_w=jnp.ones((layers, 1, width), jnp.float32),
            ln1_b=jnp.zeros((layers, 1, width), jnp.float32),
            wqkv=nrm((layers, width, 3 * width), attn_std, MXU_DTYPE),
            bqkv=jnp.zeros((layers, 1, 3 * width), jnp.float32),
            wo=nrm((layers, width, width), proj_std, MXU_DTYPE),
            bo=jnp.zeros((layers, 1, width), jnp.float32),
            ln2_w=jnp.ones((layers, 1, width), jnp.float32),
            ln2_b=jnp.zeros((layers, 1, width), jnp.float32),
            wfc=nrm((layers, width, ffn), fc_std, MXU_DTYPE),
            bfc=jnp.zeros((layers, 1, ffn), jnp.float32),
            wproj=nrm((layers, ffn, width), proj_std, MXU_DTYPE),
            bproj=jnp.zeros((layers, 1, width), jnp.float32),
            lnf_w=jnp.ones((1, width), jnp.float32),
            lnf_b=jnp.zeros((1, width), jnp.float32),
            wout=nrm((width, EMBED_DIM), out_std, MXU_DTYPE),
        )
        if with_pre_ln:
            p['pre_w'] = jnp.ones((1, width), jnp.float32)
            p['pre_b'] = jnp.zeros((1, width), jnp.float32)
        return p

    g = IMAGE_RES // VISION_PATCH
    vstd = VISION_WIDTH ** -0.5
    return dict(
        # text tower (exactly the parameters in the provided __init__)
        token_embedding=nrm((VOCAB_SIZE, T_WIDTH), 0.02),
        positional_embedding=nrm((CONTEXT_LEN, T_WIDTH), 0.01),
        text=tower(T_WIDTH, T_LAYERS, T_HEADS, T_WIDTH ** -0.5, with_pre_ln=False),
        logit_scale=jnp.full((1, 1), jnp.log(1.0 / 0.07), jnp.float32),
        # vision tower (standard CLIP VisionTransformer, see TODO at top)
        conv1_w=nrm((3 * VISION_PATCH * VISION_PATCH, VISION_WIDTH), vstd),
        class_embedding=nrm((VISION_WIDTH,), vstd),
        visual_pos=nrm((g * g + 1, VISION_WIDTH), vstd),
        visual=tower(VISION_WIDTH, VISION_LAYERS, VISION_HEADS, vstd, with_pre_ln=True),
    )


# =============================== main ===========================================

if __name__ == "__main__":
    key = jax.random.PRNGKey(0)
    k_img, k_txt, k_par = jax.random.split(key, 3)
    image = jax.random.normal(k_img, (BATCH, 3, IMAGE_RES, IMAGE_RES), jnp.float32)
    text = jax.random.randint(k_txt, (BATCH, CONTEXT_LEN), 1, VOCAB_SIZE, dtype=jnp.int32)

    params = init_params(k_par)

    logits_per_image, logits_per_text = jax.jit(clip_forward)(params, image, text)
    jax.block_until_ready((logits_per_image, logits_per_text))

    assert logits_per_image.shape == (BATCH, BATCH)
    assert logits_per_text.shape == (BATCH, BATCH)
    assert bool(jnp.all(jnp.isfinite(logits_per_image)))
    assert bool(jnp.all(jnp.isfinite(logits_per_text)))
    print("KERNEL_OK")
</pallas_src>

<mosaic_0001>
module attributes {stable_mosaic.version = 11 : i64} {
  func.func @kernel(%arg0: memref<40x32xf32, #tpu.memory_space<vmem>>, %arg1: memref<40x40xf32, #tpu.memory_space<vmem>>, %arg2: memref<2x40xf32, #tpu.memory_space<vmem>>, %arg3: memref<1x32xf32, #tpu.memory_space<vmem>>, %arg4: memref<1x32xf32, #tpu.memory_space<vmem>>, %arg5: memref<2x1x32xf32, #tpu.memory_space<vmem>>, %arg6: memref<2x1x32xf32, #tpu.memory_space<vmem>>, %arg7: memref<2x32x96xbf16, #tpu.memory_space<vmem>>, %arg8: memref<2x1x96xf32, #tpu.memory_space<vmem>>, %arg9: memref<2x32x32xbf16, #tpu.memory_space<vmem>>, %arg10: memref<2x1x32xf32, #tpu.memory_space<vmem>>, %arg11: memref<2x1x32xf32, #tpu.memory_space<vmem>>, %arg12: memref<2x1x32xf32, #tpu.memory_space<vmem>>, %arg13: memref<2x32x128xbf16, #tpu.memory_space<vmem>>, %arg14: memref<2x1x128xf32, #tpu.memory_space<vmem>>, %arg15: memref<2x128x32xbf16, #tpu.memory_space<vmem>>, %arg16: memref<2x1x32xf32, #tpu.memory_space<vmem>>, %arg17: memref<1x32xf32, #tpu.memory_space<vmem>>, %arg18: memref<1x32xf32, #tpu.memory_space<vmem>>, %arg19: memref<32x32xbf16, #tpu.memory_space<vmem>>, %arg20: memref<2x32xf32, #tpu.memory_space<vmem>>) attributes {dimension_semantics = [], scalar_prefetch = 0 : i64, scratch_operands = 0 : i64, tpu.core_type = #tpu.core_type<tc>} {
    %c0 = arith.constant 0 : index
    %c0_0 = arith.constant 0 : index
    %0 = vector.load %arg0[%c0, %c0_0] : memref<40x32xf32, #tpu.memory_space<vmem>>, vector<40x32xf32>
    %c0_1 = arith.constant 0 : index
    %c0_2 = arith.constant 0 : index
    %1 = vector.load %arg3[%c0_1, %c0_2] : memref<1x32xf32, #tpu.memory_space<vmem>>, vector<1x32xf32>
    %c0_3 = arith.constant 0 : index
    %c0_4 = arith.constant 0 : index
    %2 = vector.load %arg4[%c0_3, %c0_4] : memref<1x32xf32, #tpu.memory_space<vmem>>, vector<1x32xf32>
    %cst = arith.constant dense<0.000000e+00> : vector<40xf32>
    %3 = vector.multi_reduction <add>, %0, %cst [1] : vector<40x32xf32> to vector<40xf32>
    %4 = vector.shape_cast %3 : vector<40xf32> to vector<40x1xf32>
    %cst_5 = arith.constant 3.200000e+01 : f32
    %5 = vector.broadcast %cst_5 : f32 to vector<40x1xf32>
    %6 = arith.divf %4, %5 : vector<40x1xf32>
    %7 = vector.broadcast %6 : vector<40x1xf32> to vector<40x32xf32>
    %8 = arith.subf %0, %7 : vector<40x32xf32>
    %9 = arith.mulf %8, %8 : vector<40x32xf32>
    %cst_6 = arith.constant dense<0.000000e+00> : vector<40xf32>
    %10 = vector.multi_reduction <add>, %9, %cst_6 [1] : vector<40x32xf32> to vector<40xf32>
    %11 = vector.shape_cast %10 : vector<40xf32> to vector<40x1xf32>
    %cst_7 = arith.constant 3.200000e+01 : f32
    %12 = vector.broadcast %cst_7 : f32 to vector<40x1xf32>
    %13 = arith.divf %11, %12 : vector<40x1xf32>
    %14 = vector.broadcast %6 : vector<40x1xf32> to vector<40x32xf32>
    %15 = arith.subf %0, %14 : vector<40x32xf32>
    %cst_8 = arith.constant 9.99999974E-6 : f32
    %16 = vector.broadcast %cst_8 : f32 to vector<40x1xf32>
    %17 = arith.addf %13, %16 : vector<40x1xf32>
    %18 = math.rsqrt %17 : vector<40x1xf32>
    %19 = vector.broadcast %18 : vector<40x1xf32> to vector<40x32xf32>
    %20 = arith.mulf %15, %19 : vector<40x32xf32>
    %21 = vector.broadcast %1 : vector<1x32xf32> to vector<40x32xf32>
    %22 = arith.mulf %20, %21 : vector<40x32xf32>
    %23 = vector.broadcast %2 : vector<1x32xf32> to vector<40x32xf32>
    %24 = arith.addf %22, %23 : vector<40x32xf32>
    %c0_9 = arith.constant 0 : index
    %c0_10 = arith.constant 0 : index
    %25 = vector.load %arg1[%c0_9, %c0_10] : memref<40x40xf32, #tpu.memory_space<vmem>>, vector<40x40xf32>
    %c0_11 = arith.constant 0 : index
    %c0_12 = arith.constant 0 : index
    %c0_13 = arith.constant 0 : index
    %26 = vector.load %arg5[%c0_11, %c0_12, %c0_13] : memref<2x1x32xf32, #tpu.memory_space<vmem>>, vector<1x1x32xf32>
    %27 = vector.shape_cast %26 : vector<1x1x32xf32> to vector<1x32xf32>
    %c0_14 = arith.constant 0 : index
    %c0_15 = arith.constant 0 : index
    %c0_16 = arith.constant 0 : index
    %28 = vector.load %arg6[%c0_14, %c0_15, %c0_16] : memref<2x1x32xf32, #tpu.memory_space<vmem>>, vector<1x1x32xf32>
    %29 = vector.shape_cast %28 : vector<1x1x32xf32> to vector<1x32xf32>
    %cst_17 = arith.constant dense<0.000000e+00> : vector<40xf32>
    %30 = vector.multi_reduction <add>, %24, %cst_17 [1] : vector<40x32xf32> to vector<40xf32>
    %31 = vector.shape_cast %30 : vector<40xf32> to vector<40x1xf32>
    %cst_18 = arith.constant 3.200000e+01 : f32
    %32 = vector.broadcast %cst_18 : f32 to vector<40x1xf32>
    %33 = arith.divf %31, %32 : vector<40x1xf32>
    %34 = vector.broadcast %33 : vector<40x1xf32> to vector<40x32xf32>
    %35 = arith.subf %24, %34 : vector<40x32xf32>
    %36 = arith.mulf %35, %35 : vector<40x32xf32>
    %cst_19 = arith.constant dense<0.000000e+00> : vector<40xf32>
    %37 = vector.multi_reduction <add>, %36, %cst_19 [1] : vector<40x32xf32> to vector<40xf32>
    %38 = vector.shape_cast %37 : vector<40xf32> to vector<40x1xf32>
    %cst_20 = arith.constant 3.200000e+01 : f32
    %39 = vector.broadcast %cst_20 : f32 to vector<40x1xf32>
    %40 = arith.divf %38, %39 : vector<40x1xf32>
    %41 = vector.broadcast %33 : vector<40x1xf32> to vector<40x32xf32>
    %42 = arith.subf %24, %41 : vector<40x32xf32>
    %cst_21 = arith.constant 9.99999974E-6 : f32
    %43 = vector.broadcast %cst_21 : f32 to vector<40x1xf32>
    %44 = arith.addf %40, %43 : vector<40x1xf32>
    %45 = math.rsqrt %44 : vector<40x1xf32>
    %46 = vector.broadcast %45 : vector<40x1xf32> to vector<40x32xf32>
    %47 = arith.mulf %42, %46 : vector<40x32xf32>
    %48 = vector.broadcast %27 : vector<1x32xf32> to vector<40x32xf32>
    %49 = arith.mulf %47, %48 : vector<40x32xf32>
    %50 = vector.broadcast %29 : vector<1x32xf32> to vector<40x32xf32>
    %51 = arith.addf %49, %50 : vector<40x32xf32>
    %52 = arith.truncf %51 : vector<40x32xf32> to vector<40x32xbf16>
    %c0_22 = arith.constant 0 : index
    %c0_23 = arith.constant 0 : index
    %c0_24 = arith.constant 0 : index
    %53 = vector.load %arg7[%c0_22, %c0_23, %c0_24] : memref<2x32x96xbf16, #tpu.memory_space<vmem>>, vector<1x32x96xbf16>
    %54 = vector.shape_cast %53 : vector<1x32x96xbf16> to vector<32x96xbf16>
    %cst_25 = arith.constant dense<0.000000e+00> : vector<40x96xf32>
    %55 = tpu.matmul %52, %54, %cst_25 {dimension_numbers = #tpu.dot_dimension_numbers<[1], [0], [0], [1], [0, 0, 1, 1], [], []>} : vector<40x32xbf16>, vector<32x96xbf16>, vector<40x96xf32> -> vector<40x96xf32>
    %c0_26 = arith.constant 0 : index
    %c0_27 = arith.constant 0 : index
    %c0_28 = arith.constant 0 : index
    %56 = vector.load %arg8[%c0_26, %c0_27, %c0_28] : memref<2x1x96xf32, #tpu.memory_space<vmem>>, vector<1x1x96xf32>
    %57 = vector.shape_cast %56 : vector<1x1x96xf32> to vector<1x96xf32>
    %58 = vector.broadcast %57 : vector<1x96xf32> to vector<40x96xf32>
    %59 = arith.addf %55, %58 : vector<40x96xf32>
    %60 = vector.extract_strided_slice %59 {offsets = [0, 0], sizes = [40, 32], strides = [1, 1]} : vector<40x96xf32> to vector<40x32xf32>
    %cst_29 = arith.constant 2.500000e-01 : f32
    %61 = vector.broadcast %cst_29 : f32 to vector<40x32xf32>
    %62 = arith.mulf %60, %61 : vector<40x32xf32>
    %63 = vector.extract_strided_slice %59 {offsets = [0, 32], sizes = [40, 32], strides = [1, 1]} : vector<40x96xf32> to vector<40x32xf32>
    %64 = vector.extract_strided_slice %59 {offsets = [0, 64], sizes = [40, 32], strides = [1, 1]} : vector<40x96xf32> to vector<40x32xf32>
    %65 = vector.extract_strided_slice %62 {offsets = [0, 0], sizes = [40, 16], strides = [1, 1]} : vector<40x32xf32> to vector<40x16xf32>
    %66 = vector.extract_strided_slice %62 {offsets = [0, 16], sizes = [40, 16], strides = [1, 1]} : vector<40x32xf32> to vector<40x16xf32>
    %67 = vector.shape_cast %65 : vector<40x16xf32> to vector<1x40x16xf32>
    %68 = vector.shape_cast %66 : vector<40x16xf32> to vector<1x40x16xf32>
    %69 = tpu.concatenate %67, %68 in 0 : vector<1x40x16xf32>, vector<1x40x16xf32> -> vector<2x40x16xf32>
    %70 = vector.extract_strided_slice %63 {offsets = [0, 0], sizes = [40, 16], strides = [1, 1]} : vector<40x32xf32> to vector<40x16xf32>
    %71 = vector.extract_strided_slice %63 {offsets = [0, 16], sizes = [40, 16], strides = [1, 1]} : vector<40x32xf32> to vector<40x16xf32>
    %72 = vector.shape_cast %70 : vector<40x16xf32> to vector<1x40x16xf32>
    %73 = vector.shape_cast %71 : vector<40x16xf32> to vector<1x40x16xf32>
    %74 = tpu.concatenate %72, %73 in 0 : vector<1x40x16xf32>, vector<1x40x16xf32> -> vector<2x40x16xf32>
    %75 = vector.extract_strided_slice %64 {offsets = [0, 0], sizes = [40, 16], strides = [1, 1]} : vector<40x32xf32> to vector<40x16xf32>
    %76 = vector.extract_strided_slice %64 {offsets = [0, 16], sizes = [40, 16], strides = [1, 1]} : vector<40x32xf32> to vector<40x16xf32>
    %77 = vector.shape_cast %75 : vector<40x16xf32> to vector<1x40x16xf32>
    %78 = vector.shape_cast %76 : vector<40x16xf32> to vector<1x40x16xf32>
    %79 = tpu.concatenate %77, %78 in 0 : vector<1x40x16xf32>, vector<1x40x16xf32> -> vector<2x40x16xf32>
    %80 = arith.truncf %69 : vector<2x40x16xf32> to vector<2x40x16xbf16>
    %81 = arith.truncf %74 : vector<2x40x16xf32> to vector<2x40x16xbf16>
    "tpu.trace_start"() <{level = 10 : i32, message = "hmk,hnk->hmn"}> : () -> ()
    %cst_30 = arith.constant dense<0.000000e+00> : vector<2x40x40xf32>
    %82 = tpu.matmul %80, %81, %cst_30 {dimension_numbers = #tpu.dot_dimension_numbers<[2], [2], [1], [1], [0, 0, 0, 1, 1, 1], [0], [0]>} : vector<2x40x16xbf16>, vector<2x40x16xbf16>, vector<2x40x40xf32> -> vector<2x40x40xf32>
    "tpu.trace_stop"() : () -> ()
    %83 = vector.shape_cast %25 : vector<40x40xf32> to vector<1x40x40xf32>
    %84 = vector.broadcast %83 : vector<1x40x40xf32> to vector<2x40x40xf32>
    %85 = arith.addf %82, %84 : vector<2x40x40xf32>
    %cst_31 = arith.constant dense<0xFF800000> : vector<2x40xf32>
    %86 = vector.multi_reduction <maximumf>, %85, %cst_31 [2] : vector<2x40x40xf32> to vector<2x40xf32>
    %87 = vector.shape_cast %86 : vector<2x40xf32> to vector<2x40x1xf32>
    %88 = vector.broadcast %87 : vector<2x40x1xf32> to vector<2x40x40xf32>
    %89 = arith.subf %85, %88 : vector<2x40x40xf32>
    %90 = math.exp %89 : vector<2x40x40xf32>
    %cst_32 = arith.constant dense<0.000000e+00> : vector<2x40xf32>
    %91 = vector.multi_reduction <add>, %90, %cst_32 [2] : vector<2x40x40xf32> to vector<2x40xf32>
    %92 = vector.shape_cast %91 : vector<2x40xf32> to vector<2x40x1xf32>
    %93 = tpu.reciprocal %92 {approx = true} : vector<2x40x1xf32> -> vector<2x40x1xf32>
    %94 = vector.broadcast %93 : vector<2x40x1xf32> to vector<2x40x40xf32>
    %95 = arith.mulf %90, %94 : vector<2x40x40xf32>
    %96 = arith.truncf %95 : vector<2x40x40xf32> to vector<2x40x40xbf16>
    %97 = arith.truncf %79 : vector<2x40x16xf32> to vector<2x40x16xbf16>
    "tpu.trace_start"() <{level = 10 : i32, message = "hmn,hnk->hmk"}> : () -> ()
    %cst_33 = arith.constant dense<0.000000e+00> : vector<2x40x16xf32>
    %98 = tpu.matmul %96, %97, %cst_33 {dimension_numbers = #tpu.dot_dimension_numbers<[2], [1], [1], [2], [0, 0, 0, 1, 1, 2], [0], [0]>} : vector<2x40x40xbf16>, vector<2x40x16xbf16>, vector<2x40x16xf32> -> vector<2x40x16xf32>
    "tpu.trace_stop"() : () -> ()
    %99 = vector.extract_strided_slice %98 {offsets = [0, 0, 0], sizes = [1, 40, 16], strides = [1, 1, 1]} : vector<2x40x16xf32> to vector<1x40x16xf32>
    %100 = vector.shape_cast %99 : vector<1x40x16xf32> to vector<40x16xf32>
    %101 = vector.extract_strided_slice %98 {offsets = [1, 0, 0], sizes = [1, 40, 16], strides = [1, 1, 1]} : vector<2x40x16xf32> to vector<1x40x16xf32>
    %102 = vector.shape_cast %101 : vector<1x40x16xf32> to vector<40x16xf32>
    %103 = tpu.concatenate %100, %102 in 1 : vector<40x16xf32>, vector<40x16xf32> -> vector<40x32xf32>
    %104 = arith.truncf %103 : vector<40x32xf32> to vector<40x32xbf16>
    %c0_34 = arith.constant 0 : index
    %c0_35 = arith.constant 0 : index
    %c0_36 = arith.constant 0 : index
    %105 = vector.load %arg9[%c0_34, %c0_35, %c0_36] : memref<2x32x32xbf16, #tpu.memory_space<vmem>>, vector<1x32x32xbf16>
    %106 = vector.shape_cast %105 : vector<1x32x32xbf16> to vector<32x32xbf16>
    %cst_37 = arith.constant dense<0.000000e+00> : vector<40x32xf32>
    %107 = tpu.matmul %104, %106, %cst_37 {dimension_numbers = #tpu.dot_dimension_numbers<[1], [0], [0], [1], [0, 0, 1, 1], [], []>} : vector<40x32xbf16>, vector<32x32xbf16>, vector<40x32xf32> -> vector<40x32xf32>
    %108 = arith.addf %24, %107 : vector<40x32xf32>
    %c0_38 = arith.constant 0 : index
    %c0_39 = arith.constant 0 : index
    %c0_40 = arith.constant 0 : index
    %109 = vector.load %arg10[%c0_38, %c0_39, %c0_40] : memref<2x1x32xf32, #tpu.memory_space<vmem>>, vector<1x1x32xf32>
    %110 = vector.shape_cast %109 : vector<1x1x32xf32> to vector<1x32xf32>
    %111 = vector.broadcast %110 : vector<1x32xf32> to vector<40x32xf32>
    %112 = arith.addf %108, %111 : vector<40x32xf32>
    %c0_41 = arith.constant 0 : index
    %c0_42 = arith.constant 0 : index
    %c0_43 = arith.constant 0 : index
    %113 = vector.load %arg11[%c0_41, %c0_42, %c0_43] : memref<2x1x32xf32, #tpu.memory_space<vmem>>, vector<1x1x32xf32>
    %114 = vector.shape_cast %113 : vector<1x1x32xf32> to vector<1x32xf32>
    %c0_44 = arith.constant 0 : index
    %c0_45 = arith.constant 0 : index
    %c0_46 = arith.constant 0 : index
    %115 = vector.load %arg12[%c0_44, %c0_45, %c0_46] : memref<2x1x32xf32, #tpu.memory_space<vmem>>, vector<1x1x32xf32>
    %116 = vector.shape_cast %115 : vector<1x1x32xf32> to vector<1x32xf32>
    %cst_47 = arith.constant dense<0.000000e+00> : vector<40xf32>
    %117 = vector.multi_reduction <add>, %112, %cst_47 [1] : vector<40x32xf32> to vector<40xf32>
    %118 = vector.shape_cast %117 : vector<40xf32> to vector<40x1xf32>
    %cst_48 = arith.constant 3.200000e+01 : f32
    %119 = vector.broadcast %cst_48 : f32 to vector<40x1xf32>
    %120 = arith.divf %118, %119 : vector<40x1xf32>
    %121 = vector.broadcast %120 : vector<40x1xf32> to vector<40x32xf32>
    %122 = arith.subf %112, %121 : vector<40x32xf32>
    %123 = arith.mulf %122, %122 : vector<40x32xf32>
    %cst_49 = arith.constant dense<0.000000e+00> : vector<40xf32>
    %124 = vector.multi_reduction <add>, %123, %cst_49 [1] : vector<40x32xf32> to vector<40xf32>
    %125 = vector.shape_cast %124 : vector<40xf32> to vector<40x1xf32>
    %cst_50 = arith.constant 3.200000e+01 : f32
    %126 = vector.broadcast %cst_50 : f32 to vector<40x1xf32>
    %127 = arith.divf %125, %126 : vector<40x1xf32>
    %128 = vector.broadcast %120 : vector<40x1xf32> to vector<40x32xf32>
    %129 = arith.subf %112, %128 : vector<40x32xf32>
    %cst_51 = arith.constant 9.99999974E-6 : f32
    %130 = vector.broadcast %cst_51 : f32 to vector<40x1xf32>
    %131 = arith.addf %127, %130 : vector<40x1xf32>
    %132 = math.rsqrt %131 : vector<40x1xf32>
    %133 = vector.broadcast %132 : vector<40x1xf32> to vector<40x32xf32>
    %134 = arith.mulf %129, %133 : vector<40x32xf32>
    %135 = vector.broadcast %114 : vector<1x32xf32> to vector<40x32xf32>
    %136 = arith.mulf %134, %135 : vector<40x32xf32>
    %137 = vector.broadcast %116 : vector<1x32xf32> to vector<40x32xf32>
    %138 = arith.addf %136, %137 : vector<40x32xf32>
    %139 = arith.truncf %138 : vector<40x32xf32> to vector<40x32xbf16>
    %c0_52 = arith.constant 0 : index
    %c0_53 = arith.constant 0 : index
    %c0_54 = arith.constant 0 : index
    %140 = vector.load %arg13[%c0_52, %c0_53, %c0_54] : memref<2x32x128xbf16, #tpu.memory_space<vmem>>, vector<1x32x128xbf16>
    %141 = vector.shape_cast %140 : vector<1x32x128xbf16> to vector<32x128xbf16>
    %cst_55 = arith.constant dense<0.000000e+00> : vector<40x128xf32>
    %142 = tpu.matmul %139, %141, %cst_55 {dimension_numbers = #tpu.dot_dimension_numbers<[1], [0], [0], [1], [0, 0, 1, 1], [], []>} : vector<40x32xbf16>, vector<32x128xbf16>, vector<40x128xf32> -> vector<40x128xf32>
    %c0_56 = arith.constant 0 : index
    %c0_57 = arith.constant 0 : index
    %c0_58 = arith.constant 0 : index
    %143 = vector.load %arg14[%c0_56, %c0_57, %c0_58] : memref<2x1x128xf32, #tpu.memory_space<vmem>>, vector<1x1x128xf32>
    %144 = vector.shape_cast %143 : vector<1x1x128xf32> to vector<1x128xf32>
    %145 = vector.broadcast %144 : vector<1x128xf32> to vector<40x128xf32>
    %146 = arith.addf %142, %145 : vector<40x128xf32>
    %cst_59 = arith.constant 1.702000e+00 : f32
    %147 = vector.broadcast %cst_59 : f32 to vector<40x128xf32>
    %148 = arith.mulf %147, %146 : vector<40x128xf32>
    %149 = arith.negf %148 : vector<40x128xf32>
    %150 = math.exp %149 : vector<40x128xf32>
    %cst_60 = arith.constant 1.000000e+00 : f32
    %151 = vector.broadcast %cst_60 : f32 to vector<40x128xf32>
    %152 = arith.addf %151, %150 : vector<40x128xf32>
    %153 = arith.divf %151, %152 : vector<40x128xf32>
    %154 = arith.mulf %146, %153 : vector<40x128xf32>
    %155 = arith.truncf %154 : vector<40x128xf32> to vector<40x128xbf16>
    %c0_61 = arith.constant 0 : index
    %c0_62 = arith.constant 0 : index
    %c0_63 = arith.constant 0 : index
    %156 = vector.load %arg15[%c0_61, %c0_62, %c0_63] : memref<2x128x32xbf16, #tpu.memory_space<vmem>>, vector<1x128x32xbf16>
    %157 = vector.shape_cast %156 : vector<1x128x32xbf16> to vector<128x32xbf16>
    %cst_64 = arith.constant dense<0.000000e+00> : vector<40x32xf32>
    %158 = tpu.matmul %155, %157, %cst_64 {dimension_numbers = #tpu.dot_dimension_numbers<[1], [0], [0], [1], [0, 0, 1, 1], [], []>} : vector<40x128xbf16>, vector<128x32xbf16>, vector<40x32xf32> -> vector<40x32xf32>
    %159 = arith.addf %112, %158 : vector<40x32xf32>
    %c0_65 = arith.constant 0 : index
    %c0_66 = arith.constant 0 : index
    %c0_67 = arith.constant 0 : index
    %160 = vector.load %arg16[%c0_65, %c0_66, %c0_67] : memref<2x1x32xf32, #tpu.memory_space<vmem>>, vector<1x1x32xf32>
    %161 = vector.shape_cast %160 : vector<1x1x32xf32> to vector<1x32xf32>
    %162 = vector.broadcast %161 : vector<1x32xf32> to vector<40x32xf32>
    %163 = arith.addf %159, %162 : vector<40x32xf32>
    %c1 = arith.constant 1 : index
    %c0_68 = arith.constant 0 : index
    %c0_69 = arith.constant 0 : index
    %164 = vector.load %arg5[%c1, %c0_68, %c0_69] : memref<2x1x32xf32, #tpu.memory_space<vmem>>, vector<1x1x32xf32>
    %165 = vector.shape_cast %164 : vector<1x1x32xf32> to vector<1x32xf32>
    %c1_70 = arith.constant 1 : index
    %c0_71 = arith.constant 0 : index
    %c0_72 = arith.constant 0 : index
    %166 = vector.load %arg6[%c1_70, %c0_71, %c0_72] : memref<2x1x32xf32, #tpu.memory_space<vmem>>, vector<1x1x32xf32>
    %167 = vector.shape_cast %166 : vector<1x1x32xf32> to vector<1x32xf32>
    %cst_73 = arith.constant dense<0.000000e+00> : vector<40xf32>
    %168 = vector.multi_reduction <add>, %163, %cst_73 [1] : vector<40x32xf32> to vector<40xf32>
    %169 = vector.shape_cast %168 : vector<40xf32> to vector<40x1xf32>
    %cst_74 = arith.constant 3.200000e+01 : f32
    %170 = vector.broadcast %cst_74 : f32 to vector<40x1xf32>
    %171 = arith.divf %169, %170 : vector<40x1xf32>
    %172 = vector.broadcast %171 : vector<40x1xf32> to vector<40x32xf32>
    %173 = arith.subf %163, %172 : vector<40x32xf32>
    %174 = arith.mulf %173, %173 : vector<40x32xf32>
    %cst_75 = arith.constant dense<0.000000e+00> : vector<40xf32>
    %175 = vector.multi_reduction <add>, %174, %cst_75 [1] : vector<40x32xf32> to vector<40xf32>
    %176 = vector.shape_cast %175 : vector<40xf32> to vector<40x1xf32>
    %cst_76 = arith.constant 3.200000e+01 : f32
    %177 = vector.broadcast %cst_76 : f32 to vector<40x1xf32>
    %178 = arith.divf %176, %177 : vector<40x1xf32>
    %179 = vector.broadcast %171 : vector<40x1xf32> to vector<40x32xf32>
    %180 = arith.subf %163, %179 : vector<40x32xf32>
    %cst_77 = arith.constant 9.99999974E-6 : f32
    %181 = vector.broadcast %cst_77 : f32 to vector<40x1xf32>
    %182 = arith.addf %178, %181 : vector<40x1xf32>
    %183 = math.rsqrt %182 : vector<40x1xf32>
    %184 = vector.broadcast %183 : vector<40x1xf32> to vector<40x32xf32>
    %185 = arith.mulf %180, %184 : vector<40x32xf32>
    %186 = vector.broadcast %165 : vector<1x32xf32> to vector<40x32xf32>
    %187 = arith.mulf %185, %186 : vector<40x32xf32>
    %188 = vector.broadcast %167 : vector<1x32xf32> to vector<40x32xf32>
    %189 = arith.addf %187, %188 : vector<40x32xf32>
    %190 = arith.truncf %189 : vector<40x32xf32> to vector<40x32xbf16>
    %c1_78 = arith.constant 1 : index
    %c0_79 = arith.constant 0 : index
    %c0_80 = arith.constant 0 : index
    %191 = vector.load %arg7[%c1_78, %c0_79, %c0_80] : memref<2x32x96xbf16, #tpu.memory_space<vmem>>, vector<1x32x96xbf16>
    %192 = vector.shape_cast %191 : vector<1x32x96xbf16> to vector<32x96xbf16>
    %cst_81 = arith.constant dense<0.000000e+00> : vector<40x96xf32>
    %193 = tpu.matmul %190, %192, %cst_81 {dimension_numbers = #tpu.dot_dimension_numbers<[1], [0], [0], [1], [0, 0, 1, 1], [], []>} : vector<40x32xbf16>, vector<32x96xbf16>, vector<40x96xf32> -> vector<40x96xf32>
    %c1_82 = arith.constant 1 : index
    %c0_83 = arith.constant 0 : index
    %c0_84 = arith.constant 0 : index
    %194 = vector.load %arg8[%c1_82, %c0_83, %c0_84] : memref<2x1x96xf32, #tpu.memory_space<vmem>>, vector<1x1x96xf32>
    %195 = vector.shape_cast %194 : vector<1x1x96xf32> to vector<1x96xf32>
    %196 = vector.broadcast %195 : vector<1x96xf32> to vector<40x96xf32>
    %197 = arith.addf %193, %196 : vector<40x96xf32>
    %198 = vector.extract_strided_slice %197 {offsets = [0, 0], sizes = [40, 32], strides = [1, 1]} : vector<40x96xf32> to vector<40x32xf32>
    %cst_85 = arith.constant 2.500000e-01 : f32
    %199 = vector.broadcast %cst_85 : f32 to vector<40x32xf32>
    %200 = arith.mulf %198, %199 : vector<40x32xf32>
    %201 = vector.extract_strided_slice %197 {offsets = [0, 32], sizes = [40, 32], strides = [1, 1]} : vector<40x96xf32> to vector<40x32xf32>
    %202 = vector.extract_strided_slice %197 {offsets = [0, 64], sizes = [40, 32], strides = [1, 1]} : vector<40x96xf32> to vector<40x32xf32>
    %203 = vector.extract_strided_slice %200 {offsets = [0, 0], sizes = [40, 16], strides = [1, 1]} : vector<40x32xf32> to vector<40x16xf32>
    %204 = vector.extract_strided_slice %200 {offsets = [0, 16], sizes = [40, 16], strides = [1, 1]} : vector<40x32xf32> to vector<40x16xf32>
    %205 = vector.shape_cast %203 : vector<40x16xf32> to vector<1x40x16xf32>
    %206 = vector.shape_cast %204 : vector<40x16xf32> to vector<1x40x16xf32>
    %207 = tpu.concatenate %205, %206 in 0 : vector<1x40x16xf32>, vector<1x40x16xf32> -> vector<2x40x16xf32>
    %208 = vector.extract_strided_slice %201 {offsets = [0, 0], sizes = [40, 16], strides = [1, 1]} : vector<40x32xf32> to vector<40x16xf32>
    %209 = vector.extract_strided_slice %201 {offsets = [0, 16], sizes = [40, 16], strides = [1, 1]} : vector<40x32xf32> to vector<40x16xf32>
    %210 = vector.shape_cast %208 : vector<40x16xf32> to vector<1x40x16xf32>
    %211 = vector.shape_cast %209 : vector<40x16xf32> to vector<1x40x16xf32>
    %212 = tpu.concatenate %210, %211 in 0 : vector<1x40x16xf32>, vector<1x40x16xf32> -> vector<2x40x16xf32>
    %213 = vector.extract_strided_slice %202 {offsets = [0, 0], sizes = [40, 16], strides = [1, 1]} : vector<40x32xf32> to vector<40x16xf32>
    %214 = vector.extract_strided_slice %202 {offsets = [0, 16], sizes = [40, 16], strides = [1, 1]} : vector<40x32xf32> to vector<40x16xf32>
    %215 = vector.shape_cast %213 : vector<40x16xf32> to vector<1x40x16xf32>
    %216 = vector.shape_cast %214 : vector<40x16xf32> to vector<1x40x16xf32>
    %217 = tpu.concatenate %215, %216 in 0 : vector<1x40x16xf32>, vector<1x40x16xf32> -> vector<2x40x16xf32>
    %218 = arith.truncf %207 : vector<2x40x16xf32> to vector<2x40x16xbf16>
    %219 = arith.truncf %212 : vector<2x40x16xf32> to vector<2x40x16xbf16>
    "tpu.trace_start"() <{level = 10 : i32, message = "hmk,hnk->hmn"}> : () -> ()
    %cst_86 = arith.constant dense<0.000000e+00> : vector<2x40x40xf32>
    %220 = tpu.matmul %218, %219, %cst_86 {dimension_numbers = #tpu.dot_dimension_numbers<[2], [2], [1], [1], [0, 0, 0, 1, 1, 1], [0], [0]>} : vector<2x40x16xbf16>, vector<2x40x16xbf16>, vector<2x40x40xf32> -> vector<2x40x40xf32>
    "tpu.trace_stop"() : () -> ()
    %221 = vector.shape_cast %25 : vector<40x40xf32> to vector<1x40x40xf32>
    %222 = vector.broadcast %221 : vector<1x40x40xf32> to vector<2x40x40xf32>
    %223 = arith.addf %220, %222 : vector<2x40x40xf32>
    %cst_87 = arith.constant dense<0xFF800000> : vector<2x40xf32>
    %224 = vector.multi_reduction <maximumf>, %223, %cst_87 [2] : vector<2x40x40xf32> to vector<2x40xf32>
    %225 = vector.shape_cast %224 : vector<2x40xf32> to vector<2x40x1xf32>
    %226 = vector.broadcast %225 : vector<2x40x1xf32> to vector<2x40x40xf32>
    %227 = arith.subf %223, %226 : vector<2x40x40xf32>
    %228 = math.exp %227 : vector<2x40x40xf32>
    %cst_88 = arith.constant dense<0.000000e+00> : vector<2x40xf32>
    %229 = vector.multi_reduction <add>, %228, %cst_88 [2] : vector<2x40x40xf32> to vector<2x40xf32>
    %230 = vector.shape_cast %229 : vector<2x40xf32> to vector<2x40x1xf32>
    %231 = tpu.reciprocal %230 {approx = true} : vector<2x40x1xf32> -> vector<2x40x1xf32>
    %232 = vector.broadcast %231 : vector<2x40x1xf32> to vector<2x40x40xf32>
    %233 = arith.mulf %228, %232 : vector<2x40x40xf32>
    %234 = arith.truncf %233 : vector<2x40x40xf32> to vector<2x40x40xbf16>
    %235 = arith.truncf %217 : vector<2x40x16xf32> to vector<2x40x16xbf16>
    "tpu.trace_start"() <{level = 10 : i32, message = "hmn,hnk->hmk"}> : () -> ()
    %cst_89 = arith.constant dense<0.000000e+00> : vector<2x40x16xf32>
    %236 = tpu.matmul %234, %235, %cst_89 {dimension_numbers = #tpu.dot_dimension_numbers<[2], [1], [1], [2], [0, 0, 0, 1, 1, 2], [0], [0]>} : vector<2x40x40xbf16>, vector<2x40x16xbf16>, vector<2x40x16xf32> -> vector<2x40x16xf32>
    "tpu.trace_stop"() : () -> ()
    %237 = vector.extract_strided_slice %236 {offsets = [0, 0, 0], sizes = [1, 40, 16], strides = [1, 1, 1]} : vector<2x40x16xf32> to vector<1x40x16xf32>
    %238 = vector.shape_cast %237 : vector<1x40x16xf32> to vector<40x16xf32>
    %239 = vector.extract_strided_slice %236 {offsets = [1, 0, 0], sizes = [1, 40, 16], strides = [1, 1, 1]} : vector<2x40x16xf32> to vector<1x40x16xf32>
    %240 = vector.shape_cast %239 : vector<1x40x16xf32> to vector<40x16xf32>
    %241 = tpu.concatenate %238, %240 in 1 : vector<40x16xf32>, vector<40x16xf32> -> vector<40x32xf32>
    %242 = arith.truncf %241 : vector<40x32xf32> to vector<40x32xbf16>
    %c1_90 = arith.constant 1 : index
    %c0_91 = arith.constant 0 : index
    %c0_92 = arith.constant 0 : index
    %243 = vector.load %arg9[%c1_90, %c0_91, %c0_92] : memref<2x32x32xbf16, #tpu.memory_space<vmem>>, vector<1x32x32xbf16>
    %244 = vector.shape_cast %243 : vector<1x32x32xbf16> to vector<32x32xbf16>
    %cst_93 = arith.constant dense<0.000000e+00> : vector<40x32xf32>
    %245 = tpu.matmul %242, %244, %cst_93 {dimension_numbers = #tpu.dot_dimension_numbers<[1], [0], [0], [1], [0, 0, 1, 1], [], []>} : vector<40x32xbf16>, vector<32x32xbf16>, vector<40x32xf32> -> vector<40x32xf32>
    %246 = arith.addf %163, %245 : vector<40x32xf32>
    %c1_94 = arith.constant 1 : index
    %c0_95 = arith.constant 0 : index
    %c0_96 = arith.constant 0 : index
    %247 = vector.load %arg10[%c1_94, %c0_95, %c0_96] : memref<2x1x32xf32, #tpu.memory_space<vmem>>, vector<1x1x32xf32>
    %248 = vector.shape_cast %247 : vector<1x1x32xf32> to vector<1x32xf32>
    %249 = vector.broadcast %248 : vector<1x32xf32> to vector<40x32xf32>
    %250 = arith.addf %246, %249 : vector<40x32xf32>
    %c1_97 = arith.constant 1 : index
    %c0_98 = arith.constant 0 : index
    %c0_99 = arith.constant 0 : index
    %251 = vector.load %arg11[%c1_97, %c0_98, %c0_99] : memref<2x1x32xf32, #tpu.memory_space<vmem>>, vector<1x1x32xf32>
    %252 = vector.shape_cast %251 : vector<1x1x32xf32> to vector<1x32xf32>
    %c1_100 = arith.constant 1 : index
    %c0_101 = arith.constant 0 : index
    %c0_102 = arith.constant 0 : index
    %253 = vector.load %arg12[%c1_100, %c0_101, %c0_102] : memref<2x1x32xf32, #tpu.memory_space<vmem>>, vector<1x1x32xf32>
    %254 = vector.shape_cast %253 : vector<1x1x32xf32> to vector<1x32xf32>
    %cst_103 = arith.constant dense<0.000000e+00> : vector<40xf32>
    %255 = vector.multi_reduction <add>, %250, %cst_103 [1] : vector<40x32xf32> to vector<40xf32>
    %256 = vector.shape_cast %255 : vector<40xf32> to vector<40x1xf32>
    %cst_104 = arith.constant 3.200000e+01 : f32
    %257 = vector.broadcast %cst_104 : f32 to vector<40x1xf32>
    %258 = arith.divf %256, %257 : vector<40x1xf32>
    %259 = vector.broadcast %258 : vector<40x1xf32> to vector<40x32xf32>
    %260 = arith.subf %250, %259 : vector<40x32xf32>
    %261 = arith.mulf %260, %260 : vector<40x32xf32>
    %cst_105 = arith.constant dense<0.000000e+00> : vector<40xf32>
    %262 = vector.multi_reduction <add>, %261, %cst_105 [1] : vector<40x32xf32> to vector<40xf32>
    %263 = vector.shape_cast %262 : vector<40xf32> to vector<40x1xf32>
    %cst_106 = arith.constant 3.200000e+01 : f32
    %264 = vector.broadcast %cst_106 : f32 to vector<40x1xf32>
    %265 = arith.divf %263, %264 : vector<40x1xf32>
    %266 = vector.broadcast %258 : vector<40x1xf32> to vector<40x32xf32>
    %267 = arith.subf %250, %266 : vector<40x32xf32>
    %cst_107 = arith.constant 9.99999974E-6 : f32
    %268 = vector.broadcast %cst_107 : f32 to vector<40x1xf32>
    %269 = arith.addf %265, %268 : vector<40x1xf32>
    %270 = math.rsqrt %269 : vector<40x1xf32>
    %271 = vector.broadcast %270 : vector<40x1xf32> to vector<40x32xf32>
    %272 = arith.mulf %267, %271 : vector<40x32xf32>
    %273 = vector.broadcast %252 : vector<1x32xf32> to vector<40x32xf32>
    %274 = arith.mulf %272, %273 : vector<40x32xf32>
    %275 = vector.broadcast %254 : vector<1x32xf32> to vector<40x32xf32>
    %276 = arith.addf %274, %275 : vector<40x32xf32>
    %277 = arith.truncf %276 : vector<40x32xf32> to vector<40x32xbf16>
    %c1_108 = arith.constant 1 : index
    %c0_109 = arith.constant 0 : index
    %c0_110 = arith.constant 0 : index
    %278 = vector.load %arg13[%c1_108, %c0_109, %c0_110] : memref<2x32x128xbf16, #tpu.memory_space<vmem>>, vector<1x32x128xbf16>
    %279 = vector.shape_cast %278 : vector<1x32x128xbf16> to vector<32x128xbf16>
    %cst_111 = arith.constant dense<0.000000e+00> : vector<40x128xf32>
    %280 = tpu.matmul %277, %279, %cst_111 {dimension_numbers = #tpu.dot_dimension_numbers<[1], [0], [0], [1], [0, 0, 1, 1], [], []>} : vector<40x32xbf16>, vector<32x128xbf16>, vector<40x128xf32> -> vector<40x128xf32>
    %c1_112 = arith.constant 1 : index
    %c0_113 = arith.constant 0 : index
    %c0_114 = arith.constant 0 : index
    %281 = vector.load %arg14[%c1_112, %c0_113, %c0_114] : memref<2x1x128xf32, #tpu.memory_space<vmem>>, vector<1x1x128xf32>
    %282 = vector.shape_cast %281 : vector<1x1x128xf32> to vector<1x128xf32>
    %283 = vector.broadcast %282 : vector<1x128xf32> to vector<40x128xf32>
    %284 = arith.addf %280, %283 : vector<40x128xf32>
    %cst_115 = arith.constant 1.702000e+00 : f32
    %285 = vector.broadcast %cst_115 : f32 to vector<40x128xf32>
    %286 = arith.mulf %285, %284 : vector<40x128xf32>
    %287 = arith.negf %286 : vector<40x128xf32>
    %288 = math.exp %287 : vector<40x128xf32>
    %cst_116 = arith.constant 1.000000e+00 : f32
    %289 = vector.broadcast %cst_116 : f32 to vector<40x128xf32>
    %290 = arith.addf %289, %288 : vector<40x128xf32>
    %291 = arith.divf %289, %290 : vector<40x128xf32>
    %292 = arith.mulf %284, %291 : vector<40x128xf32>
    %293 = arith.truncf %292 : vector<40x128xf32> to vector<40x128xbf16>
    %c1_117 = arith.constant 1 : index
    %c0_118 = arith.constant 0 : index
    %c0_119 = arith.constant 0 : index
    %294 = vector.load %arg15[%c1_117, %c0_118, %c0_119] : memref<2x128x32xbf16, #tpu.memory_space<vmem>>, vector<1x128x32xbf16>
    %295 = vector.shape_cast %294 : vector<1x128x32xbf16> to vector<128x32xbf16>
    %cst_120 = arith.constant dense<0.000000e+00> : vector<40x32xf32>
    %296 = tpu.matmul %293, %295, %cst_120 {dimension_numbers = #tpu.dot_dimension_numbers<[1], [0], [0], [1], [0, 0, 1, 1], [], []>} : vector<40x128xbf16>, vector<128x32xbf16>, vector<40x32xf32> -> vector<40x32xf32>
    %297 = arith.addf %250, %296 : vector<40x32xf32>
    %c1_121 = arith.constant 1 : index
    %c0_122 = arith.constant 0 : index
    %c0_123 = arith.constant 0 : index
    %298 = vector.load %arg16[%c1_121, %c0_122, %c0_123] : memref<2x1x32xf32, #tpu.memory_space<vmem>>, vector<1x1x32xf32>
    %299 = vector.shape_cast %298 : vector<1x1x32xf32> to vector<1x32xf32>
    %300 = vector.broadcast %299 : vector<1x32xf32> to vector<40x32xf32>
    %301 = arith.addf %297, %300 : vector<40x32xf32>
    %c0_124 = arith.constant 0 : index
    %c0_125 = arith.constant 0 : index
    %302 = vector.load %arg2[%c0_124, %c0_125] : memref<2x40xf32, #tpu.memory_space<vmem>>, vector<2x40xf32>
    %303 = vector.shape_cast %302 : vector<2x40xf32> to vector<2x40x1xf32>
    %304 = vector.shape_cast %301 : vector<40x32xf32> to vector<1x40x32xf32>
    %305 = vector.broadcast %303 : vector<2x40x1xf32> to vector<2x40x32xf32>
    %306 = vector.broadcast %304 : vector<1x40x32xf32> to vector<2x40x32xf32>
    %307 = arith.mulf %305, %306 : vector<2x40x32xf32>
    %cst_126 = arith.constant dense<0.000000e+00> : vector<2x32xf32>
    %308 = vector.multi_reduction <add>, %307, %cst_126 [1] : vector<2x40x32xf32> to vector<2x32xf32>
    %c0_127 = arith.constant 0 : index
    %c0_128 = arith.constant 0 : index
    %309 = vector.load %arg17[%c0_127, %c0_128] : memref<1x32xf32, #tpu.memory_space<vmem>>, vector<1x32xf32>
    %c0_129 = arith.constant 0 : index
    %c0_130 = arith.constant 0 : index
    %310 = vector.load %arg18[%c0_129, %c0_130] : memref<1x32xf32, #tpu.memory_space<vmem>>, vector<1x32xf32>
    %cst_131 = arith.constant dense<0.000000e+00> : vector<2xf32>
    %311 = vector.multi_reduction <add>, %308, %cst_131 [1] : vector<2x32xf32> to vector<2xf32>
    %312 = vector.shape_cast %311 : vector<2xf32> to vector<2x1xf32>
    %cst_132 = arith.constant 3.200000e+01 : f32
    %313 = vector.broadcast %cst_132 : f32 to vector<2x1xf32>
    %314 = arith.divf %312, %313 : vector<2x1xf32>
    %315 = vector.broadcast %314 : vector<2x1xf32> to vector<2x32xf32>
    %316 = arith.subf %308, %315 : vector<2x32xf32>
    %317 = arith.mulf %316, %316 : vector<2x32xf32>
    %cst_133 = arith.constant dense<0.000000e+00> : vector<2xf32>
    %318 = vector.multi_reduction <add>, %317, %cst_133 [1] : vector<2x32xf32> to vector<2xf32>
    %319 = vector.shape_cast %318 : vector<2xf32> to vector<2x1xf32>
    %cst_134 = arith.constant 3.200000e+01 : f32
    %320 = vector.broadcast %cst_134 : f32 to vector<2x1xf32>
    %321 = arith.divf %319, %320 : vector<2x1xf32>
    %322 = vector.broadcast %314 : vector<2x1xf32> to vector<2x32xf32>
    %323 = arith.subf %308, %322 : vector<2x32xf32>
    %cst_135 = arith.constant 9.99999974E-6 : f32
    %324 = vector.broadcast %cst_135 : f32 to vector<2x1xf32>
    %325 = arith.addf %321, %324 : vector<2x1xf32>
    %326 = math.rsqrt %325 : vector<2x1xf32>
    %327 = vector.broadcast %326 : vector<2x1xf32> to vector<2x32xf32>
    %328 = arith.mulf %323, %327 : vector<2x32xf32>
    %329 = vector.broadcast %309 : vector<1x32xf32> to vector<2x32xf32>
    %330 = arith.mulf %328, %329 : vector<2x32xf32>
    %331 = vector.broadcast %310 : vector<1x32xf32> to vector<2x32xf32>
    %332 = arith.addf %330, %331 : vector<2x32xf32>
    %333 = arith.truncf %332 : vector<2x32xf32> to vector<2x32xbf16>
    %c0_136 = arith.constant 0 : index
    %c0_137 = arith.constant 0 : index
    %334 = vector.load %arg19[%c0_136, %c0_137] : memref<32x32xbf16, #tpu.memory_space<vmem>>, vector<32x32xbf16>
    %cst_138 = arith.constant dense<0.000000e+00> : vector<2x32xf32>
    %335 = tpu.matmul %333, %334, %cst_138 {dimension_numbers = #tpu.dot_dimension_numbers<[1], [0], [0], [1], [0, 0, 1, 1], [], []>} : vector<2x32xbf16>, vector<32x32xbf16>, vector<2x32xf32> -> vector<2x32xf32>
    %c0_139 = arith.constant 0 : index
    %c0_140 = arith.constant 0 : index
    %336 = vector.load %arg20[%c0_139, %c0_140] : memref<2x32xf32, #tpu.memory_space<vmem>>, vector<2x32xf32>
    tpu.vector_store %arg20[%c0_139, %c0_140], %335 {strides = array<i32>} : memref<2x32xf32, #tpu.memory_space<vmem>>, vector<2x32xf32>,
    return
  }
}

module attributes {stable_mosaic.version = 11 : i64} {
  func.func @kernel(%arg0: memref<16x32xf32, #tpu.memory_space<vmem>>, %arg1: memref<16x16xf32, #tpu.memory_space<vmem>>, %arg2: memref<2x16xf32, #tpu.memory_space<vmem>>, %arg3: memref<2x1x32xf32, #tpu.memory_space<vmem>>, %arg4: memref<2x1x32xf32, #tpu.memory_space<vmem>>, %arg5: memref<2x32x96xbf16, #tpu.memory_space<vmem>>, %arg6: memref<2x1x96xf32, #tpu.memory_space<vmem>>, %arg7: memref<2x32x32xbf16, #tpu.memory_space<vmem>>, %arg8: memref<2x1x32xf32, #tpu.memory_space<vmem>>, %arg9: memref<2x1x32xf32, #tpu.memory_space<vmem>>, %arg10: memref<2x1x32xf32, #tpu.memory_space<vmem>>, %arg11: memref<2x32x128xbf16, #tpu.memory_space<vmem>>, %arg12: memref<2x1x128xf32, #tpu.memory_space<vmem>>, %arg13: memref<2x128x32xbf16, #tpu.memory_space<vmem>>, %arg14: memref<2x1x32xf32, #tpu.memory_space<vmem>>, %arg15: memref<1x32xf32, #tpu.memory_space<vmem>>, %arg16: memref<1x32xf32, #tpu.memory_space<vmem>>, %arg17: memref<32x32xbf16, #tpu.memory_space<vmem>>, %arg18: memref<2x32xf32, #tpu.memory_space<vmem>>, %arg19: memref<1x1xf32, #tpu.memory_space<vmem>>, %arg20: memref<2x2xf32, #tpu.memory_space<vmem>>) attributes {dimension_semantics = [], scalar_prefetch = 0 : i64, scratch_operands = 0 : i64, tpu.core_type = #tpu.core_type<tc>} {
    %c0 = arith.constant 0 : index
    %c0_0 = arith.constant 0 : index
    %0 = vector.load %arg0[%c0, %c0_0] : memref<16x32xf32, #tpu.memory_space<vmem>>, vector<16x32xf32>
    %c0_1 = arith.constant 0 : index
    %c0_2 = arith.constant 0 : index
    %1 = vector.load %arg1[%c0_1, %c0_2] : memref<16x16xf32, #tpu.memory_space<vmem>>, vector<16x16xf32>
    %c0_3 = arith.constant 0 : index
    %c0_4 = arith.constant 0 : index
    %c0_5 = arith.constant 0 : index
    %2 = vector.load %arg3[%c0_3, %c0_4, %c0_5] : memref<2x1x32xf32, #tpu.memory_space<vmem>>, vector<1x1x32xf32>
    %3 = vector.shape_cast %2 : vector<1x1x32xf32> to vector<1x32xf32>
    %c0_6 = arith.constant 0 : index
    %c0_7 = arith.constant 0 : index
    %c0_8 = arith.constant 0 : index
    %4 = vector.load %arg4[%c0_6, %c0_7, %c0_8] : memref<2x1x32xf32, #tpu.memory_space<vmem>>, vector<1x1x32xf32>
    %5 = vector.shape_cast %4 : vector<1x1x32xf32> to vector<1x32xf32>
    %cst = arith.constant dense<0.000000e+00> : vector<16xf32>
    %6 = vector.multi_reduction <add>, %0, %cst [1] : vector<16x32xf32> to vector<16xf32>
    %7 = vector.shape_cast %6 : vector<16xf32> to vector<16x1xf32>
    %cst_9 = arith.constant 3.200000e+01 : f32
    %8 = vector.broadcast %cst_9 : f32 to vector<16x1xf32>
    %9 = arith.divf %7, %8 : vector<16x1xf32>
    %10 = vector.broadcast %9 : vector<16x1xf32> to vector<16x32xf32>
    %11 = arith.subf %0, %10 : vector<16x32xf32>
    %12 = arith.mulf %11, %11 : vector<16x32xf32>
    %cst_10 = arith.constant dense<0.000000e+00> : vector<16xf32>
    %13 = vector.multi_reduction <add>, %12, %cst_10 [1] : vector<16x32xf32> to vector<16xf32>
    %14 = vector.shape_cast %13 : vector<16xf32> to vector<16x1xf32>
    %cst_11 = arith.constant 3.200000e+01 : f32
    %15 = vector.broadcast %cst_11 : f32 to vector<16x1xf32>
    %16 = arith.divf %14, %15 : vector<16x1xf32>
    %17 = vector.broadcast %9 : vector<16x1xf32> to vector<16x32xf32>
    %18 = arith.subf %0, %17 : vector<16x32xf32>
    %cst_12 = arith.constant 9.99999974E-6 : f32
    %19 = vector.broadcast %cst_12 : f32 to vector<16x1xf32>
    %20 = arith.addf %16, %19 : vector<16x1xf32>
    %21 = math.rsqrt %20 : vector<16x1xf32>
    %22 = vector.broadcast %21 : vector<16x1xf32> to vector<16x32xf32>
    %23 = arith.mulf %18, %22 : vector<16x32xf32>
    %24 = vector.broadcast %3 : vector<1x32xf32> to vector<16x32xf32>
    %25 = arith.mulf %23, %24 : vector<16x32xf32>
    %26 = vector.broadcast %5 : vector<1x32xf32> to vector<16x32xf32>
    %27 = arith.addf %25, %26 : vector<16x32xf32>
    %28 = arith.truncf %27 : vector<16x32xf32> to vector<16x32xbf16>
    %c0_13 = arith.constant 0 : index
    %c0_14 = arith.constant 0 : index
    %c0_15 = arith.constant 0 : index
    %29 = vector.load %arg5[%c0_13, %c0_14, %c0_15] : memref<2x32x96xbf16, #tpu.memory_space<vmem>>, vector<1x32x96xbf16>
    %30 = vector.shape_cast %29 : vector<1x32x96xbf16> to vector<32x96xbf16>
    %cst_16 = arith.constant dense<0.000000e+00> : vector<16x96xf32>
    %31 = tpu.matmul %28, %30, %cst_16 {dimension_numbers = #tpu.dot_dimension_numbers<[1], [0], [0], [1], [0, 0, 1, 1], [], []>} : vector<16x32xbf16>, vector<32x96xbf16>, vector<16x96xf32> -> vector<16x96xf32>
    %c0_17 = arith.constant 0 : index
    %c0_18 = arith.constant 0 : index
    %c0_19 = arith.constant 0 : index
    %32 = vector.load %arg6[%c0_17, %c0_18, %c0_19] : memref<2x1x96xf32, #tpu.memory_space<vmem>>, vector<1x1x96xf32>
    %33 = vector.shape_cast %32 : vector<1x1x96xf32> to vector<1x96xf32>
    %34 = vector.broadcast %33 : vector<1x96xf32> to vector<16x96xf32>
    %35 = arith.addf %31, %34 : vector<16x96xf32>
    %36 = vector.extract_strided_slice %35 {offsets = [0, 0], sizes = [16, 32], strides = [1, 1]} : vector<16x96xf32> to vector<16x32xf32>
    %cst_20 = arith.constant 2.500000e-01 : f32
    %37 = vector.broadcast %cst_20 : f32 to vector<16x32xf32>
    %38 = arith.mulf %36, %37 : vector<16x32xf32>
    %39 = vector.extract_strided_slice %35 {offsets = [0, 32], sizes = [16, 32], strides = [1, 1]} : vector<16x96xf32> to vector<16x32xf32>
    %40 = vector.extract_strided_slice %35 {offsets = [0, 64], sizes = [16, 32], strides = [1, 1]} : vector<16x96xf32> to vector<16x32xf32>
    %41 = vector.extract_strided_slice %38 {offsets = [0, 0], sizes = [16, 16], strides = [1, 1]} : vector<16x32xf32> to vector<16x16xf32>
    %42 = vector.extract_strided_slice %38 {offsets = [0, 16], sizes = [16, 16], strides = [1, 1]} : vector<16x32xf32> to vector<16x16xf32>
    %43 = vector.shape_cast %41 : vector<16x16xf32> to vector<1x16x16xf32>
    %44 = vector.shape_cast %42 : vector<16x16xf32> to vector<1x16x16xf32>
    %45 = tpu.concatenate %43, %44 in 0 : vector<1x16x16xf32>, vector<1x16x16xf32> -> vector<2x16x16xf32>
    %46 = vector.extract_strided_slice %39 {offsets = [0, 0], sizes = [16, 16], strides = [1, 1]} : vector<16x32xf32> to vector<16x16xf32>
    %47 = vector.extract_strided_slice %39 {offsets = [0, 16], sizes = [16, 16], strides = [1, 1]} : vector<16x32xf32> to vector<16x16xf32>
    %48 = vector.shape_cast %46 : vector<16x16xf32> to vector<1x16x16xf32>
    %49 = vector.shape_cast %47 : vector<16x16xf32> to vector<1x16x16xf32>
    %50 = tpu.concatenate %48, %49 in 0 : vector<1x16x16xf32>, vector<1x16x16xf32> -> vector<2x16x16xf32>
    %51 = vector.extract_strided_slice %40 {offsets = [0, 0], sizes = [16, 16], strides = [1, 1]} : vector<16x32xf32> to vector<16x16xf32>
    %52 = vector.extract_strided_slice %40 {offsets = [0, 16], sizes = [16, 16], strides = [1, 1]} : vector<16x32xf32> to vector<16x16xf32>
    %53 = vector.shape_cast %51 : vector<16x16xf32> to vector<1x16x16xf32>
    %54 = vector.shape_cast %52 : vector<16x16xf32> to vector<1x16x16xf32>
    %55 = tpu.concatenate %53, %54 in 0 : vector<1x16x16xf32>, vector<1x16x16xf32> -> vector<2x16x16xf32>
    %56 = arith.truncf %45 : vector<2x16x16xf32> to vector<2x16x16xbf16>
    %57 = arith.truncf %50 : vector<2x16x16xf32> to vector<2x16x16xbf16>
    "tpu.trace_start"() <{level = 10 : i32, message = "hmk,hnk->hmn"}> : () -> ()
    %cst_21 = arith.constant dense<0.000000e+00> : vector<2x16x16xf32>
    %58 = tpu.matmul %56, %57, %cst_21 {dimension_numbers = #tpu.dot_dimension_numbers<[2], [2], [1], [1], [0, 0, 0, 1, 1, 1], [0], [0]>} : vector<2x16x16xbf16>, vector<2x16x16xbf16>, vector<2x16x16xf32> -> vector<2x16x16xf32>
    "tpu.trace_stop"() : () -> ()
    %59 = vector.shape_cast %1 : vector<16x16xf32> to vector<1x16x16xf32>
    %60 = vector.broadcast %59 : vector<1x16x16xf32> to vector<2x16x16xf32>
    %61 = arith.addf %58, %60 : vector<2x16x16xf32>
    %cst_22 = arith.constant dense<0xFF800000> : vector<2x16xf32>
    %62 = vector.multi_reduction <maximumf>, %61, %cst_22 [2] : vector<2x16x16xf32> to vector<2x16xf32>
    %63 = vector.shape_cast %62 : vector<2x16xf32> to vector<2x16x1xf32>
    %64 = vector.broadcast %63 : vector<2x16x1xf32> to vector<2x16x16xf32>
    %65 = arith.subf %61, %64 : vector<2x16x16xf32>
    %66 = math.exp %65 : vector<2x16x16xf32>
    %cst_23 = arith.constant dense<0.000000e+00> : vector<2x16xf32>
    %67 = vector.multi_reduction <add>, %66, %cst_23 [2] : vector<2x16x16xf32> to vector<2x16xf32>
    %68 = vector.shape_cast %67 : vector<2x16xf32> to vector<2x16x1xf32>
    %69 = tpu.reciprocal %68 {approx = true} : vector<2x16x1xf32> -> vector<2x16x1xf32>
    %70 = vector.broadcast %69 : vector<2x16x1xf32> to vector<2x16x16xf32>
    %71 = arith.mulf %66, %70 : vector<2x16x16xf32>
    %72 = arith.truncf %71 : vector<2x16x16xf32> to vector<2x16x16xbf16>
    %73 = arith.truncf %55 : vector<2x16x16xf32> to vector<2x16x16xbf16>
    "tpu.trace_start"() <{level = 10 : i32, message = "hmn,hnk->hmk"}> : () -> ()
    %cst_24 = arith.constant dense<0.000000e+00> : vector<2x16x16xf32>
    %74 = tpu.matmul %72, %73, %cst_24 {dimension_numbers = #tpu.dot_dimension_numbers<[2], [1], [1], [2], [0, 0, 0, 1, 1, 2], [0], [0]>} : vector<2x16x16xbf16>, vector<2x16x16xbf16>, vector<2x16x16xf32> -> vector<2x16x16xf32>
    "tpu.trace_stop"() : () -> ()
    %75 = vector.extract_strided_slice %74 {offsets = [0, 0, 0], sizes = [1, 16, 16], strides = [1, 1, 1]} : vector<2x16x16xf32> to vector<1x16x16xf32>
    %76 = vector.shape_cast %75 : vector<1x16x16xf32> to vector<16x16xf32>
    %77 = vector.extract_strided_slice %74 {offsets = [1, 0, 0], sizes = [1, 16, 16], strides = [1, 1, 1]} : vector<2x16x16xf32> to vector<1x16x16xf32>
    %78 = vector.shape_cast %77 : vector<1x16x16xf32> to vector<16x16xf32>
    %79 = tpu.concatenate %76, %78 in 1 : vector<16x16xf32>, vector<16x16xf32> -> vector<16x32xf32>
    %80 = arith.truncf %79 : vector<16x32xf32> to vector<16x32xbf16>
    %c0_25 = arith.constant 0 : index
    %c0_26 = arith.constant 0 : index
    %c0_27 = arith.constant 0 : index
    %81 = vector.load %arg7[%c0_25, %c0_26, %c0_27] : memref<2x32x32xbf16, #tpu.memory_space<vmem>>, vector<1x32x32xbf16>
    %82 = vector.shape_cast %81 : vector<1x32x32xbf16> to vector<32x32xbf16>
    %cst_28 = arith.constant dense<0.000000e+00> : vector<16x32xf32>
    %83 = tpu.matmul %80, %82, %cst_28 {dimension_numbers = #tpu.dot_dimension_numbers<[1], [0], [0], [1], [0, 0, 1, 1], [], []>} : vector<16x32xbf16>, vector<32x32xbf16>, vector<16x32xf32> -> vector<16x32xf32>
    %84 = arith.addf %0, %83 : vector<16x32xf32>
    %c0_29 = arith.constant 0 : index
    %c0_30 = arith.constant 0 : index
    %c0_31 = arith.constant 0 : index
    %85 = vector.load %arg8[%c0_29, %c0_30, %c0_31] : memref<2x1x32xf32, #tpu.memory_space<vmem>>, vector<1x1x32xf32>
    %86 = vector.shape_cast %85 : vector<1x1x32xf32> to vector<1x32xf32>
    %87 = vector.broadcast %86 : vector<1x32xf32> to vector<16x32xf32>
    %88 = arith.addf %84, %87 : vector<16x32xf32>
    %c0_32 = arith.constant 0 : index
    %c0_33 = arith.constant 0 : index
    %c0_34 = arith.constant 0 : index
    %89 = vector.load %arg9[%c0_32, %c0_33, %c0_34] : memref<2x1x32xf32, #tpu.memory_space<vmem>>, vector<1x1x32xf32>
    %90 = vector.shape_cast %89 : vector<1x1x32xf32> to vector<1x32xf32>
    %c0_35 = arith.constant 0 : index
    %c0_36 = arith.constant 0 : index
    %c0_37 = arith.constant 0 : index
    %91 = vector.load %arg10[%c0_35, %c0_36, %c0_37] : memref<2x1x32xf32, #tpu.memory_space<vmem>>, vector<1x1x32xf32>
    %92 = vector.shape_cast %91 : vector<1x1x32xf32> to vector<1x32xf32>
    %cst_38 = arith.constant dense<0.000000e+00> : vector<16xf32>
    %93 = vector.multi_reduction <add>, %88, %cst_38 [1] : vector<16x32xf32> to vector<16xf32>
    %94 = vector.shape_cast %93 : vector<16xf32> to vector<16x1xf32>
    %cst_39 = arith.constant 3.200000e+01 : f32
    %95 = vector.broadcast %cst_39 : f32 to vector<16x1xf32>
    %96 = arith.divf %94, %95 : vector<16x1xf32>
    %97 = vector.broadcast %96 : vector<16x1xf32> to vector<16x32xf32>
    %98 = arith.subf %88, %97 : vector<16x32xf32>
    %99 = arith.mulf %98, %98 : vector<16x32xf32>
    %cst_40 = arith.constant dense<0.000000e+00> : vector<16xf32>
    %100 = vector.multi_reduction <add>, %99, %cst_40 [1] : vector<16x32xf32> to vector<16xf32>
    %101 = vector.shape_cast %100 : vector<16xf32> to vector<16x1xf32>
    %cst_41 = arith.constant 3.200000e+01 : f32
    %102 = vector.broadcast %cst_41 : f32 to vector<16x1xf32>
    %103 = arith.divf %101, %102 : vector<16x1xf32>
    %104 = vector.broadcast %96 : vector<16x1xf32> to vector<16x32xf32>
    %105 = arith.subf %88, %104 : vector<16x32xf32>
    %cst_42 = arith.constant 9.99999974E-6 : f32
    %106 = vector.broadcast %cst_42 : f32 to vector<16x1xf32>
    %107 = arith.addf %103, %106 : vector<16x1xf32>
    %108 = math.rsqrt %107 : vector<16x1xf32>
    %109 = vector.broadcast %108 : vector<16x1xf32> to vector<16x32xf32>
    %110 = arith.mulf %105, %109 : vector<16x32xf32>
    %111 = vector.broadcast %90 : vector<1x32xf32> to vector<16x32xf32>
    %112 = arith.mulf %110, %111 : vector<16x32xf32>
    %113 = vector.broadcast %92 : vector<1x32xf32> to vector<16x32xf32>
    %114 = arith.addf %112, %113 : vector<16x32xf32>
    %115 = arith.truncf %114 : vector<16x32xf32> to vector<16x32xbf16>
    %c0_43 = arith.constant 0 : index
    %c0_44 = arith.constant 0 : index
    %c0_45 = arith.constant 0 : index
    %116 = vector.load %arg11[%c0_43, %c0_44, %c0_45] : memref<2x32x128xbf16, #tpu.memory_space<vmem>>, vector<1x32x128xbf16>
    %117 = vector.shape_cast %116 : vector<1x32x128xbf16> to vector<32x128xbf16>
    %cst_46 = arith.constant dense<0.000000e+00> : vector<16x128xf32>
    %118 = tpu.matmul %115, %117, %cst_46 {dimension_numbers = #tpu.dot_dimension_numbers<[1], [0], [0], [1], [0, 0, 1, 1], [], []>} : vector<16x32xbf16>, vector<32x128xbf16>, vector<16x128xf32> -> vector<16x128xf32>
    %c0_47 = arith.constant 0 : index
    %c0_48 = arith.constant 0 : index
    %c0_49 = arith.constant 0 : index
    %119 = vector.load %arg12[%c0_47, %c0_48, %c0_49] : memref<2x1x128xf32, #tpu.memory_space<vmem>>, vector<1x1x128xf32>
    %120 = vector.shape_cast %119 : vector<1x1x128xf32> to vector<1x128xf32>
    %121 = vector.broadcast %120 : vector<1x128xf32> to vector<16x128xf32>
    %122 = arith.addf %118, %121 : vector<16x128xf32>
    %cst_50 = arith.constant 1.702000e+00 : f32
    %123 = vector.broadcast %cst_50 : f32 to vector<16x128xf32>
    %124 = arith.mulf %123, %122 : vector<16x128xf32>
    %125 = arith.negf %124 : vector<16x128xf32>
    %126 = math.exp %125 : vector<16x128xf32>
    %cst_51 = arith.constant 1.000000e+00 : f32
    %127 = vector.broadcast %cst_51 : f32 to vector<16x128xf32>
    %128 = arith.addf %127, %126 : vector<16x128xf32>
    %129 = arith.divf %127, %128 : vector<16x128xf32>
    %130 = arith.mulf %122, %129 : vector<16x128xf32>
    %131 = arith.truncf %130 : vector<16x128xf32> to vector<16x128xbf16>
    %c0_52 = arith.constant 0 : index
    %c0_53 = arith.constant 0 : index
    %c0_54 = arith.constant 0 : index
    %132 = vector.load %arg13[%c0_52, %c0_53, %c0_54] : memref<2x128x32xbf16, #tpu.memory_space<vmem>>, vector<1x128x32xbf16>
    %133 = vector.shape_cast %132 : vector<1x128x32xbf16> to vector<128x32xbf16>
    %cst_55 = arith.constant dense<0.000000e+00> : vector<16x32xf32>
    %134 = tpu.matmul %131, %133, %cst_55 {dimension_numbers = #tpu.dot_dimension_numbers<[1], [0], [0], [1], [0, 0, 1, 1], [], []>} : vector<16x128xbf16>, vector<128x32xbf16>, vector<16x32xf32> -> vector<16x32xf32>
    %135 = arith.addf %88, %134 : vector<16x32xf32>
    %c0_56 = arith.constant 0 : index
    %c0_57 = arith.constant 0 : index
    %c0_58 = arith.constant 0 : index
    %136 = vector.load %arg14[%c0_56, %c0_57, %c0_58] : memref<2x1x32xf32, #tpu.memory_space<vmem>>, vector<1x1x32xf32>
    %137 = vector.shape_cast %136 : vector<1x1x32xf32> to vector<1x32xf32>
    %138 = vector.broadcast %137 : vector<1x32xf32> to vector<16x32xf32>
    %139 = arith.addf %135, %138 : vector<16x32xf32>
    %c1 = arith.constant 1 : index
    %c0_59 = arith.constant 0 : index
    %c0_60 = arith.constant 0 : index
    %140 = vector.load %arg3[%c1, %c0_59, %c0_60] : memref<2x1x32xf32, #tpu.memory_space<vmem>>, vector<1x1x32xf32>
    %141 = vector.shape_cast %140 : vector<1x1x32xf32> to vector<1x32xf32>
    %c1_61 = arith.constant 1 : index
    %c0_62 = arith.constant 0 : index
    %c0_63 = arith.constant 0 : index
    %142 = vector.load %arg4[%c1_61, %c0_62, %c0_63] : memref<2x1x32xf32, #tpu.memory_space<vmem>>, vector<1x1x32xf32>
    %143 = vector.shape_cast %142 : vector<1x1x32xf32> to vector<1x32xf32>
    %cst_64 = arith.constant dense<0.000000e+00> : vector<16xf32>
    %144 = vector.multi_reduction <add>, %139, %cst_64 [1] : vector<16x32xf32> to vector<16xf32>
    %145 = vector.shape_cast %144 : vector<16xf32> to vector<16x1xf32>
    %cst_65 = arith.constant 3.200000e+01 : f32
    %146 = vector.broadcast %cst_65 : f32 to vector<16x1xf32>
    %147 = arith.divf %145, %146 : vector<16x1xf32>
    %148 = vector.broadcast %147 : vector<16x1xf32> to vector<16x32xf32>
    %149 = arith.subf %139, %148 : vector<16x32xf32>
    %150 = arith.mulf %149, %149 : vector<16x32xf32>
    %cst_66 = arith.constant dense<0.000000e+00> : vector<16xf32>
    %151 = vector.multi_reduction <add>, %150, %cst_66 [1] : vector<16x32xf32> to vector<16xf32>
    %152 = vector.shape_cast %151 : vector<16xf32> to vector<16x1xf32>
    %cst_67 = arith.constant 3.200000e+01 : f32
    %153 = vector.broadcast %cst_67 : f32 to vector<16x1xf32>
    %154 = arith.divf %152, %153 : vector<16x1xf32>
    %155 = vector.broadcast %147 : vector<16x1xf32> to vector<16x32xf32>
    %156 = arith.subf %139, %155 : vector<16x32xf32>
    %cst_68 = arith.constant 9.99999974E-6 : f32
    %157 = vector.broadcast %cst_68 : f32 to vector<16x1xf32>
    %158 = arith.addf %154, %157 : vector<16x1xf32>
    %159 = math.rsqrt %158 : vector<16x1xf32>
    %160 = vector.broadcast %159 : vector<16x1xf32> to vector<16x32xf32>
    %161 = arith.mulf %156, %160 : vector<16x32xf32>
    %162 = vector.broadcast %141 : vector<1x32xf32> to vector<16x32xf32>
    %163 = arith.mulf %161, %162 : vector<16x32xf32>
    %164 = vector.broadcast %143 : vector<1x32xf32> to vector<16x32xf32>
    %165 = arith.addf %163, %164 : vector<16x32xf32>
    %166 = arith.truncf %165 : vector<16x32xf32> to vector<16x32xbf16>
    %c1_69 = arith.constant 1 : index
    %c0_70 = arith.constant 0 : index
    %c0_71 = arith.constant 0 : index
    %167 = vector.load %arg5[%c1_69, %c0_70, %c0_71] : memref<2x32x96xbf16, #tpu.memory_space<vmem>>, vector<1x32x96xbf16>
    %168 = vector.shape_cast %167 : vector<1x32x96xbf16> to vector<32x96xbf16>
    %cst_72 = arith.constant dense<0.000000e+00> : vector<16x96xf32>
    %169 = tpu.matmul %166, %168, %cst_72 {dimension_numbers = #tpu.dot_dimension_numbers<[1], [0], [0], [1], [0, 0, 1, 1], [], []>} : vector<16x32xbf16>, vector<32x96xbf16>, vector<16x96xf32> -> vector<16x96xf32>
    %c1_73 = arith.constant 1 : index
    %c0_74 = arith.constant 0 : index
    %c0_75 = arith.constant 0 : index
    %170 = vector.load %arg6[%c1_73, %c0_74, %c0_75] : memref<2x1x96xf32, #tpu.memory_space<vmem>>, vector<1x1x96xf32>
    %171 = vector.shape_cast %170 : vector<1x1x96xf32> to vector<1x96xf32>
    %172 = vector.broadcast %171 : vector<1x96xf32> to vector<16x96xf32>
    %173 = arith.addf %169, %172 : vector<16x96xf32>
    %174 = vector.extract_strided_slice %173 {offsets = [0, 0], sizes = [16, 32], strides = [1, 1]} : vector<16x96xf32> to vector<16x32xf32>
    %cst_76 = arith.constant 2.500000e-01 : f32
    %175 = vector.broadcast %cst_76 : f32 to vector<16x32xf32>
    %176 = arith.mulf %174, %175 : vector<16x32xf32>
    %177 = vector.extract_strided_slice %173 {offsets = [0, 32], sizes = [16, 32], strides = [1, 1]} : vector<16x96xf32> to vector<16x32xf32>
    %178 = vector.extract_strided_slice %173 {offsets = [0, 64], sizes = [16, 32], strides = [1, 1]} : vector<16x96xf32> to vector<16x32xf32>
    %179 = vector.extract_strided_slice %176 {offsets = [0, 0], sizes = [16, 16], strides = [1, 1]} : vector<16x32xf32> to vector<16x16xf32>
    %180 = vector.extract_strided_slice %176 {offsets = [0, 16], sizes = [16, 16], strides = [1, 1]} : vector<16x32xf32> to vector<16x16xf32>
    %181 = vector.shape_cast %179 : vector<16x16xf32> to vector<1x16x16xf32>
    %182 = vector.shape_cast %180 : vector<16x16xf32> to vector<1x16x16xf32>
    %183 = tpu.concatenate %181, %182 in 0 : vector<1x16x16xf32>, vector<1x16x16xf32> -> vector<2x16x16xf32>
    %184 = vector.extract_strided_slice %177 {offsets = [0, 0], sizes = [16, 16], strides = [1, 1]} : vector<16x32xf32> to vector<16x16xf32>
    %185 = vector.extract_strided_slice %177 {offsets = [0, 16], sizes = [16, 16], strides = [1, 1]} : vector<16x32xf32> to vector<16x16xf32>
    %186 = vector.shape_cast %184 : vector<16x16xf32> to vector<1x16x16xf32>
    %187 = vector.shape_cast %185 : vector<16x16xf32> to vector<1x16x16xf32>
    %188 = tpu.concatenate %186, %187 in 0 : vector<1x16x16xf32>, vector<1x16x16xf32> -> vector<2x16x16xf32>
    %189 = vector.extract_strided_slice %178 {offsets = [0, 0], sizes = [16, 16], strides = [1, 1]} : vector<16x32xf32> to vector<16x16xf32>
    %190 = vector.extract_strided_slice %178 {offsets = [0, 16], sizes = [16, 16], strides = [1, 1]} : vector<16x32xf32> to vector<16x16xf32>
    %191 = vector.shape_cast %189 : vector<16x16xf32> to vector<1x16x16xf32>
    %192 = vector.shape_cast %190 : vector<16x16xf32> to vector<1x16x16xf32>
    %193 = tpu.concatenate %191, %192 in 0 : vector<1x16x16xf32>, vector<1x16x16xf32> -> vector<2x16x16xf32>
    %194 = arith.truncf %183 : vector<2x16x16xf32> to vector<2x16x16xbf16>
    %195 = arith.truncf %188 : vector<2x16x16xf32> to vector<2x16x16xbf16>
    "tpu.trace_start"() <{level = 10 : i32, message = "hmk,hnk->hmn"}> : () -> ()
    %cst_77 = arith.constant dense<0.000000e+00> : vector<2x16x16xf32>
    %196 = tpu.matmul %194, %195, %cst_77 {dimension_numbers = #tpu.dot_dimension_numbers<[2], [2], [1], [1], [0, 0, 0, 1, 1, 1], [0], [0]>} : vector<2x16x16xbf16>, vector<2x16x16xbf16>, vector<2x16x16xf32> -> vector<2x16x16xf32>
    "tpu.trace_stop"() : () -> ()
    %197 = vector.shape_cast %1 : vector<16x16xf32> to vector<1x16x16xf32>
    %198 = vector.broadcast %197 : vector<1x16x16xf32> to vector<2x16x16xf32>
    %199 = arith.addf %196, %198 : vector<2x16x16xf32>
    %cst_78 = arith.constant dense<0xFF800000> : vector<2x16xf32>
    %200 = vector.multi_reduction <maximumf>, %199, %cst_78 [2] : vector<2x16x16xf32> to vector<2x16xf32>
    %201 = vector.shape_cast %200 : vector<2x16xf32> to vector<2x16x1xf32>
    %202 = vector.broadcast %201 : vector<2x16x1xf32> to vector<2x16x16xf32>
    %203 = arith.subf %199, %202 : vector<2x16x16xf32>
    %204 = math.exp %203 : vector<2x16x16xf32>
    %cst_79 = arith.constant dense<0.000000e+00> : vector<2x16xf32>
    %205 = vector.multi_reduction <add>, %204, %cst_79 [2] : vector<2x16x16xf32> to vector<2x16xf32>
    %206 = vector.shape_cast %205 : vector<2x16xf32> to vector<2x16x1xf32>
    %207 = tpu.reciprocal %206 {approx = true} : vector<2x16x1xf32> -> vector<2x16x1xf32>
    %208 = vector.broadcast %207 : vector<2x16x1xf32> to vector<2x16x16xf32>
    %209 = arith.mulf %204, %208 : vector<2x16x16xf32>
    %210 = arith.truncf %209 : vector<2x16x16xf32> to vector<2x16x16xbf16>
    %211 = arith.truncf %193 : vector<2x16x16xf32> to vector<2x16x16xbf16>
    "tpu.trace_start"() <{level = 10 : i32, message = "hmn,hnk->hmk"}> : () -> ()
    %cst_80 = arith.constant dense<0.000000e+00> : vector<2x16x16xf32>
    %212 = tpu.matmul %210, %211, %cst_80 {dimension_numbers = #tpu.dot_dimension_numbers<[2], [1], [1], [2], [0, 0, 0, 1, 1, 2], [0], [0]>} : vector<2x16x16xbf16>, vector<2x16x16xbf16>, vector<2x16x16xf32> -> vector<2x16x16xf32>
    "tpu.trace_stop"() : () -> ()
    %213 = vector.extract_strided_slice %212 {offsets = [0, 0, 0], sizes = [1, 16, 16], strides = [1, 1, 1]} : vector<2x16x16xf32> to vector<1x16x16xf32>
    %214 = vector.shape_cast %213 : vector<1x16x16xf32> to vector<16x16xf32>
    %215 = vector.extract_strided_slice %212 {offsets = [1, 0, 0], sizes = [1, 16, 16], strides = [1, 1, 1]} : vector<2x16x16xf32> to vector<1x16x16xf32>
    %216 = vector.shape_cast %215 : vector<1x16x16xf32> to vector<16x16xf32>
    %217 = tpu.concatenate %214, %216 in 1 : vector<16x16xf32>, vector<16x16xf32> -> vector<16x32xf32>
    %218 = arith.truncf %217 : vector<16x32xf32> to vector<16x32xbf16>
    %c1_81 = arith.constant 1 : index
    %c0_82 = arith.constant 0 : index
    %c0_83 = arith.constant 0 : index
    %219 = vector.load %arg7[%c1_81, %c0_82, %c0_83] : memref<2x32x32xbf16, #tpu.memory_space<vmem>>, vector<1x32x32xbf16>
    %220 = vector.shape_cast %219 : vector<1x32x32xbf16> to vector<32x32xbf16>
    %cst_84 = arith.constant dense<0.000000e+00> : vector<16x32xf32>
    %221 = tpu.matmul %218, %220, %cst_84 {dimension_numbers = #tpu.dot_dimension_numbers<[1], [0], [0], [1], [0, 0, 1, 1], [], []>} : vector<16x32xbf16>, vector<32x32xbf16>, vector<16x32xf32> -> vector<16x32xf32>
    %222 = arith.addf %139, %221 : vector<16x32xf32>
    %c1_85 = arith.constant 1 : index
    %c0_86 = arith.constant 0 : index
    %c0_87 = arith.constant 0 : index
    %223 = vector.load %arg8[%c1_85, %c0_86, %c0_87] : memref<2x1x32xf32, #tpu.memory_space<vmem>>, vector<1x1x32xf32>
    %224 = vector.shape_cast %223 : vector<1x1x32xf32> to vector<1x32xf32>
    %225 = vector.broadcast %224 : vector<1x32xf32> to vector<16x32xf32>
    %226 = arith.addf %222, %225 : vector<16x32xf32>
    %c1_88 = arith.constant 1 : index
    %c0_89 = arith.constant 0 : index
    %c0_90 = arith.constant 0 : index
    %227 = vector.load %arg9[%c1_88, %c0_89, %c0_90] : memref<2x1x32xf32, #tpu.memory_space<vmem>>, vector<1x1x32xf32>
    %228 = vector.shape_cast %227 : vector<1x1x32xf32> to vector<1x32xf32>
    %c1_91 = arith.constant 1 : index
    %c0_92 = arith.constant 0 : index
    %c0_93 = arith.constant 0 : index
    %229 = vector.load %arg10[%c1_91, %c0_92, %c0_93] : memref<2x1x32xf32, #tpu.memory_space<vmem>>, vector<1x1x32xf32>
    %230 = vector.shape_cast %229 : vector<1x1x32xf32> to vector<1x32xf32>
    %cst_94 = arith.constant dense<0.000000e+00> : vector<16xf32>
    %231 = vector.multi_reduction <add>, %226, %cst_94 [1] : vector<16x32xf32> to vector<16xf32>
    %232 = vector.shape_cast %231 : vector<16xf32> to vector<16x1xf32>
    %cst_95 = arith.constant 3.200000e+01 : f32
    %233 = vector.broadcast %cst_95 : f32 to vector<16x1xf32>
    %234 = arith.divf %232, %233 : vector<16x1xf32>
    %235 = vector.broadcast %234 : vector<16x1xf32> to vector<16x32xf32>
    %236 = arith.subf %226, %235 : vector<16x32xf32>
    %237 = arith.mulf %236, %236 : vector<16x32xf32>
    %cst_96 = arith.constant dense<0.000000e+00> : vector<16xf32>
    %238 = vector.multi_reduction <add>, %237, %cst_96 [1] : vector<16x32xf32> to vector<16xf32>
    %239 = vector.shape_cast %238 : vector<16xf32> to vector<16x1xf32>
    %cst_97 = arith.constant 3.200000e+01 : f32
    %240 = vector.broadcast %cst_97 : f32 to vector<16x1xf32>
    %241 = arith.divf %239, %240 : vector<16x1xf32>
    %242 = vector.broadcast %234 : vector<16x1xf32> to vector<16x32xf32>
    %243 = arith.subf %226, %242 : vector<16x32xf32>
    %cst_98 = arith.constant 9.99999974E-6 : f32
    %244 = vector.broadcast %cst_98 : f32 to vector<16x1xf32>
    %245 = arith.addf %241, %244 : vector<16x1xf32>
    %246 = math.rsqrt %245 : vector<16x1xf32>
    %247 = vector.broadcast %246 : vector<16x1xf32> to vector<16x32xf32>
    %248 = arith.mulf %243, %247 : vector<16x32xf32>
    %249 = vector.broadcast %228 : vector<1x32xf32> to vector<16x32xf32>
    %250 = arith.mulf %248, %249 : vector<16x32xf32>
    %251 = vector.broadcast %230 : vector<1x32xf32> to vector<16x32xf32>
    %252 = arith.addf %250, %251 : vector<16x32xf32>
    %253 = arith.truncf %252 : vector<16x32xf32> to vector<16x32xbf16>
    %c1_99 = arith.constant 1 : index
    %c0_100 = arith.constant 0 : index
    %c0_101 = arith.constant 0 : index
    %254 = vector.load %arg11[%c1_99, %c0_100, %c0_101] : memref<2x32x128xbf16, #tpu.memory_space<vmem>>, vector<1x32x128xbf16>
    %255 = vector.shape_cast %254 : vector<1x32x128xbf16> to vector<32x128xbf16>
    %cst_102 = arith.constant dense<0.000000e+00> : vector<16x128xf32>
    %256 = tpu.matmul %253, %255, %cst_102 {dimension_numbers = #tpu.dot_dimension_numbers<[1], [0], [0], [1], [0, 0, 1, 1], [], []>} : vector<16x32xbf16>, vector<32x128xbf16>, vector<16x128xf32> -> vector<16x128xf32>
    %c1_103 = arith.constant 1 : index
    %c0_104 = arith.constant 0 : index
    %c0_105 = arith.constant 0 : index
    %257 = vector.load %arg12[%c1_103, %c0_104, %c0_105] : memref<2x1x128xf32, #tpu.memory_space<vmem>>, vector<1x1x128xf32>
    %258 = vector.shape_cast %257 : vector<1x1x128xf32> to vector<1x128xf32>
    %259 = vector.broadcast %258 : vector<1x128xf32> to vector<16x128xf32>
    %260 = arith.addf %256, %259 : vector<16x128xf32>
    %cst_106 = arith.constant 1.702000e+00 : f32
    %261 = vector.broadcast %cst_106 : f32 to vector<16x128xf32>
    %262 = arith.mulf %261, %260 : vector<16x128xf32>
    %263 = arith.negf %262 : vector<16x128xf32>
    %264 = math.exp %263 : vector<16x128xf32>
    %cst_107 = arith.constant 1.000000e+00 : f32
    %265 = vector.broadcast %cst_107 : f32 to vector<16x128xf32>
    %266 = arith.addf %265, %264 : vector<16x128xf32>
    %267 = arith.divf %265, %266 : vector<16x128xf32>
    %268 = arith.mulf %260, %267 : vector<16x128xf32>
    %269 = arith.truncf %268 : vector<16x128xf32> to vector<16x128xbf16>
    %c1_108 = arith.constant 1 : index
    %c0_109 = arith.constant 0 : index
    %c0_110 = arith.constant 0 : index
    %270 = vector.load %arg13[%c1_108, %c0_109, %c0_110] : memref<2x128x32xbf16, #tpu.memory_space<vmem>>, vector<1x128x32xbf16>
    %271 = vector.shape_cast %270 : vector<1x128x32xbf16> to vector<128x32xbf16>
    %cst_111 = arith.constant dense<0.000000e+00> : vector<16x32xf32>
    %272 = tpu.matmul %269, %271, %cst_111 {dimension_numbers = #tpu.dot_dimension_numbers<[1], [0], [0], [1], [0, 0, 1, 1], [], []>} : vector<16x128xbf16>, vector<128x32xbf16>, vector<16x32xf32> -> vector<16x32xf32>
    %273 = arith.addf %226, %272 : vector<16x32xf32>
    %c1_112 = arith.constant 1 : index
    %c0_113 = arith.constant 0 : index
    %c0_114 = arith.constant 0 : index
    %274 = vector.load %arg14[%c1_112, %c0_113, %c0_114] : memref<2x1x32xf32, #tpu.memory_space<vmem>>, vector<1x1x32xf32>
    %275 = vector.shape_cast %274 : vector<1x1x32xf32> to vector<1x32xf32>
    %276 = vector.broadcast %275 : vector<1x32xf32> to vector<16x32xf32>
    %277 = arith.addf %273, %276 : vector<16x32xf32>
    %c0_115 = arith.constant 0 : index
    %c0_116 = arith.constant 0 : index
    %278 = vector.load %arg2[%c0_115, %c0_116] : memref<2x16xf32, #tpu.memory_space<vmem>>, vector<2x16xf32>
    %279 = vector.shape_cast %278 : vector<2x16xf32> to vector<2x16x1xf32>
    %280 = vector.shape_cast %277 : vector<16x32xf32> to vector<1x16x32xf32>
    %281 = vector.broadcast %279 : vector<2x16x1xf32> to vector<2x16x32xf32>
    %282 = vector.broadcast %280 : vector<1x16x32xf32> to vector<2x16x32xf32>
    %283 = arith.mulf %281, %282 : vector<2x16x32xf32>
    %cst_117 = arith.constant dense<0.000000e+00> : vector<2x32xf32>
    %284 = vector.multi_reduction <add>, %283, %cst_117 [1] : vector<2x16x32xf32> to vector<2x32xf32>
    %c0_118 = arith.constant 0 : index
    %c0_119 = arith.constant 0 : index
    %285 = vector.load %arg15[%c0_118, %c0_119] : memref<1x32xf32, #tpu.memory_space<vmem>>, vector<1x32xf32>
    %c0_120 = arith.constant 0 : index
    %c0_121 = arith.constant 0 : index
    %286 = vector.load %arg16[%c0_120, %c0_121] : memref<1x32xf32, #tpu.memory_space<vmem>>, vector<1x32xf32>
    %cst_122 = arith.constant dense<0.000000e+00> : vector<2xf32>
    %287 = vector.multi_reduction <add>, %284, %cst_122 [1] : vector<2x32xf32> to vector<2xf32>
    %288 = vector.shape_cast %287 : vector<2xf32> to vector<2x1xf32>
    %cst_123 = arith.constant 3.200000e+01 : f32
    %289 = vector.broadcast %cst_123 : f32 to vector<2x1xf32>
    %290 = arith.divf %288, %289 : vector<2x1xf32>
    %291 = vector.broadcast %290 : vector<2x1xf32> to vector<2x32xf32>
    %292 = arith.subf %284, %291 : vector<2x32xf32>
    %293 = arith.mulf %292, %292 : vector<2x32xf32>
    %cst_124 = arith.constant dense<0.000000e+00> : vector<2xf32>
    %294 = vector.multi_reduction <add>, %293, %cst_124 [1] : vector<2x32xf32> to vector<2xf32>
    %295 = vector.shape_cast %294 : vector<2xf32> to vector<2x1xf32>
    %cst_125 = arith.constant 3.200000e+01 : f32
    %296 = vector.broadcast %cst_125 : f32 to vector<2x1xf32>
    %297 = arith.divf %295, %296 : vector<2x1xf32>
    %298 = vector.broadcast %290 : vector<2x1xf32> to vector<2x32xf32>
    %299 = arith.subf %284, %298 : vector<2x32xf32>
    %cst_126 = arith.constant 9.99999974E-6 : f32
    %300 = vector.broadcast %cst_126 : f32 to vector<2x1xf32>
    %301 = arith.addf %297, %300 : vector<2x1xf32>
    %302 = math.rsqrt %301 : vector<2x1xf32>
    %303 = vector.broadcast %302 : vector<2x1xf32> to vector<2x32xf32>
    %304 = arith.mulf %299, %303 : vector<2x32xf32>
    %305 = vector.broadcast %285 : vector<1x32xf32> to vector<2x32xf32>
    %306 = arith.mulf %304, %305 : vector<2x32xf32>
    %307 = vector.broadcast %286 : vector<1x32xf32> to vector<2x32xf32>
    %308 = arith.addf %306, %307 : vector<2x32xf32>
    %309 = arith.truncf %308 : vector<2x32xf32> to vector<2x32xbf16>
    %c0_127 = arith.constant 0 : index
    %c0_128 = arith.constant 0 : index
    %310 = vector.load %arg17[%c0_127, %c0_128] : memref<32x32xbf16, #tpu.memory_space<vmem>>, vector<32x32xbf16>
    %cst_129 = arith.constant dense<0.000000e+00> : vector<2x32xf32>
    %311 = tpu.matmul %309, %310, %cst_129 {dimension_numbers = #tpu.dot_dimension_numbers<[1], [0], [0], [1], [0, 0, 1, 1], [], []>} : vector<2x32xbf16>, vector<32x32xbf16>, vector<2x32xf32> -> vector<2x32xf32>
    %c0_130 = arith.constant 0 : index
    %c0_131 = arith.constant 0 : index
    %312 = vector.load %arg18[%c0_130, %c0_131] : memref<2x32xf32, #tpu.memory_space<vmem>>, vector<2x32xf32>
    %313 = arith.mulf %312, %312 : vector<2x32xf32>
    %cst_132 = arith.constant dense<0.000000e+00> : vector<2xf32>
    %314 = vector.multi_reduction <add>, %313, %cst_132 [1] : vector<2x32xf32> to vector<2xf32>
    %315 = vector.shape_cast %314 : vector<2xf32> to vector<2x1xf32>
    %cst_133 = arith.constant 9.99999996E-13 : f32
    %316 = vector.broadcast %cst_133 : f32 to vector<2x1xf32>
    %317 = arith.addf %315, %316 : vector<2x1xf32>
    %318 = math.rsqrt %317 : vector<2x1xf32>
    %319 = vector.broadcast %318 : vector<2x1xf32> to vector<2x32xf32>
    %320 = arith.mulf %312, %319 : vector<2x32xf32>
    %321 = arith.mulf %311, %311 : vector<2x32xf32>
    %cst_134 = arith.constant dense<0.000000e+00> : vector<2xf32>
    %322 = vector.multi_reduction <add>, %321, %cst_134 [1] : vector<2x32xf32> to vector<2xf32>
    %323 = vector.shape_cast %322 : vector<2xf32> to vector<2x1xf32>
    %cst_135 = arith.constant 9.99999996E-13 : f32
    %324 = vector.broadcast %cst_135 : f32 to vector<2x1xf32>
    %325 = arith.addf %323, %324 : vector<2x1xf32>
    %326 = math.rsqrt %325 : vector<2x1xf32>
    %327 = vector.broadcast %326 : vector<2x1xf32> to vector<2x32xf32>
    %328 = arith.mulf %311, %327 : vector<2x32xf32>
    %c0_136 = arith.constant 0 : index
    %c0_137 = arith.constant 0 : index
    %329 = vector.load %arg19[%c0_136, %c0_137] : memref<1x1xf32, #tpu.memory_space<vmem>>, vector<1x1xf32>
    %330 = vector.extract %329[0, 0] : f32 from vector<1x1xf32>
    %331 = math.exp %330 : f32
    %cst_138 = arith.constant dense<0.000000e+00> : vector<2x2xf32>
    %332 = tpu.matmul %320, %328, %cst_138 {dimension_numbers = #tpu.dot_dimension_numbers<[1], [1], [0], [0], [0, 0, 1, 0], [], []>} : vector<2x32xf32>, vector<2x32xf32>, vector<2x2xf32> -> vector<2x2xf32>
    %333 = vector.broadcast %331 : f32 to vector<2x2xf32>
    %334 = arith.mulf %333, %332 : vector<2x2xf32>
    %c0_139 = arith.constant 0 : index
    %c0_140 = arith.constant 0 : index
    %335 = vector.load %arg20[%c0_139, %c0_140] : memref<2x2xf32, #tpu.memory_space<vmem>>, vector<2x2xf32>
    tpu.vector_store %arg20[%c0_139, %c0_140], %334 {strides = array<i32>} : memref<2x2xf32, #tpu.memory_space<vmem>>, vector<2x2xf32>,
    return
  }
}

</mosaic_0001>

<bundles_post_ra>
// kernel: clip_forward.3
= control target key start
LH: loop header
LB: loop body
LE: loop exit
PB: predicated region body
PF: predicated region fallthrough
CT: control target
= control target key end

     0   :  { %vm74_vm0 = vcmask 261120   ;;  %v2213_v14 = vmov 0.0   ;;  %vm2214_vm1 = vmmov 0   ;;  %s2216_s25 = smov 96   ;;  %vm211_vm2 = vcmask 130048   ;;  %s2717_s0 = inlined_call_operand.vmem [shape: f32[16,32], index: 0, kind: input, shape index: {}]   ;;  %s2718_s5 = inlined_call_operand.vmem [shape: bf16[2,32,96], index: 5, kind: input, shape index: {}]   ;;  %s2719_s3 = inlined_call_operand.vmem [shape: f32[2,1,32], index: 3, kind: input, shape index: {}]   ;;  %s2720_s4 = inlined_call_operand.vmem [shape: f32[2,1,32], index: 4, kind: input, shape index: {}]   ;;  %s2721_s6 = inlined_call_operand.vmem [shape: f32[2,1,96], index: 6, kind: input, shape index: {}]   ;;  %s2722_s1 = inlined_call_operand.vmem [shape: f32[16,16], index: 1, kind: input, shape index: {}]   ;;  %s2723_s7 = inlined_call_operand.vmem [shape: bf16[2,32,32], index: 7, kind: input, shape index: {}]   ;;  %s2724_s8 = inlined_call_operand.vmem [shape: f32[2,1,32], index: 8, kind: input, shape index: {}]   ;;  %s2725_s11 = inlined_call_operand.vmem [shape: bf16[2,32,128], index: 11, kind: input, shape index: {}]   ;;  %s2726_s9 = inlined_call_operand.vmem [shape: f32[2,1,32], index: 9, kind: input, shape index: {}]   ;;  %s2727_s10 = inlined_call_operand.vmem [shape: f32[2,1,32], index: 10, kind: input, shape index: {}]   ;;  %s2728_s13 = inlined_call_operand.vmem [shape: bf16[2,128,32], index: 13, kind: input, shape index: {}]   ;;  %s2729_s12 = inlined_call_operand.vmem [shape: f32[2,1,128], index: 12, kind: input, shape index: {}]   ;;  %s2730_s14 = inlined_call_operand.vmem [shape: f32[2,1,32], index: 14, kind: input, shape index: {}]   ;;  %s2731_s2 = inlined_call_operand.vmem [shape: f32[2,16], index: 2, kind: input, shape index: {}]   ;;  %s2732_s17 = inlined_call_operand.vmem [shape: bf16[32,32], index: 17, kind: input, shape index: {}]   ;;  %s2733_s15 = inlined_call_operand.vmem [shape: f32[1,32], index: 15, kind: input, shape index: {}]   ;;  %s2734_s16 = inlined_call_operand.vmem [shape: f32[1,32], index: 16, kind: input, shape index: {}]   ;;  %s2735_s18 = inlined_call_operand.vmem [shape: f32[2,32], index: 18, kind: input, shape index: {}]   ;;  %s2736_s19 = inlined_call_operand.<no memory space> [shape: f32[1,1], index: 19, kind: input, shape index: {}]   ;;  %s2737_s20 = inlined_call_operand.vmem [shape: f32[2,2], index: 20, kind: output, shape index: {}]  }
   0x1   :  { %2743 = sst [smem:[#allocation3_spill]] %s2717_s0  ;;  %1922 = vmatprep.subr.bf16.mxu1 %v2213_v14  ;;  %1926 = vmatprep.mubr.msk.bf16.mxu1 %vm2214_vm1, %v2213_v14  ;;  %v2391_v59 = vld [vmem:[%s2722_s1] sm:$0xff]  ;;  %v2397_v63 = vld [vmem:[%s2722_s1 + $0x8] sm:$0xff]  ;;  %s2217_s1 = smov 64   ;;  %vm1538_vm3 = vcmask 1041409   ;;  %vm1541_vm4 = vcmask 254976  }
   0x2   :  { %2744 = sst [smem:[#allocation4_spill]] %s2718_s5  ;;  %1936 = vmatprep.subr.bf16.mxu0 %v2213_v14  ;;  %1938 = vmatprep.mubr.msk.bf16.mxu0 %vm2214_vm1, %v2213_v14  ;;  %vm1754_vm5 = vcmask 9216  }
   0x3   :  { %2745 = sst [smem:[#allocation5_spill]] %s2719_s3  ;;  %s2215_s3 = smov 112  }
   0x4   :  { %2746 = sst [smem:[#allocation6_spill]] %s2720_s4 }
   0x5   :  { %2747 = sst [smem:[#allocation7_spill]] %s2721_s6 }
   0x6   :  { %s2748_s23 = sld [smem:[#allocation3_spill]] }
   0x7   :  { %s2749_s26 = sld [smem:[#allocation4_spill]] }
   0x8   :  { %s2750_s30 = sld [smem:[#allocation5_spill]] }
   0x9   :  { %s2751_s5 = sld [smem:[#allocation6_spill]] }
   0xa   :  { %s2752_s24 = sld [smem:[#allocation7_spill]] }
   0xc   :  { %v2327_v0 = vld [vmem:[%s2748_s23] sm:$0xff]  ;;  %v2332_v1 = vld [vmem:[%s2748_s23 + $0x8] sm:$0xff]  ;;  %s2218_s23 = smov 16  }
   0xd   :  { %v75_v2 = vsel %vm74_vm0, %v2327_v0, 0.0  ;;  %v78_v3 = vsel %vm74_vm0, %v2332_v1, 0.0  ;;  %v2111_v15 = vld [vmem:[%s2749_s26 + $0x8] sm:$0xff]   ;;  %v2112_v16 = vld [vmem:[%s2749_s26] sm:$0xff]  }
   0xe   :  { %76 = vadd.xlane.f32.xlu0 %v75_v2  ;;  %1923 = vmatpush3.bf16.msra.mxu1 %v2111_v15  ;;  %v1760_v25 = vld [vmem:[%s2750_s30] ss:$0 sm:$0xff] }
   0xf   :  { %1924 = vmatprep.subr.bf16.mxu1 %v2213_v14  ;;  %v1761_v29 = vld [vmem:[%s2751_s5] ss:$0 sm:$0xff] }
  0x10   :  { %v1762_v34 = vld [vmem:[%s2752_s24] ss:$0 sm:$0xff] }
  0x12   :  { %79 = vadd.xlane.f32.xlu0 %v78_v3  ;;  %1925 = vmatpush3.bf16.msra.mxu1 %v2112_v16 }
  0x13   :  { %1930 = vmatprep.subr.bf16.mxu1 %v2213_v14 }
  0x97   :  { %v77_v4 = vpop.xlane.xlu0 %76 }
  0x98   :  { %v82_v5 = vmul.f32 0.03125, %v77_v4 }
  0x9a   :  { %v84_v6 = vsub.f32 %v2327_v0, %v82_v5 }
  0x9b   :  { %v80_v7 = vpop.xlane.xlu0 %79 }
  0x9c   :  { %v83_v8 = vmul.f32 0.03125, %v80_v7  ;;  %v86_v9 = vmul.f32 %v84_v6, %v84_v6 }
  0x9e   :  { %v85_v10 = vsub.f32 %v2332_v1, %v83_v8  ;;  %v88_v11 = vsel %vm74_vm0, %v86_v9, 0.0 }
  0x9f   :  { %89 = vadd.xlane.f32.xlu1 %v88_v11 }
  0xa0   :  { %v87_v12 = vmul.f32 %v85_v10, %v85_v10 }
  0xa2   :  { %v91_v13 = vsel %vm74_vm0, %v87_v12, 0.0 }
  0xa3   :  { %92 = vadd.xlane.f32.xlu1 %v91_v13 }
 0x128   :  { %v90_v17 = vpop.xlane.xlu1 %89 }
 0x129   :  { %v94_v18 = vmul.f32 0.03125, %v90_v17 }
 0x12b   :  { %v96_v19 = vadd.f32 1e-05, %v94_v18 }
 0x12c   :  { %v93_v20 = vpop.xlane.xlu1 %92 }
 0x12d   :  { %2141 = vrsqrt.f32 %v96_v19  ;;  %v95_v21 = vmul.f32 0.03125, %v93_v20 }
 0x12f   :  { %v97_v22 = vadd.f32 1e-05, %v95_v21 }
 0x131   :  { %2143 = vrsqrt.f32 %v97_v22 }
 0x13a   :  { %v2142_v23 = vpop.eup %2141 }
 0x13b   :  { %v100_v24 = vmul.f32 %v2142_v23, %v84_v6 }
 0x13d   :  { %v108_v28 = vmul.f32 %v1760_v25, %v100_v24 }
 0x13e   :  { %v2144_v26 = vpop.eup %2143 }
 0x13f   :  { %v101_v27 = vmul.f32 %v2144_v26, %v85_v10  ;;  %v116_v31 = vadd.f32 %v1761_v29, %v108_v28 }
 0x141   :  { %v109_v30 = vmul.f32 %v1760_v25, %v101_v27 }
 0x143   :  { %v117_v32 = vadd.f32 %v1761_v29, %v109_v30 }
 0x145   :  { %v118_v33 = vpack.c.bf16 %v117_v32, %v116_v31 }
 0x147   :  { %1927 = vmatmul.mubr.msk.bf16.vlgmr.msra.gmra.mxu1 %vm74_vm0, %v118_v33 }
 0x148   :  { %1932 = vmatprep.mubr.msk.bf16.mxu1 %vm2214_vm1, %v2213_v14 }
 0x207   :  { %v179_v35 = vpop.f32.mrf.mxu1 }
 0x208   :  { %v180_v37 = vadd.f32 %v1762_v34, %v179_v35 }
 0x209   :  { %v1928_v36 = vpop.f32.mrf.mxu1 }
 0x20a   :  { %v186_v41 = vmul.f32 0.25, %v180_v37 }
 0x20b   :  { %v182_v38 = vpop.f32.mrf.mxu1 }
 0x20c   :  { %v183_v39 = vadd.f32 %v1762_v34, %v182_v38 }
 0x20d   :  { %v1929_v40 = vpop.f32.mrf.mxu1 }
 0x20e   :  { %v187_v42 = vmul.f32 0.25, %v183_v39  ;;  %v2081_v43 = vpack.i.bf16 %v183_v39, %v180_v37  ;;  %v2368_v44 = vpack.c.bf16 %v183_v39, %v180_v37 }
 0x210   :  { %v204_v45 = vpack.c.bf16 %v187_v42, %v186_v41  ;;  %2082 = vrot.lane.b32.xlu0 %v2081_v43, %s2215_s3  ;;  %v2086_v46 = vpack.i.bf16 %v187_v42, %v186_v41 }
 0x282   :  { %v2083_v47 = vpop.permute.xlu0 %2082 }
 0x283   :  { %v2085_v48 = vunpack.i.h.bf16 %v2083_v47  ;;  %v2084_v49 = vunpack.i.l.bf16 %v2083_v47 }
 0x285   :  { %v2371_v50 = vpack.c.bf16 %v2085_v48, %v2084_v49 }
 0x287   :  { %260 = vrot.lane.b32.xlu1 %v2371_v50, %s2216_s25 }
 0x28b   :  { %2087 = vrot.lane.b32.xlu1 %v2086_v46, %s2215_s3 }
 0x28f   :  { %209 = vrot.lane.b32.xlu1 %v2368_v44, %s2216_s25 }
 0x2f9   :  { %v261_v51 = vpop.permute.xlu1 %260 }
 0x2fa   :  { %v266_v52 = vsel %vm211_vm2, %v261_v51, 0 }
 0x2fb   :  { %1937 = vmatpush3.bf16.xpose.msra.mxu0 %v266_v52  ;;  %v2113_v52 = vld [vmem:[%s2723_s7 + $0x8] sm:$0xff]  }
 0x2fc   :  { %1948 = vmatprep.subr.bf16.mxu0 %v2213_v14 }
 0x2fd   :  { %v2088_v53 = vpop.permute.xlu1 %2087 }
 0x2fe   :  { %v2090_v54 = vunpack.i.h.bf16 %v2088_v53  ;;  %v2089_v55 = vunpack.i.l.bf16 %v2088_v53  ;;  %v2114_v53 = vld [vmem:[%s2723_s7] sm:$0xff]  }
 0x300   :  { %v205_v56 = vpack.c.bf16 %v2090_v54, %v2089_v55 }
 0x301   :  { %v210_v57 = vpop.permute.xlu1 %209 }
 0x302   :  { %v216_v58 = vsel %vm211_vm2, %v210_v57, 0  ;;  %1939 = vmatmul.mubr.msk.bf16.vlgmr.msra.gmra.mxu0 %vm211_vm2, %v205_v56 }
 0x303   :  { %1931 = vmatpush3.bf16.xpose.msra.mxu1 %v216_v58  ;;  %1950 = vmatprep.mubr.msk.bf16.mxu0 %vm2214_vm1, %v2213_v14 }
 0x304   :  { %1942 = vmatprep.subr.bf16.mxu1 %v2213_v14 }
 0x30a   :  { %1933 = vmatmul.mubr.msk.bf16.vlgmr.msra.gmra.mxu1 %vm211_vm2, %v204_v45 }
 0x30b   :  { %1944 = vmatprep.mubr.msk.bf16.mxu1 %vm2214_vm1, %v2213_v14 }
 0x3c2   :  { %v302_v60 = vpop.f32.mrf.mxu0 }
 0x3c3   :  { %v303_v61 = vadd.f32 %v302_v60, %v2391_v59 }
 0x3c4   :  { %v1940_v62 = vpop.f32.mrf.mxu0 }
 0x3c5   :  { %v315_v2 = vsel %vm211_vm2, %v303_v61, -inf }
 0x3c6   :  { %316 = vmax.xlane.f32.xlu0 %v315_v2  ;;  %v305_v3 = vpop.f32.mrf.mxu0 }
 0x3c7   :  { %v306_v4 = vadd.f32 %v305_v3, %v2397_v63 }
 0x3c8   :  { %v1941_v5 = vpop.f32.mrf.mxu0 }
 0x3c9   :  { %v318_v6 = vsel %vm211_vm2, %v306_v4, -inf }
 0x3ca   :  { %319 = vmax.xlane.f32.xlu1 %v318_v6  ;;  %v252_v7 = vpop.f32.mrf.mxu1 }
 0x3cb   :  { %v253_v8 = vadd.f32 %v252_v7, %v2391_v59 }
 0x3cc   :  { %v1934_v9 = vpop.f32.mrf.mxu1 }
 0x3cd   :  { %v309_v10 = vsel %vm211_vm2, %v253_v8, -inf }
 0x3ce   :  { %310 = vmax.xlane.f32.xlu0 %v309_v10  ;;  %v255_v11 = vpop.f32.mrf.mxu1  ;;  %v1773_v10 = vld [vmem:[%s2724_s8] ss:$0 sm:$0xff] }
 0x3cf   :  { %v256_v12 = vadd.f32 %v255_v11, %v2397_v63 }
 0x3d0   :  { %v1935_v13 = vpop.f32.mrf.mxu1 }
 0x3d1   :  { %v312_v15 = vsel %vm211_vm2, %v256_v12, -inf }
 0x3d2   :  { %313 = vmax.xlane.f32.xlu0 %v312_v15 }
 0x44f   :  { %v317_v16 = vpop.xlane.xlu0 %316 }
 0x450   :  { %v323_v17 = vsub.f32 %v303_v61, %v317_v16 }
 0x452   :  { %v329_v18 = vmul.f32 1.442695, %v323_v17 }
 0x453   :  { %v320_v19 = vpop.xlane.xlu1 %319 }
 0x454   :  { %2145 = vpow2.f32 %v329_v18  ;;  %v324_v20 = vsub.f32 %v306_v4, %v320_v19 }
 0x456   :  { %v331_v21 = vmul.f32 1.442695, %v324_v20 }
 0x457   :  { %v311_v22 = vpop.xlane.xlu0 %310 }
 0x458   :  { %2147 = vpow2.f32 %v331_v21  ;;  %v321_v23 = vsub.f32 %v253_v8, %v311_v22 }
 0x45a   :  { %v325_v24 = vmul.f32 1.442695, %v321_v23 }
 0x45b   :  { %v314_v25 = vpop.xlane.xlu0 %313 }
 0x45c   :  { %2149 = vpow2.f32 %v325_v24  ;;  %v322_v26 = vsub.f32 %v256_v12, %v314_v25 }
 0x45e   :  { %v327_v27 = vmul.f32 1.442695, %v322_v26 }
 0x460   :  { %2151 = vpow2.f32 %v327_v27 }
 0x461   :  { %v2146_v28 = vpop.eup %2145 }
 0x462   :  { %v339_v29 = vsel %vm211_vm2, %v2146_v28, 0.0 }
 0x463   :  { %340 = vadd.xlane.f32.xlu0 %v339_v29  ;;  %v2115_v29 = vld [vmem:[%s2725_s11 + $0x8] sm:$0xff]  }
 0x465   :  { %v2148_v30 = vpop.eup %2147 }
 0x466   :  { %v342_v31 = vsel %vm211_vm2, %v2148_v30, 0.0 }
 0x467   :  { %343 = vadd.xlane.f32.xlu1 %v342_v31 }
 0x469   :  { %v2150_v32 = vpop.eup %2149 }
 0x46a   :  { %v333_v33 = vsel %vm211_vm2, %v2150_v32, 0.0 }
 0x46b   :  { %334 = vadd.xlane.f32.xlu1 %v333_v33 }
 0x46d   :  { %v2152_v34 = vpop.eup %2151 }
 0x46e   :  { %v336_v35 = vsel %vm211_vm2, %v2152_v34, 0.0 }
 0x46f   :  { %337 = vadd.xlane.f32.xlu1 %v336_v35 }
 0x479   :  { %402 = vrot.lane.b32.xlu0 %v2371_v50, %s2217_s1 }
 0x480   :  { %355 = vrot.lane.b32.xlu1 %v2368_v44, %s2217_s1 }
 0x4ec   :  { %v341_v36 = vpop.xlane.xlu0 %340 }
 0x4ed   :  { %2153 = vrcp.f32 %v341_v36 }
 0x4f0   :  { %v344_v37 = vpop.xlane.xlu1 %343  ;;  %v403_v38 = vpop.permute.xlu0 %402 }
 0x4f1   :  { %2155 = vrcp.f32 %v344_v37  ;;  %1949 = vmatpush3.bf16.msra.mxu0 %v403_v38 }
 0x4f2   :  { %1962 = vmatprep.subr.bf16.mxu0 %v2213_v14 }
 0x4f4   :  { %v335_v39 = vpop.xlane.xlu1 %334 }
 0x4f5   :  { %2157 = vrcp.f32 %v335_v39  ;;  %v1774_v39 = vld [vmem:[%s2726_s9] ss:$0 sm:$0xff] }
 0x4f8   :  { %v338_v40 = vpop.xlane.xlu1 %337 }
 0x4f9   :  { %2159 = vrcp.f32 %v338_v40 }
 0x4fa   :  { %v2154_v41 = vpop.eup %2153 }
 0x4fb   :  { %v351_v45 = vmul.f32 %v2154_v41, %v2146_v28 }
 0x4fc   :  { %v356_v42 = vpop.permute.xlu1 %355 }
 0x4fd   :  { %1943 = vmatpush3.bf16.msra.mxu1 %v356_v42 }
 0x4fe   :  { %v2156_v43 = vpop.eup %2155  ;;  %1954 = vmatprep.subr.bf16.mxu1 %v2213_v14 }
 0x4ff   :  { %v352_v44 = vmul.f32 %v2156_v43, %v2148_v30  ;;  %v2116_v30 = vld [vmem:[%s2725_s11] sm:$0xff]  }
 0x500   :  { %v1775_v43 = vld [vmem:[%s2727_s10] ss:$0 sm:$0xff] }
 0x501   :  { %v354_v46 = vpack.c.bf16 %v352_v44, %v351_v45 }
 0x502   :  { %v2158_v47 = vpop.eup %2157 }
 0x503   :  { %1951 = vmatmul.mubr.msk.bf16.vlgmr.msra.gmra.mxu0 %vm211_vm2, %v354_v46  ;;  %v349_v49 = vmul.f32 %v2158_v47, %v2150_v32 }
 0x504   :  { %1966 = vmatprep.mubr.msk.bf16.mxu0 %vm2214_vm1, %v2213_v14  ;;  %1963 = vmatpush3.bf16.msra.mxu0 %v2115_v29 }
 0x505   :  { %1964 = vmatprep.subr.bf16.mxu0 %v2213_v14 }
 0x506   :  { %v2160_v48 = vpop.eup %2159 }
 0x507   :  { %v350_v50 = vmul.f32 %v2160_v48, %v2152_v34  ;;  %v2117_v48 = vld [vmem:[%s2728_s13 + $0x38] sm:$0xff]  }
 0x508   :  { %1965 = vmatpush3.bf16.msra.mxu0 %v2116_v30 }
 0x509   :  { %v353_v51 = vpack.c.bf16 %v350_v50, %v349_v49  ;;  %1990 = vmatprep.subr.bf16.mxu0 %v2213_v14  ;;  %v2118_v49 = vld [vmem:[%s2728_s13 + $0x30] sm:$0xff]   ;;  %v2119_v50 = vld [vmem:[%s2728_s13 + $0x28] sm:$0xff]  }
 0x50b   :  { %1945 = vmatmul.mubr.msk.bf16.vlgmr.msra.gmra.mxu1 %vm211_vm2, %v353_v51  ;;  %v2120_v51 = vld [vmem:[%s2728_s13 + $0x20] sm:$0xff]  }
 0x50c   :  { %1958 = vmatprep.mubr.msk.bf16.mxu1 %vm2214_vm1, %v2213_v14  ;;  %1955 = vmatpush3.bf16.msra.mxu1 %v2113_v52  ;;  %v2121_v52 = vld [vmem:[%s2728_s13 + $0x18] sm:$0xff]  }
 0x50d   :  { %1956 = vmatprep.subr.bf16.mxu1 %v2213_v14 }
 0x510   :  { %1957 = vmatpush3.bf16.msra.mxu1 %v2114_v53  ;;  %v2122_v53 = vld [vmem:[%s2728_s13 + $0x10] sm:$0xff]  }
 0x511   :  { %1970 = vmatprep.subr.bf16.mxu1 %v2213_v14 }
 0x5c3   :  { %v442_v54 = vpop.f32.mrf.mxu0 }
 0x5c5   :  { %v1952_v55 = vpop.f32.mrf.mxu0 }
 0x5c6   :  { %v2124_v55 = vld [vmem:[%s2728_s13] sm:$0xff]  }
 0x5c7   :  { %v445_v56 = vpop.f32.mrf.mxu0 }
 0x5c8   :  { %v2091_v57 = vpack.i.bf16 %v445_v56, %v442_v54  ;;  %v2123_v54 = vld [vmem:[%s2728_s13 + $0x8] sm:$0xff]   ;;  %v1776_v56 = vld [vmem:[%s2729_s12] ss:$0 sm:$0xff] }
 0x5c9   :  { %v1953_v58 = vpop.f32.mrf.mxu0 }
 0x5ca   :  { %2092 = vrot.lane.b32.xlu0 %v2091_v57, %s2218_s23 }
 0x5cb   :  { %v395_v60 = vpop.f32.mrf.mxu1 }
 0x5cd   :  { %v1946_v61 = vpop.f32.mrf.mxu1 }
 0x5cf   :  { %v398_v62 = vpop.f32.mrf.mxu1 }
 0x5d1   :  { %v1947_v2 = vpop.f32.mrf.mxu1 }
 0x63c   :  { %v2093_v3 = vpop.permute.xlu0 %2092 }
 0x63d   :  { %v2095_v4 = vunpack.i.h.bf16 %v2093_v3  ;;  %v2094_v5 = vunpack.i.l.bf16 %v2093_v3 }
 0x63f   :  { %v457_v6 = vsel %vm211_vm2, %v395_v60, %v2094_v5  ;;  %v458_v7 = vsel %vm211_vm2, %v398_v62, %v2095_v4 }
 0x640   :  { %v459_v8 = vpack.c.bf16 %v458_v7, %v457_v6 }
 0x642   :  { %1959 = vmatmul.mubr.msk.bf16.vlgmr.msra.gmra.mxu1 %vm74_vm0, %v459_v8 }
 0x643   :  { %1986 = vmatprep.mubr.msk.bf16.mxu1 %vm2214_vm1, %v2213_v14  ;;  %1971 = vmatpush3.bf16.msra.mxu1 %v2117_v48 }
 0x644   :  { %1972 = vmatprep.subr.bf16.mxu1 %v2213_v14 }
 0x647   :  { %1973 = vmatpush3.bf16.msra.mxu1 %v2118_v49 }
 0x648   :  { %1974 = vmatprep.subr.bf16.mxu1 %v2213_v14 }
 0x64b   :  { %1975 = vmatpush3.bf16.msra.mxu1 %v2119_v50 }
 0x64c   :  { %1976 = vmatprep.subr.bf16.mxu1 %v2213_v14 }
 0x64f   :  { %1977 = vmatpush3.bf16.msra.mxu1 %v2120_v51 }
 0x650   :  { %1978 = vmatprep.subr.bf16.mxu1 %v2213_v14 }
 0x653   :  { %1979 = vmatpush3.bf16.msra.mxu1 %v2121_v52 }
 0x654   :  { %1980 = vmatprep.subr.bf16.mxu1 %v2213_v14 }
 0x657   :  { %1981 = vmatpush3.bf16.msra.mxu1 %v2122_v53 }
 0x658   :  { %1982 = vmatprep.subr.bf16.mxu1 %v2213_v14 }
 0x65b   :  { %1983 = vmatpush3.bf16.msra.mxu1 %v2123_v54 }
 0x65c   :  { %1984 = vmatprep.subr.bf16.mxu1 %v2213_v14 }
 0x65f   :  { %1985 = vmatpush3.bf16.msra.mxu1 %v2124_v55  ;;  %v1800_v55 = vld [vmem:[%s2752_s24 + $0x1] ss:$0 sm:$0xff] }
 0x660   :  { %2016 = vmatprep.subr.bf16.mxu1 %v2213_v14 }
 0x702   :  { %v513_v9 = vpop.f32.mrf.mxu1 }
 0x703   :  { %v520_v11 = vadd.f32 %v513_v9, %v2327_v0 }
 0x704   :  { %v1960_v12 = vpop.f32.mrf.mxu1 }
 0x705   :  { %v2440_v13 = vadd.f32 %v1773_v10, %v520_v11 }
 0x706   :  { %v516_v15 = vpop.f32.mrf.mxu1 }
 0x707   :  { %v521_v16 = vadd.f32 %v516_v15, %v2332_v1  ;;  %v533_v17 = vsel %vm74_vm0, %v2440_v13, 0.0 }
 0x708   :  { %534 = vadd.xlane.f32.xlu1 %v533_v17  ;;  %v1961_v18 = vpop.f32.mrf.mxu1 }
 0x709   :  { %v2445_v19 = vadd.f32 %v1773_v10, %v521_v16 }
 0x70b   :  { %v536_v20 = vsel %vm74_vm0, %v2445_v19, 0.0 }
 0x70c   :  { %537 = vadd.xlane.f32.xlu0 %v536_v20  ;;  %v1790_v20 = vld [vmem:[%s2730_s14] ss:$0 sm:$0xff] }
 0x791   :  { %v535_v21 = vpop.xlane.xlu1 %534 }
 0x792   :  { %v539_v22 = vmul.f32 0.03125, %v535_v21 }
 0x794   :  { %v541_v0 = vsub.f32 %v2440_v13, %v539_v22 }
 0x795   :  { %v538_v23 = vpop.xlane.xlu0 %537 }
 0x796   :  { %v540_v24 = vmul.f32 0.03125, %v538_v23  ;;  %v543_v25 = vmul.f32 %v541_v0, %v541_v0 }
 0x798   :  { %v542_v1 = vsub.f32 %v2445_v19, %v540_v24  ;;  %v545_v26 = vsel %vm74_vm0, %v543_v25, 0.0 }
 0x799   :  { %546 = vadd.xlane.f32.xlu0 %v545_v26 }
 0x79a   :  { %v544_v27 = vmul.f32 %v542_v1, %v542_v1 }
 0x79c   :  { %v548_v28 = vsel %vm74_vm0, %v544_v27, 0.0 }
 0x79d   :  { %549 = vadd.xlane.f32.xlu0 %v548_v28 }
 0x822   :  { %v547_v31 = vpop.xlane.xlu0 %546 }
 0x823   :  { %v551_v32 = vmul.f32 0.03125, %v547_v31 }
 0x825   :  { %v553_v33 = vadd.f32 1e-05, %v551_v32 }
 0x826   :  { %v550_v34 = vpop.xlane.xlu0 %549 }
 0x827   :  { %2161 = vrsqrt.f32 %v553_v33  ;;  %v552_v35 = vmul.f32 0.03125, %v550_v34 }
 0x829   :  { %v554_v36 = vadd.f32 1e-05, %v552_v35 }
 0x82b   :  { %2163 = vrsqrt.f32 %v554_v36  ;;  %v2125_v36 = vld [vmem:[%s2749_s26 + $0x18] sm:$0xff]  }
 0x834   :  { %v2162_v37 = vpop.eup %2161 }
 0x835   :  { %v557_v38 = vmul.f32 %v2162_v37, %v541_v0  ;;  %v2126_v37 = vld [vmem:[%s2749_s26 + $0x10] sm:$0xff]  }
 0x837   :  { %v565_v42 = vmul.f32 %v1774_v39, %v557_v38 }
 0x838   :  { %v2164_v40 = vpop.eup %2163 }
 0x839   :  { %v558_v41 = vmul.f32 %v2164_v40, %v542_v1  ;;  %v573_v44 = vadd.f32 %v1775_v43, %v565_v42 }
 0x83b   :  { %v566_v45 = vmul.f32 %v1774_v39, %v558_v41 }
 0x83d   :  { %v574_v46 = vadd.f32 %v1775_v43, %v566_v45 }
 0x83f   :  { %v575_v47 = vpack.c.bf16 %v574_v46, %v573_v44  ;;  %v1793_v44 = vld [vmem:[%s2750_s30 + $0x1] ss:$0 sm:$0xff] }
 0x841   :  { %1967 = vmatmul.mubr.msk.bf16.vlgmr.msra.gmra.mxu0 %vm74_vm0, %v575_v47  ;;  %v1794_v47 = vld [vmem:[%s2751_s5 + $0x1] ss:$0 sm:$0xff] }
 0x842   :  { %1994 = vmatprep.mubr.msk.bf16.mxu0 %vm2214_vm1, %v2213_v14  ;;  %1991 = vmatpush3.bf16.msra.mxu0 %v2125_v36 }
 0x843   :  { %1992 = vmatprep.subr.bf16.mxu0 %v2213_v14 }
 0x846   :  { %1993 = vmatpush3.bf16.msra.mxu0 %v2126_v37 }
 0x847   :  { %1998 = vmatprep.subr.bf16.mxu0 %v2213_v14 }
 0x901   :  { %v636_v57 = vpop.f32.mrf.mxu0 }
 0x902   :  { %v637_v58 = vadd.f32 %v1776_v56, %v636_v57 }
 0x903   :  { %v1968_v60 = vpop.f32.mrf.mxu0 }
 0x904   :  { %v1780_v61 = vmul.f32 -1.702, %v637_v58 }
 0x905   :  { %v639_v62 = vpop.f32.mrf.mxu0 }
 0x906   :  { %v647_v2 = vmul.f32 1.442695, %v1780_v61  ;;  %v640_v3 = vadd.f32 %v1776_v56, %v639_v62 }
 0x907   :  { %v1969_v4 = vpop.f32.mrf.mxu0 }
 0x908   :  { %2165 = vpow2.f32 %v647_v2  ;;  %v1781_v5 = vmul.f32 -1.702, %v640_v3 }
 0x90a   :  { %v649_v6 = vmul.f32 1.442695, %v1781_v5 }
 0x90c   :  { %2167 = vpow2.f32 %v649_v6 }
 0x915   :  { %v2166_v7 = vpop.eup %2165 }
 0x916   :  { %v651_v8 = vadd.f32 1.0, %v2166_v7 }
 0x918   :  { %2169 = vrcp.f32 %v651_v8 }
 0x919   :  { %v2168_v9 = vpop.eup %2167 }
 0x91a   :  { %v652_v10 = vadd.f32 1.0, %v2168_v9 }
 0x91c   :  { %2171 = vrcp.f32 %v652_v10 }
 0x925   :  { %v2170_v11 = vpop.eup %2169 }
 0x926   :  { %v657_v15 = vmul.f32 %v2170_v11, %v637_v58 }
 0x929   :  { %v2172_v12 = vpop.eup %2171 }
 0x92a   :  { %v658_v16 = vmul.f32 %v2172_v12, %v640_v3 }
 0x92c   :  { %v659_v17 = vpack.c.bf16 %v658_v16, %v657_v15 }
 0x92e   :  { %1987 = vmatmul.mubr.bf16.vlgmr.msra.gmra.mxu1 %v659_v17 }
 0x92f   :  { %2018 = vmatprep.mubr.msk.bf16.mxu1 %vm2214_vm1, %v2213_v14 }
 0x9ee   :  { %v758_v18 = vpop.f32.mrf.mxu1 }
 0x9ef   :  { %v765_v21 = vadd.f32 %v758_v18, %v2440_v13 }
 0x9f0   :  { %v1988_v22 = vpop.f32.mrf.mxu1 }
 0x9f1   :  { %v2511_v0 = vadd.f32 %v1790_v20, %v765_v21 }
 0x9f2   :  { %v761_v23 = vpop.f32.mrf.mxu1 }
 0x9f3   :  { %v766_v24 = vadd.f32 %v761_v23, %v2445_v19  ;;  %v780_v25 = vsel %vm74_vm0, %v2511_v0, 0.0 }
 0x9f4   :  { %781 = vadd.xlane.f32.xlu1 %v780_v25  ;;  %v1989_v1 = vpop.f32.mrf.mxu1 }
 0x9f5   :  { %v2516_v26 = vadd.f32 %v1790_v20, %v766_v24 }
 0x9f7   :  { %v783_v27 = vsel %vm74_vm0, %v2516_v26, 0.0 }
 0x9f8   :  { %784 = vadd.xlane.f32.xlu0 %v783_v27 }
 0xa7d   :  { %v782_v28 = vpop.xlane.xlu1 %781 }
 0xa7e   :  { %v786_v29 = vmul.f32 0.03125, %v782_v28 }
 0xa80   :  { %v788_v13 = vsub.f32 %v2511_v0, %v786_v29 }
 0xa81   :  { %v785_v30 = vpop.xlane.xlu0 %784 }
 0xa82   :  { %v787_v31 = vmul.f32 0.03125, %v785_v30  ;;  %v790_v32 = vmul.f32 %v788_v13, %v788_v13 }
 0xa84   :  { %v789_v19 = vsub.f32 %v2516_v26, %v787_v31  ;;  %v792_v33 = vsel %vm74_vm0, %v790_v32, 0.0 }
 0xa85   :  { %793 = vadd.xlane.f32.xlu1 %v792_v33 }
 0xa86   :  { %v791_v34 = vmul.f32 %v789_v19, %v789_v19 }
 0xa88   :  { %v795_v35 = vsel %vm74_vm0, %v791_v34, 0.0 }
 0xa89   :  { %796 = vadd.xlane.f32.xlu0 %v795_v35 }
 0xb0e   :  { %v794_v38 = vpop.xlane.xlu1 %793 }
 0xb0f   :  { %v798_v39 = vmul.f32 0.03125, %v794_v38 }
 0xb11   :  { %v800_v40 = vadd.f32 1e-05, %v798_v39 }
 0xb12   :  { %v797_v41 = vpop.xlane.xlu0 %796 }
 0xb13   :  { %2173 = vrsqrt.f32 %v800_v40  ;;  %v799_v42 = vmul.f32 0.03125, %v797_v41 }
 0xb15   :  { %v801_v43 = vadd.f32 1e-05, %v799_v42 }
 0xb17   :  { %2175 = vrsqrt.f32 %v801_v43 }
 0xb20   :  { %v2174_v45 = vpop.eup %2173 }
 0xb21   :  { %v804_v46 = vmul.f32 %v2174_v45, %v788_v13 }
 0xb23   :  { %v812_v48 = vmul.f32 %v1793_v44, %v804_v46 }
 0xb24   :  { %v2176_v49 = vpop.eup %2175 }
 0xb25   :  { %v805_v50 = vmul.f32 %v2176_v49, %v789_v19  ;;  %v820_v51 = vadd.f32 %v1794_v47, %v812_v48 }
 0xb27   :  { %v813_v52 = vmul.f32 %v1793_v44, %v805_v50 }
 0xb29   :  { %v821_v53 = vadd.f32 %v1794_v47, %v813_v52 }
 0xb2b   :  { %v822_v54 = vpack.c.bf16 %v821_v53, %v820_v51 }
 0xb2d   :  { %1995 = vmatmul.mubr.msk.bf16.vlgmr.msra.gmra.mxu0 %vm74_vm0, %v822_v54 }
 0xb2e   :  { %2000 = vmatprep.mubr.msk.bf16.mxu0 %vm2214_vm1, %v2213_v14 }
 0xbed   :  { %v885_v56 = vpop.f32.mrf.mxu0 }
 0xbee   :  { %v886_v58 = vadd.f32 %v1800_v55, %v885_v56 }
 0xbef   :  { %v1996_v57 = vpop.f32.mrf.mxu0 }
 0xbf0   :  { %v892_v2 = vmul.f32 0.25, %v886_v58 }
 0xbf1   :  { %v888_v60 = vpop.f32.mrf.mxu0 }
 0xbf2   :  { %v889_v61 = vadd.f32 %v1800_v55, %v888_v60 }
 0xbf3   :  { %v1997_v62 = vpop.f32.mrf.mxu0 }
 0xbf4   :  { %v893_v3 = vmul.f32 0.25, %v889_v61  ;;  %v2096_v4 = vpack.i.bf16 %v889_v61, %v886_v58  ;;  %v2544_v5 = vpack.c.bf16 %v889_v61, %v886_v58 }
 0xbf6   :  { %v910_v6 = vpack.c.bf16 %v893_v3, %v892_v2  ;;  %2097 = vrot.lane.b32.xlu1 %v2096_v4, %s2215_s3  ;;  %915 = vrot.lane.b32.xlu0 %v2544_v5, %s2216_s25  ;;  %v2101_v7 = vpack.i.bf16 %v893_v3, %v892_v2 }
 0xc68   :  { %v2098_v8 = vpop.permute.xlu1 %2097  ;;  %v916_v9 = vpop.permute.xlu0 %915 }
 0xc69   :  { %v2100_v10 = vunpack.i.h.bf16 %v2098_v8  ;;  %v2099_v11 = vunpack.i.l.bf16 %v2098_v8  ;;  %v921_v12 = vsel %vm211_vm2, %v916_v9, 0 }
 0xc6a   :  { %1999 = vmatpush3.bf16.xpose.msra.mxu0 %v921_v12  ;;  %v2128_v12 = vld [vmem:[%s2723_s7 + $0x10] sm:$0xff]  }
 0xc6b   :  { %v2550_v15 = vpack.c.bf16 %v2100_v10, %v2099_v11  ;;  %2004 = vmatprep.subr.bf16.mxu0 %v2213_v14  ;;  %v2127_v11 = vld [vmem:[%s2723_s7 + $0x18] sm:$0xff]  }
 0xc6d   :  { %965 = vrot.lane.b32.xlu1 %v2550_v15, %s2216_s25 }
 0xc71   :  { %2102 = vrot.lane.b32.xlu1 %v2101_v7, %s2215_s3  ;;  %2001 = vmatmul.mubr.msk.bf16.vlgmr.msra.gmra.mxu0 %vm211_vm2, %v910_v6 }
 0xc72   :  { %2006 = vmatprep.mubr.msk.bf16.mxu0 %vm2214_vm1, %v2213_v14 }
 0xcdf   :  { %v966_v16 = vpop.permute.xlu1 %965 }
 0xce0   :  { %v971_v17 = vsel %vm211_vm2, %v966_v16, 0 }
 0xce1   :  { %2005 = vmatpush3.bf16.xpose.msra.mxu0 %v971_v17 }
 0xce2   :  { %2010 = vmatprep.subr.bf16.mxu0 %v2213_v14 }
 0xce3   :  { %v2103_v18 = vpop.permute.xlu1 %2102 }
 0xce4   :  { %v2105_v20 = vunpack.i.h.bf16 %v2103_v18  ;;  %v2104_v21 = vunpack.i.l.bf16 %v2103_v18 }
 0xce6   :  { %v911_v22 = vpack.c.bf16 %v2105_v20, %v2104_v21 }
 0xce8   :  { %2007 = vmatmul.mubr.msk.bf16.vlgmr.msra.gmra.mxu0 %vm211_vm2, %v911_v22 }
 0xce9   :  { %2012 = vmatprep.mubr.msk.bf16.mxu0 %vm2214_vm1, %v2213_v14 }
 0xd31   :  { %v957_v23 = vpop.f32.mrf.mxu0 }
 0xd32   :  { %v958_v19 = vadd.f32 %v957_v23, %v2391_v59 }
 0xd33   :  { %v2002_v24 = vpop.f32.mrf.mxu0 }
 0xd34   :  { %v1014_v35 = vsel %vm211_vm2, %v958_v19, -inf }
 0xd35   :  { %v960_v25 = vpop.f32.mrf.mxu0 }
 0xd36   :  { %v961_v34 = vadd.f32 %v960_v25, %v2397_v63 }
 0xd37   :  { %v2003_v1 = vpop.f32.mrf.mxu0 }
 0xd38   :  { %v1017_v36 = vsel %vm211_vm2, %v961_v34, -inf }
 0xda8   :  { %v1007_v27 = vpop.f32.mrf.mxu0 }
 0xda9   :  { %v1008_v28 = vadd.f32 %v1007_v27, %v2391_v59 }
 0xdaa   :  { %v2008_v29 = vpop.f32.mrf.mxu0 }
 0xdab   :  { %v1020_v13 = vsel %vm211_vm2, %v1008_v28, -inf }
 0xdac   :  { %1021 = vmax.xlane.f32.xlu1 %v1020_v13  ;;  %v1010_v30 = vpop.f32.mrf.mxu0 }
 0xdad   :  { %v1011_v31 = vadd.f32 %v1010_v30, %v2397_v63 }
 0xdae   :  { %v2009_v32 = vpop.f32.mrf.mxu0 }
 0xdaf   :  { %v1023_v33 = vsel %vm211_vm2, %v1011_v31, -inf }
 0xdb0   :  { %1024 = vmax.xlane.f32.xlu0 %v1023_v33 }
 0xdb4   :  { %1015 = vmax.xlane.f32.xlu0 %v1014_v35 }
 0xdb8   :  { %1018 = vmax.xlane.f32.xlu0 %v1017_v36 }
 0xe35   :  { %v1022_v37 = vpop.xlane.xlu1 %1021 }
 0xe36   :  { %v1028_v38 = vsub.f32 %v1008_v28, %v1022_v37 }
 0xe38   :  { %v1034_v39 = vmul.f32 1.442695, %v1028_v38 }
 0xe39   :  { %v1025_v40 = vpop.xlane.xlu0 %1024 }
 0xe3a   :  { %2177 = vpow2.f32 %v1034_v39  ;;  %v1029_v41 = vsub.f32 %v1011_v31, %v1025_v40  ;;  %v1816_v31 = vld [vmem:[%s2724_s8 + $0x1] ss:$0 sm:$0xff] }
 0xe3c   :  { %v1036_v42 = vmul.f32 1.442695, %v1029_v41 }
 0xe3d   :  { %v1016_v43 = vpop.xlane.xlu0 %1015 }
 0xe3e   :  { %2179 = vpow2.f32 %v1036_v42  ;;  %v1026_v59 = vsub.f32 %v958_v19, %v1016_v43 }
 0xe40   :  { %v1030_v45 = vmul.f32 1.442695, %v1026_v59 }
 0xe41   :  { %v1019_v44 = vpop.xlane.xlu0 %1018 }
 0xe42   :  { %2181 = vpow2.f32 %v1030_v45  ;;  %v1027_v63 = vsub.f32 %v961_v34, %v1019_v44 }
 0xe44   :  { %v1032_v46 = vmul.f32 1.442695, %v1027_v63 }
 0xe46   :  { %2183 = vpow2.f32 %v1032_v46  ;;  %v2129_v46 = vld [vmem:[%s2725_s11 + $0x18] sm:$0xff]  }
 0xe47   :  { %v2178_v47 = vpop.eup %2177 }
 0xe48   :  { %v1044_v48 = vsel %vm211_vm2, %v2178_v47, 0.0 }
 0xe49   :  { %1045 = vadd.xlane.f32.xlu1 %v1044_v48 }
 0xe4b   :  { %v2180_v49 = vpop.eup %2179 }
 0xe4c   :  { %v1047_v50 = vsel %vm211_vm2, %v2180_v49, 0.0 }
 0xe4d   :  { %1048 = vadd.xlane.f32.xlu0 %v1047_v50 }
 0xe4f   :  { %v2182_v51 = vpop.eup %2181 }
 0xe50   :  { %v1038_v52 = vsel %vm211_vm2, %v2182_v51, 0.0 }
 0xe51   :  { %1039 = vadd.xlane.f32.xlu0 %v1038_v52 }
 0xe53   :  { %v2184_v53 = vpop.eup %2183 }
 0xe54   :  { %v1041_v54 = vsel %vm211_vm2, %v2184_v53, 0.0 }
 0xe55   :  { %1042 = vadd.xlane.f32.xlu0 %v1041_v54 }
 0xe5a   :  { %1107 = vrot.lane.b32.xlu1 %v2550_v15, %s2217_s1 }
 0xe6b   :  { %1060 = vrot.lane.b32.xlu0 %v2544_v5, %s2217_s1 }
 0xed2   :  { %v1046_v55 = vpop.xlane.xlu1 %1045 }
 0xed3   :  { %2185 = vrcp.f32 %v1046_v55 }
 0xed6   :  { %v1108_v56 = vpop.permute.xlu1 %1107  ;;  %v1049_v57 = vpop.xlane.xlu0 %1048 }
 0xed7   :  { %2187 = vrcp.f32 %v1049_v57  ;;  %2017 = vmatpush3.bf16.msra.mxu1 %v1108_v56  ;;  %v1819_v56 = vld [vmem:[%s2726_s9 + $0x1] ss:$0 sm:$0xff] }
 0xed8   :  { %2030 = vmatprep.subr.bf16.mxu1 %v2213_v14 }
 0xeda   :  { %v1040_v58 = vpop.xlane.xlu0 %1039 }
 0xedb   :  { %2189 = vrcp.f32 %v1040_v58 }
 0xede   :  { %v1043_v60 = vpop.xlane.xlu0 %1042 }
 0xedf   :  { %2191 = vrcp.f32 %v1043_v60 }
 0xee0   :  { %v2186_v61 = vpop.eup %2185 }
 0xee1   :  { %v1056_v3 = vmul.f32 %v2186_v61, %v2178_v47  ;;  %v2130_v47 = vld [vmem:[%s2725_s11 + $0x10] sm:$0xff]   ;;  %v1820_v61 = vld [vmem:[%s2727_s10 + $0x1] ss:$0 sm:$0xff] }
 0xee2   :  { %v1061_v62 = vpop.permute.xlu0 %1060 }
 0xee3   :  { %2011 = vmatpush3.bf16.msra.mxu0 %v1061_v62 }
 0xee4   :  { %v2188_v2 = vpop.eup %2187  ;;  %2022 = vmatprep.subr.bf16.mxu0 %v2213_v14 }
 0xee5   :  { %v1057_v4 = vmul.f32 %v2188_v2, %v2180_v49 }
 0xee7   :  { %v1059_v5 = vpack.c.bf16 %v1057_v4, %v1056_v3 }
 0xee8   :  { %v2190_v6 = vpop.eup %2189 }
 0xee9   :  { %2019 = vmatmul.mubr.msk.bf16.vlgmr.msra.gmra.mxu1 %vm211_vm2, %v1059_v5  ;;  %v1054_v8 = vmul.f32 %v2190_v6, %v2182_v51  ;;  %v2131_v5 = vld [vmem:[%s2728_s13 + $0x78] sm:$0xff]   ;;  %v2132_v6 = vld [vmem:[%s2728_s13 + $0x70] sm:$0xff]  }
 0xeea   :  { %2034 = vmatprep.mubr.msk.bf16.mxu1 %vm2214_vm1, %v2213_v14  ;;  %2031 = vmatpush3.bf16.msra.mxu1 %v2129_v46 }
 0xeeb   :  { %2032 = vmatprep.subr.bf16.mxu1 %v2213_v14 }
 0xeec   :  { %v2192_v7 = vpop.eup %2191 }
 0xeed   :  { %v1055_v9 = vmul.f32 %v2192_v7, %v2184_v53  ;;  %v2133_v7 = vld [vmem:[%s2728_s13 + $0x68] sm:$0xff]  }
 0xeee   :  { %2033 = vmatpush3.bf16.msra.mxu1 %v2130_v47 }
 0xeef   :  { %v1058_v10 = vpack.c.bf16 %v1055_v9, %v1054_v8  ;;  %2058 = vmatprep.subr.bf16.mxu1 %v2213_v14  ;;  %v2134_v8 = vld [vmem:[%s2728_s13 + $0x60] sm:$0xff]   ;;  %v2135_v9 = vld [vmem:[%s2728_s13 + $0x58] sm:$0xff]  }
 0xef1   :  { %2013 = vmatmul.mubr.msk.bf16.vlgmr.msra.gmra.mxu0 %vm211_vm2, %v1058_v10  ;;  %v2136_v10 = vld [vmem:[%s2728_s13 + $0x50] sm:$0xff]  }
 0xef2   :  { %2026 = vmatprep.mubr.msk.bf16.mxu0 %vm2214_vm1, %v2213_v14  ;;  %2023 = vmatpush3.bf16.msra.mxu0 %v2127_v11  ;;  %v2137_v11 = vld [vmem:[%s2728_s13 + $0x48] sm:$0xff]  }
 0xef3   :  { %2024 = vmatprep.subr.bf16.mxu0 %v2213_v14 }
 0xef6   :  { %2025 = vmatpush3.bf16.msra.mxu0 %v2128_v12  ;;  %v2138_v12 = vld [vmem:[%s2728_s13 + $0x40] sm:$0xff]  }
 0xef7   :  { %2038 = vmatprep.subr.bf16.mxu0 %v2213_v14 }
 0xfa9   :  { %v1147_v15 = vpop.f32.mrf.mxu1 }
 0xfab   :  { %v2020_v16 = vpop.f32.mrf.mxu1 }
 0xfad   :  { %v1150_v17 = vpop.f32.mrf.mxu1 }
 0xfae   :  { %v2106_v18 = vpack.i.bf16 %v1150_v17, %v1147_v15  ;;  %v1490_v15 = vlaneseq  ;;  %v1489_v17 = vld [vmem:[%s2731_s2] sm:$0x3] }
 0xfaf   :  { %v2021_v20 = vpop.f32.mrf.mxu1 }
 0xfb0   :  { %2107 = vrot.lane.b32.xlu1 %v2106_v18, %s2218_s23  ;;  %v1491_v16 = vshrl.u32 %v1490_v15, 7 }
 0xfb1   :  { %v1100_v21 = vpop.f32.mrf.mxu0 }
 0xfb2   :  { %v1492_v18 = vsub.s32 0, %v1491_v16  ;;  %v1503_v20 = vsub.s32 1, %v1491_v16 }
 0xfb3   :  { %v2014_v22 = vpop.f32.mrf.mxu0 }
 0xfb4   :  { %v1504_v22 = vrot.slane %v1489_v17, %v1503_v20 }
 0xfb5   :  { %v1103_v23 = vpop.f32.mrf.mxu0 }
 0xfb7   :  { %v2015_v24 = vpop.f32.mrf.mxu0 }
0x1022   :  { %v2108_v25 = vpop.permute.xlu1 %2107 }
0x1023   :  { %v2110_v1 = vunpack.i.h.bf16 %v2108_v25  ;;  %v2109_v27 = vunpack.i.l.bf16 %v2108_v25 }
0x1025   :  { %v1163_v28 = vsel %vm211_vm2, %v1103_v23, %v2110_v1  ;;  %v1162_v29 = vsel %vm211_vm2, %v1100_v21, %v2109_v27  ;;  %v1493_v21 = vrot.slane %v1489_v17, %v1492_v18  ;;  %v1826_v23 = vld [vmem:[%s2729_s12 + $0x1] ss:$0 sm:$0xff] }
0x1026   :  { %v1164_v13 = vpack.c.bf16 %v1163_v28, %v1162_v29 }
0x1028   :  { %2027 = vmatmul.mubr.msk.bf16.vlgmr.msra.gmra.mxu0 %vm74_vm0, %v1164_v13 }
0x1029   :  { %2054 = vmatprep.mubr.msk.bf16.mxu0 %vm2214_vm1, %v2213_v14  ;;  %2039 = vmatpush3.bf16.msra.mxu0 %v2131_v5 }
0x102a   :  { %2040 = vmatprep.subr.bf16.mxu0 %v2213_v14 }
0x102d   :  { %2041 = vmatpush3.bf16.msra.mxu0 %v2132_v6 }
0x102e   :  { %2042 = vmatprep.subr.bf16.mxu0 %v2213_v14 }
0x1031   :  { %2043 = vmatpush3.bf16.msra.mxu0 %v2133_v7 }
0x1032   :  { %2044 = vmatprep.subr.bf16.mxu0 %v2213_v14 }
0x1035   :  { %2045 = vmatpush3.bf16.msra.mxu0 %v2134_v8 }
0x1036   :  { %2046 = vmatprep.subr.bf16.mxu0 %v2213_v14 }
0x1039   :  { %2047 = vmatpush3.bf16.msra.mxu0 %v2135_v9 }
0x103a   :  { %2048 = vmatprep.subr.bf16.mxu0 %v2213_v14 }
0x103d   :  { %2049 = vmatpush3.bf16.msra.mxu0 %v2136_v10 }
0x103e   :  { %2050 = vmatprep.subr.bf16.mxu0 %v2213_v14 }
0x1041   :  { %2051 = vmatpush3.bf16.msra.mxu0 %v2137_v11 }
0x1042   :  { %2052 = vmatprep.subr.bf16.mxu0 %v2213_v14 }
0x1045   :  { %2053 = vmatpush3.bf16.msra.mxu0 %v2138_v12 }
0x10e8   :  { %v1219_v30 = vpop.f32.mrf.mxu0 }
0x10e9   :  { %v1226_v32 = vadd.f32 %v1219_v30, %v2511_v0 }
0x10ea   :  { %v2028_v19 = vpop.f32.mrf.mxu0 }
0x10eb   :  { %v2606_v33 = vadd.f32 %v1816_v31, %v1226_v32 }
0x10ec   :  { %v1222_v34 = vpop.f32.mrf.mxu0 }
0x10ed   :  { %v1227_v35 = vadd.f32 %v1222_v34, %v2516_v26  ;;  %v1242_v36 = vsel %vm74_vm0, %v2606_v33, 0.0 }
0x10ee   :  { %1243 = vadd.xlane.f32.xlu1 %v1242_v36  ;;  %v2029_v37 = vpop.f32.mrf.mxu0 }
0x10ef   :  { %v2611_v38 = vadd.f32 %v1816_v31, %v1227_v35 }
0x10f1   :  { %v1245_v39 = vsel %vm74_vm0, %v2611_v38, 0.0 }
0x10f2   :  { %1246 = vadd.xlane.f32.xlu0 %v1245_v39 }
0x1108   :  { %1495 = vbcast.lane.b32.xlu0 %v1493_v21, 256 }
0x1177   :  { %v1244_v40 = vpop.xlane.xlu1 %1243 }
0x1178   :  { %v1248_v41 = vmul.f32 0.03125, %v1244_v40 }
0x117a   :  { %v1250_v0 = vsub.f32 %v2606_v33, %v1248_v41 }
0x117b   :  { %v1247_v42 = vpop.xlane.xlu0 %1246 }
0x117c   :  { %v1249_v43 = vmul.f32 0.03125, %v1247_v42  ;;  %v1252_v59 = vmul.f32 %v1250_v0, %v1250_v0 }
0x117e   :  { %v1251_v26 = vsub.f32 %v2611_v38, %v1249_v43  ;;  %v1254_v45 = vsel %vm74_vm0, %v1252_v59, 0.0  ;;  %v1857_v59 = vld [vmem:[%s2730_s14 + $0x1] ss:$0 sm:$0xff] }
0x117f   :  { %1255 = vadd.xlane.f32.xlu1 %v1254_v45  ;;  %v1496_v46 = vpop.permute.xlu0 %1495 }
0x1180   :  { %v1253_v44 = vmul.f32 %v1251_v26, %v1251_v26 }
0x1182   :  { %v1257_v63 = vsel %vm74_vm0, %v1253_v44, 0.0 }
0x1183   :  { %1258 = vadd.xlane.f32.xlu1 %v1257_v63 }
0x1194   :  { %1499 = vbcast.lane.b32.xlu1 %v1493_v21, 264 }
0x1198   :  { %1506 = vbcast.lane.b32.xlu1 %v1504_v22, 256 }
0x119c   :  { %1510 = vbcast.lane.b32.xlu1 %v1504_v22, 264 }
0x1208   :  { %v1256_v48 = vpop.xlane.xlu1 %1255 }
0x1209   :  { %v1260_v49 = vmul.f32 0.03125, %v1256_v48 }
0x120b   :  { %v1262_v50 = vadd.f32 1e-05, %v1260_v49 }
0x120c   :  { %v1259_v51 = vpop.xlane.xlu1 %1258 }
0x120d   :  { %2193 = vrsqrt.f32 %v1262_v50  ;;  %v1261_v52 = vmul.f32 0.03125, %v1259_v51 }
0x120f   :  { %v1263_v53 = vadd.f32 1e-05, %v1261_v52 }
0x1210   :  { %v1500_v42 = vpop.permute.xlu1 %1499 }
0x1211   :  { %2195 = vrsqrt.f32 %v1263_v53 }
0x121a   :  { %v2194_v54 = vpop.eup %2193 }
0x121b   :  { %v1266_v55 = vmul.f32 %v2194_v54, %v1250_v0 }
0x121d   :  { %v1274_v60 = vmul.f32 %v1819_v56, %v1266_v55 }
0x121e   :  { %v2196_v57 = vpop.eup %2195 }
0x121f   :  { %v1267_v58 = vmul.f32 %v2196_v57, %v1251_v26  ;;  %v1282_v2 = vadd.f32 %v1820_v61, %v1274_v60  ;;  %v1507_v26 = vpop.permute.xlu1 %1506 }
0x1221   :  { %v1275_v62 = vmul.f32 %v1819_v56, %v1267_v58 }
0x1223   :  { %v1283_v3 = vadd.f32 %v1820_v61, %v1275_v62  ;;  %v1511_v50 = vpop.permute.xlu1 %1510 }
0x1225   :  { %v1284_v4 = vpack.c.bf16 %v1283_v3, %v1282_v2 }
0x1227   :  { %2035 = vmatmul.mubr.msk.bf16.vlgmr.msra.gmra.mxu1 %vm74_vm0, %v1284_v4 }
0x1228   :  { %2062 = vmatprep.mubr.msk.bf16.mxu1 %vm2214_vm1, %v2213_v14 }
0x12e7   :  { %v1347_v24 = vpop.f32.mrf.mxu1 }
0x12e8   :  { %v1348_v25 = vadd.f32 %v1826_v23, %v1347_v24 }
0x12e9   :  { %v2036_v1 = vpop.f32.mrf.mxu1 }
0x12ea   :  { %v1830_v27 = vmul.f32 -1.702, %v1348_v25 }
0x12eb   :  { %v1350_v28 = vpop.f32.mrf.mxu1 }
0x12ec   :  { %v1358_v29 = vmul.f32 1.442695, %v1830_v27  ;;  %v1351_v13 = vadd.f32 %v1826_v23, %v1350_v28  ;;  %v2139_v27 = vld [vmem:[%s2732_s17 + $0x8] sm:$0xff]   ;;  %v2140_v28 = vld [vmem:[%s2732_s17] sm:$0xff]  }
0x12ed   :  { %v2037_v30 = vpop.f32.mrf.mxu1  ;;  %2059 = vmatpush3.bf16.msra.mxu1 %v2139_v27 }
0x12ee   :  { %2197 = vpow2.f32 %v1358_v29  ;;  %v1831_v31 = vmul.f32 -1.702, %v1351_v13  ;;  %2060 = vmatprep.subr.bf16.mxu1 %v2213_v14 }
0x12f0   :  { %v1360_v32 = vmul.f32 1.442695, %v1831_v31 }
0x12f1   :  { %2061 = vmatpush3.bf16.msra.mxu1 %v2140_v28 }
0x12f2   :  { %2199 = vpow2.f32 %v1360_v32  ;;  %2066 = vmatprep.subr.mxu1 %v2213_v14  ;;  %v1858_v32 = vld [vmem:[%s2733_s15] ss:$0 sm:$0xff] }
0x12fb   :  { %v2198_v19 = vpop.eup %2197 }
0x12fc   :  { %v1362_v34 = vadd.f32 1.0, %v2198_v19 }
0x12fe   :  { %2201 = vrcp.f32 %v1362_v34 }
0x12ff   :  { %v2200_v35 = vpop.eup %2199 }
0x1300   :  { %v1363_v36 = vadd.f32 1.0, %v2200_v35  ;;  %v1859_v35 = vld [vmem:[%s2734_s16] ss:$0 sm:$0xff] }
0x1302   :  { %2203 = vrcp.f32 %v1363_v36 }
0x130b   :  { %v2202_v37 = vpop.eup %2201 }
0x130c   :  { %v1368_v40 = vmul.f32 %v2202_v37, %v1348_v25 }
0x130f   :  { %v2204_v39 = vpop.eup %2203 }
0x1310   :  { %v1369_v41 = vmul.f32 %v2204_v39, %v1351_v13 }
0x1312   :  { %v1370_v0 = vpack.c.bf16 %v1369_v41, %v1368_v40 }
0x1314   :  { %2055 = vmatmul.mubr.bf16.vlgmr.msra.gmra.mxu0 %v1370_v0 }
0x13d4   :  { %v1470_v43 = vpop.f32.mrf.mxu0 }
0x13d5   :  { %v1477_v45 = vadd.f32 %v1470_v43, %v2606_v33 }
0x13d6   :  { %v2056_v44 = vpop.f32.mrf.mxu0 }
0x13d7   :  { %v1487_v63 = vadd.f32 %v1857_v59, %v1477_v45 }
0x13d8   :  { %v1473_v47 = vpop.f32.mrf.mxu0 }
0x13d9   :  { %v1478_v48 = vadd.f32 %v1473_v47, %v2611_v38  ;;  %v1514_v51 = vmul.f32 %v1507_v26, %v1487_v63  ;;  %v1512_v52 = vmul.f32 %v1496_v46, %v1487_v63  ;;  %v1655_v63 = vld [vmem:[%s2735_s18] sm:$0x3] }
0x13da   :  { %v2057_v49 = vpop.f32.mrf.mxu0 }
0x13db   :  { %v1488_v53 = vadd.f32 %v1857_v59, %v1478_v48  ;;  %v1525_v56 = vsel %vm74_vm0, %v1514_v51, 0.0  ;;  %v1516_v57 = vsel %vm74_vm0, %v1512_v52, 0.0  ;;  %v1656_v48 = vmul.f32 %v1655_v63, %v1655_v63 }
0x13dd   :  { %v1513_v54 = vmul.f32 %v1500_v42, %v1488_v53  ;;  %v1515_v55 = vmul.f32 %v1511_v50, %v1488_v53  ;;  %v1657_v52 = vsel %vm1541_vm4, %v1656_v48, 0.0 }
0x13df   :  { %v1517_v58 = vsel %vm74_vm0, %v1513_v54, 0.0  ;;  %v1526_v33 = vsel %vm74_vm0, %v1515_v55, 0.0 }
0x13e0   :  { %v1518_v60 = vadd.f32 %v1517_v58, %v1516_v57  ;;  %v1527_v61 = vadd.f32 %v1526_v33, %v1525_v56 }
0x13e2   :  { %v1519_v62 = vrot.slane %v1518_v60, 4  ;;  %v1528_v2 = vrot.slane %v1527_v61, 4 }
0x13e4   :  { %v1520_v38 = vadd.f32 %v1519_v62, %v1518_v60  ;;  %v1529_v3 = vadd.f32 %v1528_v2, %v1527_v61 }
0x13e6   :  { %v1530_v4 = vrot.slane %v1529_v3, 2  ;;  %v1521_v5 = vrot.slane %v1520_v38, 2 }
0x13e8   :  { %v1531_v6 = vadd.f32 %v1530_v4, %v1529_v3  ;;  %v1522_v7 = vadd.f32 %v1521_v5, %v1520_v38 }
0x13ea   :  { %v1523_v8 = vrot.slane %v1522_v7, 1  ;;  %v1532_v9 = vrot.slane %v1531_v6, 1 }
0x13ec   :  { %v1524_v10 = vadd.f32 %v1523_v8, %v1522_v7  ;;  %v1533_v11 = vadd.f32 %v1532_v9, %v1531_v6 }
0x13ee   :  { %v1539_v12 = vsel %vm1538_vm3, %v1533_v11, %v1524_v10 }
0x13ef   :  { %v1542_v15 = vsel %vm1541_vm4, %v1539_v12, 0.0 }
0x13f0   :  { %1543 = vadd.xlane.f32.xlu0 %v1542_v15 }
0x1479   :  { %v1544_v16 = vpop.xlane.xlu0 %1543 }
0x147a   :  { %v1545_v17 = vmul.f32 0.03125, %v1544_v16 }
0x147c   :  { %v1547_v18 = vrot.slane %v1545_v17, 1  ;;  %v1550_v20 = vsub.f32 %v1524_v10, %v1545_v17 }
0x147e   :  { %v1551_v21 = vsub.f32 %v1533_v11, %v1547_v18  ;;  %v1552_v23 = vmul.f32 %v1550_v20, %v1550_v20 }
0x1480   :  { %v1553_v22 = vmul.f32 %v1551_v21, %v1551_v21 }
0x1482   :  { %v1556_v24 = vrot.slane %v1553_v22, 7 }
0x1484   :  { %v1557_v25 = vsel %vm1538_vm3, %v1556_v24, %v1552_v23 }
0x1485   :  { %v1559_v1 = vsel %vm1541_vm4, %v1557_v25, 0.0 }
0x1486   :  { %1560 = vadd.xlane.f32.xlu1 %v1559_v1 }
0x150f   :  { %v1561_v29 = vpop.xlane.xlu1 %1560 }
0x1510   :  { %v1562_v13 = vmul.f32 0.03125, %v1561_v29 }
0x1512   :  { %v1563_v30 = vadd.f32 1e-05, %v1562_v13 }
0x1514   :  { %2205 = vrsqrt.f32 %v1563_v30 }
0x1521   :  { %v2206_v31 = vpop.eup %2205 }
0x1522   :  { %v1566_v19 = vrot.slane %v2206_v31, 1  ;;  %v1569_v34 = vmul.f32 %v2206_v31, %v1550_v20 }
0x1524   :  { %v1570_v36 = vmul.f32 %v1566_v19, %v1551_v21  ;;  %v1577_v37 = vmul.f32 %v1858_v32, %v1569_v34 }
0x1526   :  { %v1578_v39 = vmul.f32 %v1858_v32, %v1570_v36  ;;  %v1585_v40 = vadd.f32 %v1859_v35, %v1577_v37 }
0x1528   :  { %v1586_v41 = vadd.f32 %v1859_v35, %v1578_v39  ;;  %v1587_v0 = vpack.c.bf16 %v1585_v40, %v1585_v40 }
0x152a   :  { %v1588_v42 = vpack.c.bf16 %v1586_v41, %v1586_v41  ;;  %v1595_v59 = vunpack.c.l.b16 %v1587_v0 }
0x152c   :  { %v1596_v43 = vunpack.c.l.b16 %v1588_v42 }
0x152e   :  { %v1597_v26 = vrot.slane %v1596_v43, 7 }
0x1530   :  { %v1598_v45 = vsel %vm1538_vm3, %v1597_v26, %v1595_v59 }
0x1531   :  { %v1599_v44 = vpack.c.b16 %v1598_v45, %v1598_v45 }
0x1533   :  { %2063 = vmatmul.mubr.msk.bf16.vlgmr.msra.gmra.mxu1 %vm74_vm0, %v1599_v44 }
0x1534   :  { %2068 = vmatprep.mubr.msk.f32.mxu1 %vm2214_vm1, %v2213_v14  ;;  %v25_v14 = vstv %s2736_s19 }
0x1535   :  { %26 = vst [vmem:[#allocation2] sm:$0x1] %v25_v14 }
0x153c   :  { %v1670_v54 = vld [vmem:[#allocation2] sm:$0x1] }
0x153d   :  { %2071 = vpush %v1670_v54 }
0x156e   :  { %s2072_s18 = spop %2071 }
0x156f   :  { %v1672_v55 = vstv %s2072_s18 }
0x1570   :  { %v1673_v56 = vmul.f32 1.442695, %v1672_v55 }
0x1572   :  { %2207 = vpow2.f32 %v1673_v56 }
0x157f   :  { %v2208_v57 = vpop.eup %2207 }
0x1580   :  { %2073 = vpush %v2208_v57 }
0x15b1   :  { %s2074_s19 = spop %2073 }
0x15b2   :  { %v1752_v4 = vstv %s2074_s19 }
0x15f3   :  { %v1649_v46 = vpop.f32.mrf.mxu1 }
0x15f4   :  { %v1663_v47 = vmul.f32 %v1649_v46, %v1649_v46 }
0x15f5   :  { %v2064_v49 = vpop.f32.mrf.mxu1 }
0x15f6   :  { %v1664_v50 = vsel %vm1541_vm4, %v1663_v47, 0.0 }
0x15f7   :  { %1665 = vadd.xlane.f32.xlu0 %v1664_v50  ;;  %v1652_v51 = vpop.f32.mrf.mxu1 }
0x15f9   :  { %v2065_v53 = vpop.f32.mrf.mxu1 }
0x15fb   :  { %1658 = vadd.xlane.f32.xlu0 %v1657_v52 }
0x1680   :  { %v1666_v58 = vpop.xlane.xlu0 %1665 }
0x1681   :  { %v1667_v33 = vadd.f32 1e-12, %v1666_v58 }
0x1683   :  { %2209 = vrsqrt.f32 %v1667_v33 }
0x1684   :  { %v1659_v60 = vpop.xlane.xlu0 %1658 }
0x1685   :  { %v1660_v61 = vadd.f32 1e-12, %v1659_v60 }
0x1687   :  { %2211 = vrsqrt.f32 %v1660_v61 }
0x1690   :  { %v2210_v62 = vpop.eup %2209 }
0x1691   :  { %v1669_v2 = vmul.f32 %v2210_v62, %v1649_v46 }
0x1693   :  { %2067 = vmatpush3.xpose.msk.msra.mxu1 %vm74_vm0, %v1669_v2 }
0x1694   :  { %v2212_v38 = vpop.eup %2211 }
0x1695   :  { %v1662_v3 = vmul.f32 %v2212_v38, %v1655_v63 }
0x1697   :  { %2069 = vmatmul.mubr.msk.f32.vlgmr.msra.gmra.mxu1 %vm74_vm0, %v1662_v3 }
0x1757   :  { %v1748_v5 = vpop.f32.mrf.mxu1 }
0x1758   :  { %v1753_v6 = vmul.f32 %v1752_v4, %v1748_v5 }
0x1759   :  { %v2070_v7 = vpop.f32.mrf.mxu1 }
0x175a   :  { %1755 = vst.msk [vmem:[%s2737_s20] sm:$0x3] %vm1754_vm5, %v1753_v6 }

// kernel: clip_forward.2
= control target key start
LH: loop header
LB: loop body
LE: loop exit
PB: predicated region body
PF: predicated region fallthrough
CT: control target
= control target key end

     0   :  { %vm73_vm0 = vcmask 261120   ;;  %vm3529_vm1 = vmmov 0   ;;  %s3530_s21 = smov 112   ;;  %vm413_vm2 = vcmask 130048   ;;  %vm571_vm3 = vcmask 326656   ;;  %s4536_s0 = inlined_call_operand.vmem [shape: f32[40,32], index: 0, kind: input, shape index: {}]   ;;  %s4537_s3 = inlined_call_operand.vmem [shape: f32[1,32], index: 3, kind: input, shape index: {}]   ;;  %s4538_s4 = inlined_call_operand.vmem [shape: f32[1,32], index: 4, kind: input, shape index: {}]   ;;  %s4539_s7 = inlined_call_operand.vmem [shape: bf16[2,32,96], index: 7, kind: input, shape index: {}]   ;;  %s4540_s5 = inlined_call_operand.vmem [shape: f32[2,1,32], index: 5, kind: input, shape index: {}]   ;;  %s4541_s6 = inlined_call_operand.vmem [shape: f32[2,1,32], index: 6, kind: input, shape index: {}]   ;;  %s4542_s8 = inlined_call_operand.vmem [shape: f32[2,1,96], index: 8, kind: input, shape index: {}]   ;;  %s4543_s1 = inlined_call_operand.vmem [shape: f32[40,40], index: 1, kind: input, shape index: {}]   ;;  %s4544_s9 = inlined_call_operand.vmem [shape: bf16[2,32,32], index: 9, kind: input, shape index: {}]   ;;  %s4545_s10 = inlined_call_operand.vmem [shape: f32[2,1,32], index: 10, kind: input, shape index: {}]   ;;  %s4546_s13 = inlined_call_operand.vmem [shape: bf16[2,32,128], index: 13, kind: input, shape index: {}]   ;;  %s4547_s11 = inlined_call_operand.vmem [shape: f32[2,1,32], index: 11, kind: input, shape index: {}]   ;;  %s4548_s12 = inlined_call_operand.vmem [shape: f32[2,1,32], index: 12, kind: input, shape index: {}]   ;;  %s4549_s15 = inlined_call_operand.vmem [shape: bf16[2,128,32], index: 15, kind: input, shape index: {}]   ;;  %s4550_s14 = inlined_call_operand.vmem [shape: f32[2,1,128], index: 14, kind: input, shape index: {}]   ;;  %s4551_s16 = inlined_call_operand.vmem [shape: f32[2,1,32], index: 16, kind: input, shape index: {}]   ;;  %s4552_s2 = inlined_call_operand.vmem [shape: f32[2,40], index: 2, kind: input, shape index: {}]   ;;  %s4553_s19 = inlined_call_operand.vmem [shape: bf16[32,32], index: 19, kind: input, shape index: {}]   ;;  %s4554_s17 = inlined_call_operand.vmem [shape: f32[1,32], index: 17, kind: input, shape index: {}]   ;;  %s4555_s18 = inlined_call_operand.vmem [shape: f32[1,32], index: 18, kind: input, shape index: {}]   ;;  %s4556_s20 = inlined_call_operand.vmem [shape: f32[2,32], index: 20, kind: output, shape index: {}]  }
   0x1   :  { %4560 = sst [smem:[#allocation2_spill]] %s4536_s0  ;;  %vm705_vm4 = vcmask 1043456   ;;  %vm2587_vm5 = vcmask 1041409   ;;  %vm2590_vm6 = vcmask 254976  }
   0x2   :  { %4561 = sst [smem:[#allocation3_spill]] %s4537_s3  ;;  %s3531_s3 = smov 96  }
   0x3   :  { %4562 = sst [smem:[#allocation4_spill]] %s4538_s4 }
   0x4   :  { %4563 = sst [smem:[#allocation5_spill]] %s4539_s7  ;;  %s3533_s7 = smov 16  }
   0x5   :  { %4564 = sst [smem:[#allocation6_spill]] %s4540_s5 }
   0x6   :  { %s4565_s23 = sld [smem:[#allocation2_spill]] }
   0x7   :  { %s4566_s0 = sld [smem:[#allocation3_spill]] }
   0x8   :  { %s4567_s22 = sld [smem:[#allocation4_spill]] }
   0x9   :  { %s4568_s4 = sld [smem:[#allocation5_spill]] }
   0xa   :  { %s4569_s28 = sld [smem:[#allocation6_spill]] }
   0xc   :  { %v66_v0 = vld [vmem:[%s4565_s23] sm:$0xff]  ;;  %v68_v1 = vld [vmem:[%s4565_s23 + $0x10] sm:$0xff]  ;;  %v67_v2 = vld [vmem:[%s4565_s23 + $0x8] sm:$0xff] }
   0xd   :  { %v74_v3 = vsel %vm73_vm0, %v66_v0, 0.0  ;;  %v80_v4 = vsel %vm73_vm0, %v68_v1, 0.0  ;;  %v69_v5 = vld [vmem:[%s4565_s23 + $0x18] sm:$0xff]  ;;  %v77_v6 = vsel %vm73_vm0, %v67_v2, 0.0  ;;  %v70_v8 = vld [vmem:[%s4565_s23 + $0x20] sm:$0xff] }
   0xe   :  { %75 = vadd.xlane.f32.xlu0 %v74_v3  ;;  %81 = vadd.xlane.f32.xlu1 %v80_v4  ;;  %v83_v7 = vsel %vm73_vm0, %v69_v5, 0.0  ;;  %v86_v9 = vsel %vm73_vm0, %v70_v8, 0.0  ;;  %v2709_v51 = vld [vmem:[%s4566_s0] ss:$0 sm:$0xff]  ;;  %s3532_s0 = smov 64  }
   0xf   :  { %v2710_v53 = vld [vmem:[%s4567_s22] ss:$0 sm:$0xff] }
  0x12   :  { %78 = vadd.xlane.f32.xlu0 %v77_v6  ;;  %84 = vadd.xlane.f32.xlu1 %v83_v7 }
  0x16   :  { %87 = vadd.xlane.f32.xlu0 %v86_v9 }
  0x97   :  { %v76_v10 = vpop.xlane.xlu0 %75  ;;  %v82_v11 = vpop.xlane.xlu1 %81 }
  0x98   :  { %v90_v12 = vmul.f32 0.03125, %v76_v10  ;;  %v92_v13 = vmul.f32 0.03125, %v82_v11 }
  0x9a   :  { %v95_v14 = vsub.f32 %v66_v0, %v90_v12  ;;  %v97_v15 = vsub.f32 %v68_v1, %v92_v13 }
  0x9b   :  { %v79_v16 = vpop.xlane.xlu0 %78  ;;  %v85_v17 = vpop.xlane.xlu1 %84 }
  0x9c   :  { %v91_v18 = vmul.f32 0.03125, %v79_v16  ;;  %v93_v19 = vmul.f32 0.03125, %v85_v17  ;;  %v100_v20 = vmul.f32 %v95_v14, %v95_v14  ;;  %v102_v21 = vmul.f32 %v97_v15, %v97_v15 }
  0x9e   :  { %v96_v22 = vsub.f32 %v67_v2, %v91_v18  ;;  %v98_v23 = vsub.f32 %v69_v5, %v93_v19  ;;  %v105_v24 = vsel %vm73_vm0, %v100_v20, 0.0  ;;  %v111_v27 = vsel %vm73_vm0, %v102_v21, 0.0 }
  0x9f   :  { %106 = vadd.xlane.f32.xlu1 %v105_v24  ;;  %v88_v25 = vpop.xlane.xlu0 %87 }
  0xa0   :  { %v94_v26 = vmul.f32 0.03125, %v88_v25  ;;  %v101_v28 = vmul.f32 %v96_v22, %v96_v22  ;;  %v103_v29 = vmul.f32 %v98_v23, %v98_v23 }
  0xa2   :  { %v99_v30 = vsub.f32 %v70_v8, %v94_v26  ;;  %v108_v31 = vsel %vm73_vm0, %v101_v28, 0.0  ;;  %v114_v32 = vsel %vm73_vm0, %v103_v29, 0.0 }
  0xa3   :  { %112 = vadd.xlane.f32.xlu1 %v111_v27  ;;  %109 = vadd.xlane.f32.xlu0 %v108_v31 }
  0xa4   :  { %v104_v33 = vmul.f32 %v99_v30, %v99_v30 }
  0xa6   :  { %v117_v34 = vsel %vm73_vm0, %v104_v33, 0.0 }
  0xa7   :  { %115 = vadd.xlane.f32.xlu0 %v114_v32  ;;  %118 = vadd.xlane.f32.xlu1 %v117_v34 }
 0x128   :  { %v107_v35 = vpop.xlane.xlu1 %106 }
 0x129   :  { %v120_v36 = vmul.f32 0.03125, %v107_v35 }
 0x12b   :  { %v125_v37 = vadd.f32 1e-05, %v120_v36 }
 0x12c   :  { %v113_v38 = vpop.xlane.xlu1 %112  ;;  %v110_v39 = vpop.xlane.xlu0 %109 }
 0x12d   :  { %3351 = vrsqrt.f32 %v125_v37  ;;  %v122_v40 = vmul.f32 0.03125, %v113_v38  ;;  %v121_v41 = vmul.f32 0.03125, %v110_v39  ;;  %v3528_v38 = vmov 0.0   ;;  %v3321_v39 = vld [vmem:[%s4568_s4 + $0x8] sm:$0xff]  }
 0x12e   :  { %2951 = vmatprep.subr.bf16.mxu1 %v3528_v38  ;;  %2955 = vmatprep.mubr.msk.bf16.mxu1 %vm3529_vm1, %v3528_v38 }
 0x12f   :  { %v127_v42 = vadd.f32 1e-05, %v122_v40  ;;  %v126_v43 = vadd.f32 1e-05, %v121_v41  ;;  %2985 = vmatprep.subr.bf16.mxu0 %v3528_v38  ;;  %2991 = vmatprep.mubr.msk.bf16.mxu0 %vm3529_vm1, %v3528_v38  ;;  %v3322_v40 = vld [vmem:[%s4568_s4] sm:$0xff]  }
 0x130   :  { %v119_v44 = vpop.xlane.xlu1 %118  ;;  %v116_v45 = vpop.xlane.xlu0 %115  ;;  %2952 = vmatpush3.bf16.msra.mxu1 %v3321_v39 }
 0x131   :  { %3353 = vrsqrt.f32 %v127_v42  ;;  %v124_v46 = vmul.f32 0.03125, %v119_v44  ;;  %v123_v47 = vmul.f32 0.03125, %v116_v45  ;;  %2953 = vmatprep.subr.bf16.mxu1 %v3528_v38 }
 0x132   :  { %3355 = vrsqrt.f32 %v126_v43 }
 0x133   :  { %v129_v48 = vadd.f32 1e-05, %v124_v46  ;;  %v128_v49 = vadd.f32 1e-05, %v123_v47 }
 0x134   :  { %2954 = vmatpush3.bf16.msra.mxu1 %v3322_v40 }
 0x135   :  { %3357 = vrsqrt.f32 %v129_v48  ;;  %2967 = vmatprep.subr.bf16.mxu1 %v3528_v38 }
 0x136   :  { %3359 = vrsqrt.f32 %v128_v49 }
 0x13a   :  { %v3352_v50 = vpop.eup %3351 }
 0x13b   :  { %v135_v52 = vmul.f32 %v3352_v50, %v95_v14 }
 0x13d   :  { %v146_v54 = vmul.f32 %v2709_v51, %v135_v52 }
 0x13e   :  { %v3354_v55 = vpop.eup %3353 }
 0x13f   :  { %v3356_v56 = vpop.eup %3355  ;;  %v3670_v57 = vadd.f32 %v2710_v53, %v146_v54  ;;  %v137_v58 = vmul.f32 %v3354_v55, %v97_v15 }
 0x140   :  { %v136_v59 = vmul.f32 %v3356_v56, %v96_v22 }
 0x141   :  { %v169_v60 = vsel %vm73_vm0, %v3670_v57, 0.0  ;;  %v148_v61 = vmul.f32 %v2709_v51, %v137_v58 }
 0x142   :  { %v3358_v62 = vpop.eup %3357  ;;  %170 = vadd.xlane.f32.xlu0 %v169_v60  ;;  %v147_v63 = vmul.f32 %v2709_v51, %v136_v59  ;;  %v2711_v59 = vld [vmem:[%s4569_s28] ss:$0 sm:$0xff] }
 0x143   :  { %v3360_v0 = vpop.eup %3359  ;;  %v3674_v1 = vadd.f32 %v2710_v53, %v148_v61  ;;  %v139_v2 = vmul.f32 %v3358_v62, %v99_v30 }
 0x144   :  { %v3676_v3 = vadd.f32 %v2710_v53, %v147_v63  ;;  %v138_v4 = vmul.f32 %v3360_v0, %v98_v23  ;;  %v2712_v0 = vld [vmem:[%s4541_s6] ss:$0 sm:$0xff] }
 0x145   :  { %v175_v5 = vsel %vm73_vm0, %v3674_v1, 0.0  ;;  %v150_v6 = vmul.f32 %v2709_v51, %v139_v2 }
 0x146   :  { %176 = vadd.xlane.f32.xlu0 %v175_v5  ;;  %v172_v7 = vsel %vm73_vm0, %v3676_v3, 0.0  ;;  %v149_v8 = vmul.f32 %v2709_v51, %v138_v4 }
 0x147   :  { %173 = vadd.xlane.f32.xlu1 %v172_v7  ;;  %v3682_v9 = vadd.f32 %v2710_v53, %v150_v6 }
 0x148   :  { %v3684_v10 = vadd.f32 %v2710_v53, %v149_v8 }
 0x149   :  { %v181_v11 = vsel %vm73_vm0, %v3682_v9, 0.0 }
 0x14a   :  { %182 = vadd.xlane.f32.xlu0 %v181_v11  ;;  %v178_v12 = vsel %vm73_vm0, %v3684_v10, 0.0 }
 0x14b   :  { %179 = vadd.xlane.f32.xlu1 %v178_v12 }
 0x1cb   :  { %v171_v13 = vpop.xlane.xlu0 %170 }
 0x1cc   :  { %v184_v14 = vmul.f32 0.03125, %v171_v13 }
 0x1ce   :  { %v3691_v15 = vsub.f32 %v3670_v57, %v184_v14 }
 0x1cf   :  { %v177_v16 = vpop.xlane.xlu0 %176 }
 0x1d0   :  { %v174_v17 = vpop.xlane.xlu1 %173  ;;  %v186_v18 = vmul.f32 0.03125, %v177_v16  ;;  %v194_v19 = vmul.f32 %v3691_v15, %v3691_v15 }
 0x1d1   :  { %v185_v20 = vmul.f32 0.03125, %v174_v17 }
 0x1d2   :  { %v3696_v21 = vsub.f32 %v3674_v1, %v186_v18  ;;  %v199_v22 = vsel %vm73_vm0, %v194_v19, 0.0 }
 0x1d3   :  { %v190_v23 = vsub.f32 %v3676_v3, %v185_v20  ;;  %200 = vadd.xlane.f32.xlu1 %v199_v22  ;;  %v183_v24 = vpop.xlane.xlu0 %182  ;;  %v2713_v22 = vld [vmem:[%s4542_s8] ss:$0 sm:$0xff] }
 0x1d4   :  { %v180_v25 = vpop.xlane.xlu1 %179  ;;  %v188_v26 = vmul.f32 0.03125, %v183_v24  ;;  %v196_v27 = vmul.f32 %v3696_v21, %v3696_v21 }
 0x1d5   :  { %v187_v28 = vmul.f32 0.03125, %v180_v25  ;;  %v195_v29 = vmul.f32 %v190_v23, %v190_v23 }
 0x1d6   :  { %v3703_v30 = vsub.f32 %v3682_v9, %v188_v26  ;;  %v205_v31 = vsel %vm73_vm0, %v196_v27, 0.0 }
 0x1d7   :  { %v192_v32 = vsub.f32 %v3684_v10, %v187_v28  ;;  %v202_v33 = vsel %vm73_vm0, %v195_v29, 0.0  ;;  %206 = vadd.xlane.f32.xlu1 %v205_v31 }
 0x1d8   :  { %203 = vadd.xlane.f32.xlu0 %v202_v33  ;;  %v198_v34 = vmul.f32 %v3703_v30, %v3703_v30 }
 0x1d9   :  { %v197_v35 = vmul.f32 %v192_v32, %v192_v32 }
 0x1da   :  { %v211_v36 = vsel %vm73_vm0, %v198_v34, 0.0 }
 0x1db   :  { %v208_v37 = vsel %vm73_vm0, %v197_v35, 0.0  ;;  %212 = vadd.xlane.f32.xlu1 %v211_v36 }
 0x1dc   :  { %209 = vadd.xlane.f32.xlu0 %v208_v37 }
 0x25c   :  { %v201_v41 = vpop.xlane.xlu1 %200 }
 0x25d   :  { %v214_v42 = vmul.f32 0.03125, %v201_v41 }
 0x25f   :  { %v219_v43 = vadd.f32 1e-05, %v214_v42 }
 0x260   :  { %v207_v44 = vpop.xlane.xlu1 %206 }
 0x261   :  { %3361 = vrsqrt.f32 %v219_v43  ;;  %v216_v45 = vmul.f32 0.03125, %v207_v44  ;;  %v204_v46 = vpop.xlane.xlu0 %203 }
 0x262   :  { %v215_v47 = vmul.f32 0.03125, %v204_v46 }
 0x263   :  { %v221_v48 = vadd.f32 1e-05, %v216_v45 }
 0x264   :  { %v220_v49 = vadd.f32 1e-05, %v215_v47  ;;  %v213_v50 = vpop.xlane.xlu1 %212 }
 0x265   :  { %v210_v51 = vpop.xlane.xlu0 %209  ;;  %v218_v52 = vmul.f32 0.03125, %v213_v50 }
 0x266   :  { %3363 = vrsqrt.f32 %v220_v49  ;;  %v217_v53 = vmul.f32 0.03125, %v210_v51 }
 0x267   :  { %3365 = vrsqrt.f32 %v221_v48  ;;  %v223_v55 = vadd.f32 1e-05, %v218_v52 }
 0x268   :  { %v222_v54 = vadd.f32 1e-05, %v217_v53 }
 0x26a   :  { %3367 = vrsqrt.f32 %v222_v54 }
 0x26b   :  { %3369 = vrsqrt.f32 %v223_v55 }
 0x26e   :  { %v3362_v56 = vpop.eup %3361 }
 0x26f   :  { %v229_v58 = vmul.f32 %v3362_v56, %v3691_v15 }
 0x271   :  { %v240_v62 = vmul.f32 %v2711_v59, %v229_v58 }
 0x273   :  { %v3364_v60 = vpop.eup %3363  ;;  %v251_v5 = vadd.f32 %v2712_v0, %v240_v62 }
 0x274   :  { %v230_v61 = vmul.f32 %v3364_v60, %v190_v23  ;;  %v3366_v63 = vpop.eup %3365 }
 0x275   :  { %v231_v7 = vmul.f32 %v3366_v63, %v3696_v21 }
 0x276   :  { %v241_v2 = vmul.f32 %v2711_v59, %v230_v61 }
 0x277   :  { %v3368_v4 = vpop.eup %3367  ;;  %v242_v14 = vmul.f32 %v2711_v59, %v231_v7 }
 0x278   :  { %v252_v6 = vadd.f32 %v2712_v0, %v241_v2  ;;  %v232_v8 = vmul.f32 %v3368_v4, %v192_v32  ;;  %v3370_v13 = vpop.eup %3369 }
 0x279   :  { %v233_v16 = vmul.f32 %v3370_v13, %v3703_v30  ;;  %v253_v17 = vadd.f32 %v2712_v0, %v242_v14 }
 0x27a   :  { %v256_v11 = vpack.c.bf16 %v252_v6, %v251_v5  ;;  %v243_v12 = vmul.f32 %v2711_v59, %v232_v8 }
 0x27b   :  { %v244_v19 = vmul.f32 %v2711_v59, %v233_v16 }
 0x27c   :  { %2956 = vmatmul.mubr.msk.bf16.vlgmr.msra.gmra.mxu1 %vm73_vm0, %v256_v11  ;;  %v254_v15 = vadd.f32 %v2712_v0, %v243_v12 }
 0x27d   :  { %2959 = vmatprep.mubr.msk.bf16.mxu1 %vm3529_vm1, %v3528_v38  ;;  %v255_v20 = vadd.f32 %v2712_v0, %v244_v19 }
 0x27e   :  { %v257_v18 = vpack.c.bf16 %v254_v15, %v253_v17 }
 0x27f   :  { %v258_v21 = vpack.c.bf16 %v255_v20, %v255_v20 }
 0x284   :  { %2960 = vmatmul.mubr.msk.bf16.gmra.mxu1 %vm73_vm0, %v257_v18 }
 0x285   :  { %2963 = vmatprep.mubr.msk.bf16.mxu1 %vm3529_vm1, %v3528_v38 }
 0x28c   :  { %2964 = vmatmul.mubr.msk.bf16.gmra.mxu1 %vm73_vm0, %v258_v21 }
 0x28d   :  { %2973 = vmatprep.mubr.msk.bf16.mxu1 %vm3529_vm1, %v3528_v38 }
 0x33c   :  { %v325_v23 = vpop.f32.mrf.mxu1 }
 0x33d   :  { %v326_v25 = vadd.f32 %v2713_v22, %v325_v23 }
 0x33e   :  { %v2957_v24 = vpop.f32.mrf.mxu1 }
 0x33f   :  { %v3747_v29 = vmul.f32 0.25, %v326_v25 }
 0x340   :  { %v328_v26 = vpop.f32.mrf.mxu1 }
 0x341   :  { %v329_v27 = vadd.f32 %v2713_v22, %v328_v26 }
 0x342   :  { %v2958_v28 = vpop.f32.mrf.mxu1 }
 0x343   :  { %v3749_v30 = vmul.f32 0.25, %v329_v27  ;;  %v3751_v31 = vpack.c.bf16 %v329_v27, %v326_v25  ;;  %v3266_v50 = vpack.i.bf16 %v329_v27, %v326_v25 }
 0x344   :  { %v333_v32 = vpop.f32.mrf.mxu1 }
 0x345   :  { %v392_v33 = vpack.c.bf16 %v3749_v30, %v3747_v29  ;;  %v3271_v34 = vpack.i.bf16 %v3749_v30, %v3747_v29  ;;  %v334_v36 = vadd.f32 %v2713_v22, %v333_v32  ;;  %v162_v29 = vld [vmem:[%s4543_s1] sm:$0xff] }
 0x346   :  { %v2961_v35 = vpop.f32.mrf.mxu1 }
 0x347   :  { %v3757_v41 = vmul.f32 0.25, %v334_v36 }
 0x348   :  { %v336_v37 = vpop.f32.mrf.mxu1 }
 0x349   :  { %v337_v39 = vadd.f32 %v2713_v22, %v336_v37 }
 0x34a   :  { %v2962_v40 = vpop.f32.mrf.mxu1 }
 0x34b   :  { %v3759_v42 = vmul.f32 0.25, %v337_v39  ;;  %v3261_v43 = vpack.i.bf16 %v337_v39, %v334_v36  ;;  %v3761_v44 = vpack.c.bf16 %v337_v39, %v334_v36  ;;  %v164_v40 = vld [vmem:[%s4543_s1 + $0x10] sm:$0xff] }
 0x34c   :  { %v341_v45 = vpop.f32.mrf.mxu1 }
 0x34d   :  { %v393_v46 = vpack.c.bf16 %v3759_v42, %v3757_v41  ;;  %v342_v47 = vadd.f32 %v2713_v22, %v341_v45  ;;  %3262 = vrot.lane.b32.xlu1 %v3261_v43, %s3530_s21  ;;  %v3276_v48 = vpack.i.bf16 %v3759_v42, %v3757_v41 }
 0x34e   :  { %v2965_v49 = vpop.f32.mrf.mxu1 }
 0x34f   :  { %385 = vrot.lane.b32.xlu0 %v342_v47, %s3530_s21  ;;  %v351_v0 = vmul.f32 0.25, %v342_v47  ;;  %v3785_v2 = vpack.c.bf16 %v342_v47, %v342_v47 }
 0x350   :  { %v344_v51 = vpop.f32.mrf.mxu1 }
 0x351   :  { %3267 = vrot.lane.b32.xlu1 %v3266_v50, %s3530_s21  ;;  %v394_v28 = vpack.c.bf16 %v351_v0, %v351_v0 }
 0x352   :  { %v2966_v52 = vpop.f32.mrf.mxu1 }
 0x3bf   :  { %v3263_v53 = vpop.permute.xlu1 %3262 }
 0x3c0   :  { %v3265_v54 = vunpack.i.h.bf16 %v3263_v53  ;;  %v3264_v55 = vunpack.i.l.bf16 %v3263_v53 }
 0x3c1   :  { %v386_v56 = vpop.permute.xlu0 %385 }
 0x3c2   :  { %v3770_v58 = vpack.c.bf16 %v386_v56, %v386_v56  ;;  %v3772_v59 = vpack.c.bf16 %v3265_v54, %v3264_v55  ;;  %v166_v54 = vld [vmem:[%s4543_s1 + $0x20] sm:$0xff] }
 0x3c3   :  { %v3268_v60 = vpop.permute.xlu1 %3267 }
 0x3c4   :  { %v3270_v61 = vunpack.i.h.bf16 %v3268_v60  ;;  %v3269_v62 = vunpack.i.l.bf16 %v3268_v60  ;;  %493 = vrot.lane.b32.xlu0 %v3772_v59, %s3531_s3  ;;  %495 = vrot.lane.b32.xlu1 %v3770_v58, %s3531_s3 }
 0x3c6   :  { %v3778_v63 = vpack.c.bf16 %v3270_v61, %v3269_v62 }
 0x3c8   :  { %3272 = vrot.lane.b32.xlu0 %v3271_v34, %s3530_s21  ;;  %491 = vrot.lane.b32.xlu1 %v3778_v63, %s3531_s3  ;;  %v163_v34 = vld [vmem:[%s4543_s1 + $0x8] sm:$0xff] }
 0x3cc   :  { %3277 = vrot.lane.b32.xlu1 %v3276_v48, %s3530_s21  ;;  %365 = vrot.lane.b32.xlu0 %v351_v0, %s3530_s21 }
 0x3d0   :  { %411 = vrot.lane.b32.xlu1 %v3785_v2, %s3531_s3  ;;  %409 = vrot.lane.b32.xlu0 %v3761_v44, %s3531_s3 }
 0x3d4   :  { %407 = vrot.lane.b32.xlu1 %v3751_v31, %s3531_s3 }
 0x436   :  { %v496_v4 = vpop.permute.xlu1 %495  ;;  %v494_v5 = vpop.permute.xlu0 %493 }
 0x437   :  { %v513_v6 = vsel %vm413_vm2, %v496_v4, 0  ;;  %v510_v12 = vsel %vm413_vm2, %v494_v5, 0 }
 0x438   :  { %2986 = vmatpush3.bf16.xpose.msra.mxu0 %v513_v6 }
 0x439   :  { %2987 = vmatprep.subr.bf16.mxu0 %v3528_v38 }
 0x43a   :  { %v492_v7 = vpop.permute.xlu1 %491  ;;  %v3273_v8 = vpop.permute.xlu0 %3272 }
 0x43b   :  { %v507_v16 = vsel %vm413_vm2, %v492_v7, 0  ;;  %v3275_v18 = vunpack.i.h.bf16 %v3273_v8  ;;  %v3274_v19 = vunpack.i.l.bf16 %v3273_v8 }
 0x43d   :  { %v395_v21 = vpack.c.bf16 %v3275_v18, %v3274_v19 }
 0x43e   :  { %v3278_v11 = vpop.permute.xlu1 %3277  ;;  %v366_v13 = vpop.permute.xlu0 %365 }
 0x43f   :  { %v3280_v23 = vunpack.i.h.bf16 %v3278_v11  ;;  %v3279_v24 = vunpack.i.l.bf16 %v3278_v11  ;;  %v397_v27 = vpack.c.bf16 %v366_v13, %v366_v13 }
 0x440   :  { %2988 = vmatpush3.bf16.xpose.msra.mxu0 %v510_v12 }
 0x441   :  { %2989 = vmatprep.subr.bf16.mxu0 %v3528_v38  ;;  %v396_v26 = vpack.c.bf16 %v3280_v23, %v3279_v24 }
 0x442   :  { %v412_v14 = vpop.permute.xlu1 %411  ;;  %v410_v17 = vpop.permute.xlu0 %409 }
 0x443   :  { %v430_v15 = vsel %vm413_vm2, %v412_v14, 0  ;;  %v427_v20 = vsel %vm413_vm2, %v410_v17, 0 }
 0x444   :  { %2968 = vmatpush3.bf16.xpose.msra.mxu1 %v430_v15 }
 0x445   :  { %2969 = vmatprep.subr.bf16.mxu1 %v3528_v38 }
 0x446   :  { %v408_v22 = vpop.permute.xlu1 %407 }
 0x447   :  { %v424_v25 = vsel %vm413_vm2, %v408_v22, 0 }
 0x448   :  { %2990 = vmatpush3.bf16.xpose.msra.mxu0 %v507_v16 }
 0x449   :  { %3021 = vmatprep.subr.bf16.mxu0 %v3528_v38 }
 0x44c   :  { %2970 = vmatpush3.bf16.xpose.msra.mxu1 %v427_v20 }
 0x44d   :  { %2971 = vmatprep.subr.bf16.mxu1 %v3528_v38 }
 0x44f   :  { %2992 = vmatmul.mubr.msk.bf16.vlgmr.msra.gmra.mxu0 %vm413_vm2, %v395_v21 }
 0x450   :  { %2995 = vmatprep.mubr.msk.bf16.mxu0 %vm3529_vm1, %v3528_v38 }
 0x454   :  { %2972 = vmatpush3.bf16.xpose.msra.mxu1 %v424_v25 }
 0x455   :  { %3003 = vmatprep.subr.bf16.mxu1 %v3528_v38 }
 0x457   :  { %2996 = vmatmul.mubr.msk.bf16.gmra.mxu0 %vm413_vm2, %v396_v26 }
 0x458   :  { %2999 = vmatprep.mubr.msk.bf16.mxu0 %vm3529_vm1, %v3528_v38 }
 0x45b   :  { %2974 = vmatmul.mubr.msk.bf16.vlgmr.msra.gmra.mxu1 %vm413_vm2, %v392_v33 }
 0x45c   :  { %2977 = vmatprep.mubr.msk.bf16.mxu1 %vm3529_vm1, %v3528_v38 }
 0x45f   :  { %3000 = vmatmul.mubr.msk.bf16.gmra.mxu0 %vm413_vm2, %v397_v27 }
 0x460   :  { %3027 = vmatprep.mubr.msk.bf16.mxu0 %vm3529_vm1, %v3528_v38 }
 0x463   :  { %2978 = vmatmul.mubr.msk.bf16.gmra.mxu1 %vm413_vm2, %v393_v46  ;;  %v165_v46 = vld [vmem:[%s4543_s1 + $0x18] sm:$0xff] }
 0x464   :  { %2981 = vmatprep.mubr.msk.bf16.mxu1 %vm3529_vm1, %v3528_v38 }
 0x46b   :  { %2982 = vmatmul.mubr.msk.bf16.gmra.mxu1 %vm413_vm2, %v394_v28 }
 0x46c   :  { %3009 = vmatprep.mubr.msk.bf16.mxu1 %vm3529_vm1, %v3528_v38 }
 0x50f   :  { %v549_v30 = vpop.f32.mrf.mxu0 }
 0x510   :  { %v550_v32 = vadd.f32 %v549_v30, %v162_v29 }
 0x511   :  { %v2993_v33 = vpop.f32.mrf.mxu0 }
 0x512   :  { %v587_v35 = vsel %vm571_vm3, %v550_v32, -inf }
 0x513   :  { %v552_v36 = vpop.f32.mrf.mxu0  ;;  %588 = vmax.xlane.f32.xlu0 %v587_v35 }
 0x514   :  { %v553_v37 = vadd.f32 %v552_v36, %v163_v34 }
 0x515   :  { %v2994_v39 = vpop.f32.mrf.mxu0 }
 0x516   :  { %v590_v41 = vsel %vm571_vm3, %v553_v37, -inf }
 0x517   :  { %v557_v42 = vpop.f32.mrf.mxu0  ;;  %591 = vmax.xlane.f32.xlu1 %v590_v41 }
 0x518   :  { %v558_v43 = vadd.f32 %v557_v42, %v164_v40 }
 0x519   :  { %v2997_v45 = vpop.f32.mrf.mxu0 }
 0x51a   :  { %v593_v47 = vsel %vm571_vm3, %v558_v43, -inf }
 0x51b   :  { %v560_v48 = vpop.f32.mrf.mxu0  ;;  %594 = vmax.xlane.f32.xlu0 %v593_v47  ;;  %v466_v49 = vpop.f32.mrf.mxu1 }
 0x51c   :  { %v3844_v50 = vadd.f32 %v560_v48, %v165_v46  ;;  %v3846_v51 = vadd.f32 %v466_v49, %v162_v29 }
 0x51d   :  { %v2975_v52 = vpop.f32.mrf.mxu1  ;;  %v2998_v53 = vpop.f32.mrf.mxu0 }
 0x51e   :  { %v596_v55 = vsel %vm571_vm3, %v3844_v50, -inf  ;;  %v572_v56 = vsel %vm571_vm3, %v3846_v51, -inf }
 0x51f   :  { %597 = vmax.xlane.f32.xlu0 %v596_v55  ;;  %v565_v60 = vpop.f32.mrf.mxu0  ;;  %573 = vmax.xlane.f32.xlu1 %v572_v56  ;;  %v469_v61 = vpop.f32.mrf.mxu1 }
 0x520   :  { %v3855_v62 = vadd.f32 %v565_v60, %v166_v54  ;;  %v470_v5 = vadd.f32 %v469_v61, %v163_v34 }
 0x521   :  { %v2976_v0 = vpop.f32.mrf.mxu1  ;;  %v3001_v4 = vpop.f32.mrf.mxu0 }
 0x522   :  { %v599_v6 = vsel %vm571_vm3, %v3855_v62, -inf  ;;  %v575_v14 = vsel %vm571_vm3, %v470_v5, -inf }
 0x523   :  { %600 = vmax.xlane.f32.xlu0 %v599_v6  ;;  %v474_v7 = vpop.f32.mrf.mxu1  ;;  %v568_v8 = vpop.f32.mrf.mxu0 }
 0x524   :  { %v475_v11 = vadd.f32 %v474_v7, %v164_v40 }
 0x525   :  { %v2979_v12 = vpop.f32.mrf.mxu1  ;;  %v3002_v13 = vpop.f32.mrf.mxu0 }
 0x526   :  { %v578_v15 = vsel %vm571_vm3, %v475_v11, -inf }
 0x527   :  { %576 = vmax.xlane.f32.xlu0 %v575_v14  ;;  %579 = vmax.xlane.f32.xlu1 %v578_v15  ;;  %v477_v16 = vpop.f32.mrf.mxu1 }
 0x528   :  { %v3861_v17 = vadd.f32 %v477_v16, %v165_v46 }
 0x529   :  { %v2980_v18 = vpop.f32.mrf.mxu1 }
 0x52a   :  { %v581_v19 = vsel %vm571_vm3, %v3861_v17, -inf }
 0x52b   :  { %582 = vmax.xlane.f32.xlu0 %v581_v19  ;;  %v482_v20 = vpop.f32.mrf.mxu1 }
 0x52c   :  { %v3865_v21 = vadd.f32 %v482_v20, %v166_v54 }
 0x52d   :  { %v2983_v22 = vpop.f32.mrf.mxu1 }
 0x52e   :  { %v584_v23 = vsel %vm571_vm3, %v3865_v21, -inf }
 0x52f   :  { %585 = vmax.xlane.f32.xlu1 %v584_v23  ;;  %v485_v24 = vpop.f32.mrf.mxu1 }
 0x531   :  { %v2984_v25 = vpop.f32.mrf.mxu1 }
 0x59c   :  { %v589_v26 = vpop.xlane.xlu0 %588 }
 0x59d   :  { %v607_v27 = vsub.f32 %v550_v32, %v589_v26 }
 0x59f   :  { %v622_v28 = vmul.f32 1.442695, %v607_v27 }
 0x5a0   :  { %v592_v29 = vpop.xlane.xlu1 %591 }
 0x5a1   :  { %3371 = vpow2.f32 %v622_v28  ;;  %v608_v30 = vsub.f32 %v553_v37, %v592_v29 }
 0x5a3   :  { %v624_v33 = vmul.f32 1.442695, %v608_v30 }
 0x5a4   :  { %v595_v34 = vpop.xlane.xlu0 %594 }
 0x5a5   :  { %3373 = vpow2.f32 %v624_v33  ;;  %v609_v35 = vsub.f32 %v558_v43, %v595_v34 }
 0x5a7   :  { %v626_v36 = vmul.f32 1.442695, %v609_v35 }
 0x5a8   :  { %v598_v43 = vpop.xlane.xlu0 %597  ;;  %v574_v48 = vpop.xlane.xlu1 %573 }
 0x5a9   :  { %3375 = vpow2.f32 %v626_v36  ;;  %v610_v45 = vsub.f32 %v3844_v50, %v598_v43  ;;  %v602_v49 = vsub.f32 %v3846_v51, %v574_v48 }
 0x5ab   :  { %v628_v47 = vmul.f32 1.442695, %v610_v45  ;;  %v612_v53 = vmul.f32 1.442695, %v602_v49 }
 0x5ac   :  { %v601_v46 = vpop.xlane.xlu0 %600 }
 0x5ad   :  { %3377 = vpow2.f32 %v628_v47  ;;  %v611_v7 = vsub.f32 %v3855_v62, %v601_v46 }
 0x5ae   :  { %v3869_v39 = vpop.eup %3371  ;;  %3379 = vpow2.f32 %v612_v53 }
 0x5af   :  { %v647_v40 = vsel %vm571_vm3, %v3869_v39, 0.0 }
 0x5b0   :  { %648 = vadd.xlane.f32.xlu1 %v647_v40  ;;  %v577_v52 = vpop.xlane.xlu0 %576  ;;  %v580_v55 = vpop.xlane.xlu1 %579 }
 0x5b1   :  { %v603_v54 = vsub.f32 %v470_v5, %v577_v52  ;;  %v604_v60 = vsub.f32 %v475_v11, %v580_v55  ;;  %v630_v11 = vmul.f32 1.442695, %v611_v7 }
 0x5b2   :  { %v3873_v41 = vpop.eup %3373 }
 0x5b3   :  { %v650_v32 = vsel %vm571_vm3, %v3873_v41, 0.0  ;;  %v614_v56 = vmul.f32 1.442695, %v603_v54 }
 0x5b4   :  { %651 = vadd.xlane.f32.xlu0 %v650_v32  ;;  %v583_v8 = vpop.xlane.xlu0 %582 }
 0x5b5   :  { %3381 = vpow2.f32 %v614_v56  ;;  %v605_v12 = vsub.f32 %v3861_v17, %v583_v8  ;;  %v3324_v8 = vld [vmem:[%s4544_s9] sm:$0xff]  }
 0x5b6   :  { %v3877_v42 = vpop.eup %3375 }
 0x5b7   :  { %v653_v37 = vsel %vm571_vm3, %v3877_v42, 0.0  ;;  %v618_v13 = vmul.f32 1.442695, %v605_v12 }
 0x5b8   :  { %654 = vadd.xlane.f32.xlu0 %v653_v37 }
 0x5ba   :  { %v3887_v61 = vpop.eup %3377 }
 0x5bb   :  { %v3891_v50 = vpop.eup %3379 }
 0x5bc   :  { %v632_v51 = vsel %vm571_vm3, %v3891_v50, 0.0 }
 0x5c1   :  { %767 = vrot.lane.b32.xlu1 %v3772_v59, %s3532_s0  ;;  %v616_v59 = vmul.f32 1.442695, %v604_v60 }
 0x5c2   :  { %v3895_v0 = vpop.eup %3381 }
 0x5c3   :  { %3383 = vpow2.f32 %v616_v59  ;;  %v635_v4 = vsel %vm571_vm3, %v3895_v0, 0.0 }
 0x5c4   :  { %3385 = vpow2.f32 %v630_v11 }
 0x5c5   :  { %3387 = vpow2.f32 %v618_v13 }
 0x5ce   :  { %769 = vrot.lane.b32.xlu0 %v3770_v58, %s3532_s0  ;;  %v656_v58 = vsel %vm571_vm3, %v3887_v61, 0.0 }
 0x5d0   :  { %v3899_v5 = vpop.eup %3383 }
 0x5d1   :  { %v638_v6 = vsel %vm571_vm3, %v3899_v5, 0.0  ;;  %v3909_v14 = vpop.eup %3385 }
 0x5d2   :  { %v659_v15 = vsel %vm571_vm3, %v3909_v14, 0.0  ;;  %v3913_v16 = vpop.eup %3387 }
 0x5e5   :  { %657 = vadd.xlane.f32.xlu1 %v656_v58 }
 0x5ed   :  { %633 = vadd.xlane.f32.xlu0 %v632_v51 }
 0x5f1   :  { %636 = vadd.xlane.f32.xlu0 %v635_v4 }
 0x5f5   :  { %639 = vadd.xlane.f32.xlu0 %v638_v6 }
 0x5f6   :  { %765 = vrot.lane.b32.xlu1 %v3778_v63, %s3532_s0  ;;  %v641_v63 = vsel %vm571_vm3, %v3913_v16, 0.0 }
 0x60b   :  { %692 = vrot.lane.b32.xlu0 %v3785_v2, %s3532_s0  ;;  %v586_v2 = vpop.xlane.xlu1 %585 }
 0x60c   :  { %v606_v17 = vsub.f32 %v3865_v21, %v586_v2 }
 0x60e   :  { %v620_v19 = vmul.f32 1.442695, %v606_v17 }
 0x610   :  { %3389 = vpow2.f32 %v620_v19 }
 0x61a   :  { %660 = vadd.xlane.f32.xlu1 %v659_v15 }
 0x61e   :  { %642 = vadd.xlane.f32.xlu1 %v641_v63 }
 0x62f   :  { %690 = vrot.lane.b32.xlu1 %v3761_v44, %s3532_s0 }
 0x633   :  { %688 = vrot.lane.b32.xlu1 %v3751_v31, %s3532_s0  ;;  %v3925_v31 = vpop.eup %3389 }
 0x634   :  { %v644_v44 = vsel %vm571_vm3, %v3925_v31, 0.0 }
 0x639   :  { %v649_v20 = vpop.xlane.xlu1 %648 }
 0x63d   :  { %v652_v62 = vpop.xlane.xlu0 %651  ;;  %v768_v24 = vpop.permute.xlu1 %767 }
 0x63e   :  { %3391 = vrcp.f32 %v652_v62 }
 0x63f   :  { %3393 = vrcp.f32 %v649_v20 }
 0x641   :  { %v655_v18 = vpop.xlane.xlu0 %654 }
 0x642   :  { %3395 = vrcp.f32 %v655_v18 }
 0x645   :  { %v770_v22 = vpop.permute.xlu0 %769 }
 0x646   :  { %v783_v23 = vsel %vm705_vm4, %v770_v22, 0 }
 0x647   :  { %3022 = vmatpush3.bf16.msra.mxu0 %v783_v23 }
 0x648   :  { %3023 = vmatprep.subr.bf16.mxu0 %v3528_v38 }
 0x64b   :  { %3024 = vmatpush3.bf16.msra.mxu0 %v768_v24  ;;  %v3392_v21 = vpop.eup %3391 }
 0x64c   :  { %3025 = vmatprep.subr.bf16.mxu0 %v3528_v38  ;;  %v3394_v26 = vpop.eup %3393  ;;  %v678_v27 = vmul.f32 %v3392_v21, %v3873_v41 }
 0x64d   :  { %v677_v28 = vmul.f32 %v3394_v26, %v3869_v39 }
 0x64f   :  { %v685_v30 = vpack.c.bf16 %v678_v27, %v677_v28  ;;  %v3396_v34 = vpop.eup %3395 }
 0x650   :  { %v679_v40 = vmul.f32 %v3396_v34, %v3877_v42 }
 0x657   :  { %645 = vadd.xlane.f32.xlu1 %v644_v44 }
 0x66e   :  { %v658_v25 = vpop.xlane.xlu1 %657 }
 0x66f   :  { %3397 = vrcp.f32 %v658_v25 }
 0x672   :  { %v766_v29 = vpop.permute.xlu1 %765 }
 0x673   :  { %3026 = vmatpush3.bf16.msra.mxu0 %v766_v29 }
 0x674   :  { %3055 = vmatprep.subr.bf16.mxu0 %v3528_v38 }
 0x676   :  { %v634_v33 = vpop.xlane.xlu0 %633  ;;  %3028 = vmatmul.mubr.msk.bf16.vlgmr.msra.gmra.mxu0 %vm571_vm3, %v685_v30 }
 0x677   :  { %3031 = vmatprep.mubr.msk.bf16.mxu0 %vm3529_vm1, %v3528_v38 }
 0x67a   :  { %v637_v35 = vpop.xlane.xlu0 %636 }
 0x67b   :  { %3399 = vrcp.f32 %v637_v35 }
 0x67c   :  { %v3398_v36 = vpop.eup %3397  ;;  %3401 = vrcp.f32 %v634_v33 }
 0x67d   :  { %v680_v41 = vmul.f32 %v3398_v36, %v3887_v61 }
 0x67e   :  { %v640_v32 = vpop.xlane.xlu0 %639 }
 0x67f   :  { %v686_v39 = vpack.c.bf16 %v680_v41, %v679_v40 }
 0x681   :  { %3032 = vmatmul.mubr.msk.bf16.gmra.mxu0 %vm571_vm3, %v686_v39 }
 0x682   :  { %v693_v37 = vpop.permute.xlu0 %692  ;;  %3035 = vmatprep.mubr.msk.bf16.mxu0 %vm3529_vm1, %v3528_v38 }
 0x683   :  { %v707_v43 = vsel %vm705_vm4, %v693_v37, 0 }
 0x684   :  { %3004 = vmatpush3.bf16.msra.mxu1 %v707_v43 }
 0x685   :  { %3005 = vmatprep.subr.bf16.mxu1 %v3528_v38 }
 0x688   :  { %v3400_v46 = vpop.eup %3399 }
 0x689   :  { %v3402_v48 = vpop.eup %3401  ;;  %v673_v49 = vmul.f32 %v3400_v46, %v3895_v0 }
 0x68a   :  { %v672_v52 = vmul.f32 %v3402_v48, %v3891_v50 }
 0x68c   :  { %v682_v55 = vpack.c.bf16 %v673_v49, %v672_v52 }
 0x6a3   :  { %v661_v45 = vpop.xlane.xlu1 %660 }
 0x6a4   :  { %3403 = vrcp.f32 %v661_v45 }
 0x6a5   :  { %3405 = vrcp.f32 %v640_v32 }
 0x6a7   :  { %v643_v42 = vpop.xlane.xlu1 %642 }
 0x6a8   :  { %3407 = vrcp.f32 %v643_v42 }
 0x6ab   :  { %v691_v47 = vpop.permute.xlu1 %690 }
 0x6ac   :  { %3006 = vmatpush3.bf16.msra.mxu1 %v691_v47 }
 0x6ad   :  { %3007 = vmatprep.subr.bf16.mxu1 %v3528_v38 }
 0x6af   :  { %v689_v53 = vpop.permute.xlu1 %688 }
 0x6b0   :  { %3008 = vmatpush3.bf16.msra.mxu1 %v689_v53  ;;  %v2736_v53 = vld [vmem:[%s4545_s10] ss:$0 sm:$0xff] }
 0x6b1   :  { %v3404_v54 = vpop.eup %3403  ;;  %3039 = vmatprep.subr.bf16.mxu1 %v3528_v38 }
 0x6b2   :  { %v681_v56 = vmul.f32 %v3404_v54, %v3909_v14  ;;  %v3406_v60 = vpop.eup %3405 }
 0x6b3   :  { %3010 = vmatmul.mubr.msk.bf16.vlgmr.msra.gmra.mxu1 %vm571_vm3, %v682_v55  ;;  %v674_v58 = vmul.f32 %v3406_v60, %v3899_v5  ;;  %v3323_v5 = vld [vmem:[%s4544_s9 + $0x8] sm:$0xff]  }
 0x6b4   :  { %v687_v59 = vpack.c.bf16 %v681_v56, %v681_v56  ;;  %3013 = vmatprep.mubr.msk.bf16.mxu1 %vm3529_vm1, %v3528_v38  ;;  %3040 = vmatpush3.bf16.msra.mxu1 %v3323_v5 }
 0x6b5   :  { %v3408_v61 = vpop.eup %3407  ;;  %3041 = vmatprep.subr.bf16.mxu1 %v3528_v38 }
 0x6b6   :  { %3036 = vmatmul.mubr.msk.bf16.gmra.mxu0 %vm571_vm3, %v687_v59  ;;  %v675_v50 = vmul.f32 %v3408_v61, %v3913_v16 }
 0x6b7   :  { %3059 = vmatprep.mubr.msk.bf16.mxu0 %vm3529_vm1, %v3528_v38 }
 0x6b8   :  { %v683_v51 = vpack.c.bf16 %v675_v50, %v674_v58  ;;  %3042 = vmatpush3.bf16.msra.mxu1 %v3324_v8 }
 0x6b9   :  { %3071 = vmatprep.subr.bf16.mxu1 %v3528_v38 }
 0x6bb   :  { %3014 = vmatmul.mubr.msk.bf16.gmra.mxu1 %vm571_vm3, %v683_v51 }
 0x6bc   :  { %3017 = vmatprep.mubr.msk.bf16.mxu1 %vm3529_vm1, %v3528_v38 }
 0x6e0   :  { %v646_v0 = vpop.xlane.xlu1 %645 }
 0x6e1   :  { %3409 = vrcp.f32 %v646_v0 }
 0x6ee   :  { %v3410_v4 = vpop.eup %3409 }
 0x6ef   :  { %v676_v6 = vmul.f32 %v3410_v4, %v3925_v31 }
 0x6f1   :  { %v684_v7 = vpack.c.bf16 %v676_v6, %v676_v6 }
 0x6f3   :  { %3018 = vmatmul.mubr.msk.bf16.gmra.mxu1 %vm571_vm3, %v684_v7 }
 0x6f4   :  { %3043 = vmatprep.mubr.msk.bf16.mxu1 %vm3529_vm1, %v3528_v38 }
 0x736   :  { %v819_v11 = vpop.f32.mrf.mxu0 }
 0x738   :  { %v3029_v12 = vpop.f32.mrf.mxu0 }
 0x73a   :  { %v822_v13 = vpop.f32.mrf.mxu0 }
 0x73b   :  { %v3281_v14 = vpack.i.bf16 %v822_v13, %v819_v11 }
 0x73c   :  { %v3030_v15 = vpop.f32.mrf.mxu0 }
 0x73d   :  { %3282 = vrot.lane.b32.xlu0 %v3281_v14, %s3533_s7 }
 0x741   :  { %v827_v16 = vpop.f32.mrf.mxu0 }
 0x743   :  { %v3033_v63 = vpop.f32.mrf.mxu0 }
 0x745   :  { %v830_v2 = vpop.f32.mrf.mxu0 }
 0x746   :  { %v3286_v62 = vpack.i.bf16 %v830_v2, %v827_v16 }
 0x747   :  { %v3034_v17 = vpop.f32.mrf.mxu0 }
 0x748   :  { %3287 = vrot.lane.b32.xlu0 %v3286_v62, %s3533_s7 }
 0x773   :  { %v743_v18 = vpop.f32.mrf.mxu1 }
 0x775   :  { %v3011_v19 = vpop.f32.mrf.mxu1 }
 0x776   :  { %v835_v20 = vpop.f32.mrf.mxu0 }
 0x777   :  { %854 = vrot.lane.b32.xlu0 %v835_v20, %s3533_s7  ;;  %v746_v22 = vpop.f32.mrf.mxu1 }
 0x778   :  { %v3037_v23 = vpop.f32.mrf.mxu0 }
 0x779   :  { %v3012_v24 = vpop.f32.mrf.mxu1 }
 0x77a   :  { %v838_v31 = vpop.f32.mrf.mxu0 }
 0x77b   :  { %v751_v44 = vpop.f32.mrf.mxu1 }
 0x77c   :  { %v3038_v21 = vpop.f32.mrf.mxu0 }
 0x77d   :  { %v3015_v25 = vpop.f32.mrf.mxu1 }
 0x77f   :  { %v754_v26 = vpop.f32.mrf.mxu1 }
 0x781   :  { %v3016_v27 = vpop.f32.mrf.mxu1 }
 0x7af   :  { %v3283_v28 = vpop.permute.xlu0 %3282 }
 0x7b0   :  { %v3285_v29 = vunpack.i.h.bf16 %v3283_v28  ;;  %v3284_v30 = vunpack.i.l.bf16 %v3283_v28 }
 0x7b2   :  { %v861_v33 = vsel %vm413_vm2, %v743_v18, %v3284_v30  ;;  %v862_v34 = vsel %vm413_vm2, %v746_v22, %v3285_v29 }
 0x7b3   :  { %v866_v35 = vpack.c.bf16 %v862_v34, %v861_v33  ;;  %v759_v36 = vpop.f32.mrf.mxu1  ;;  %v3325_v34 = vld [vmem:[%s4546_s13 + $0x8] sm:$0xff]  }
 0x7b4   :  { %3056 = vmatpush3.bf16.msra.mxu0 %v3325_v34 }
 0x7b5   :  { %v3019_v40 = vpop.f32.mrf.mxu1  ;;  %3044 = vmatmul.mubr.msk.bf16.vlgmr.msra.gmra.mxu1 %vm73_vm0, %v866_v35  ;;  %v3326_v35 = vld [vmem:[%s4546_s13] sm:$0xff]   ;;  %3057 = vmatprep.subr.bf16.mxu0 %v3528_v38 }
 0x7b6   :  { %3047 = vmatprep.mubr.msk.bf16.mxu1 %vm3529_vm1, %v3528_v38 }
 0x7b7   :  { %v762_v41 = vpop.f32.mrf.mxu1 }
 0x7b8   :  { %3058 = vmatpush3.bf16.msra.mxu0 %v3326_v35 }
 0x7b9   :  { %v3020_v32 = vpop.f32.mrf.mxu1  ;;  %3099 = vmatprep.subr.bf16.mxu0 %v3528_v38 }
 0x7ba   :  { %v3288_v39 = vpop.permute.xlu0 %3287 }
 0x7bb   :  { %v3290_v37 = vunpack.i.h.bf16 %v3288_v39  ;;  %v3289_v43 = vunpack.i.l.bf16 %v3288_v39 }
 0x7bd   :  { %v863_v45 = vsel %vm413_vm2, %v751_v44, %v3289_v43  ;;  %v864_v42 = vsel %vm413_vm2, %v754_v26, %v3290_v37 }
 0x7be   :  { %v867_v46 = vpack.c.bf16 %v864_v42, %v863_v45 }
 0x7c0   :  { %3048 = vmatmul.mubr.msk.bf16.gmra.mxu1 %vm73_vm0, %v867_v46 }
 0x7c1   :  { %3051 = vmatprep.mubr.msk.bf16.mxu1 %vm3529_vm1, %v3528_v38 }
 0x7e9   :  { %v855_v47 = vpop.permute.xlu0 %854 }
 0x7ea   :  { %v865_v48 = vsel %vm413_vm2, %v759_v36, %v855_v47 }
 0x7eb   :  { %v868_v49 = vpack.c.bf16 %v865_v48, %v865_v48 }
 0x7ed   :  { %3052 = vmatmul.mubr.msk.bf16.gmra.mxu1 %vm73_vm0, %v868_v49 }
 0x7ee   :  { %3087 = vmatprep.mubr.msk.bf16.mxu1 %vm3529_vm1, %v3528_v38 }
 0x875   :  { %v928_v52 = vpop.f32.mrf.mxu1 }
 0x876   :  { %v950_v54 = vadd.f32 %v928_v52, %v3670_v57 }
 0x877   :  { %v3045_v55 = vpop.f32.mrf.mxu1 }
 0x878   :  { %v3991_v56 = vadd.f32 %v2736_v53, %v950_v54 }
 0x879   :  { %v931_v60 = vpop.f32.mrf.mxu1 }
 0x87a   :  { %v951_v59 = vadd.f32 %v931_v60, %v3676_v3  ;;  %v969_v61 = vsel %vm73_vm0, %v3991_v56, 0.0 }
 0x87b   :  { %970 = vadd.xlane.f32.xlu0 %v969_v61  ;;  %v3046_v58 = vpop.f32.mrf.mxu1  ;;  %v2737_v61 = vld [vmem:[%s4547_s11] ss:$0 sm:$0xff] }
 0x87c   :  { %v3996_v50 = vadd.f32 %v2736_v53, %v951_v59 }
 0x87e   :  { %v972_v51 = vsel %vm73_vm0, %v3996_v50, 0.0 }
 0x87f   :  { %973 = vadd.xlane.f32.xlu1 %v972_v51 }
 0x880   :  { %v936_v0 = vpop.f32.mrf.mxu1 }
 0x881   :  { %v952_v57 = vadd.f32 %v936_v0, %v3674_v1 }
 0x882   :  { %v3049_v4 = vpop.f32.mrf.mxu1 }
 0x883   :  { %v4001_v6 = vadd.f32 %v2736_v53, %v952_v57  ;;  %v2738_v57 = vld [vmem:[%s4548_s12] ss:$0 sm:$0xff] }
 0x884   :  { %v939_v7 = vpop.f32.mrf.mxu1 }
 0x885   :  { %v953_v3 = vadd.f32 %v939_v7, %v3684_v10  ;;  %v975_v5 = vsel %vm73_vm0, %v4001_v6, 0.0 }
 0x886   :  { %976 = vadd.xlane.f32.xlu1 %v975_v5  ;;  %v3050_v8 = vpop.f32.mrf.mxu1 }
 0x887   :  { %v4006_v11 = vadd.f32 %v2736_v53, %v953_v3 }
 0x889   :  { %v978_v12 = vsel %vm73_vm0, %v4006_v11, 0.0 }
 0x88a   :  { %979 = vadd.xlane.f32.xlu0 %v978_v12 }
 0x8ad   :  { %v944_v13 = vpop.f32.mrf.mxu1 }
 0x8ae   :  { %v954_v1 = vadd.f32 %v944_v13, %v3682_v9 }
 0x8af   :  { %v3053_v14 = vpop.f32.mrf.mxu1 }
 0x8b0   :  { %v4011_v15 = vadd.f32 %v2736_v53, %v954_v1 }
 0x8b1   :  { %v947_v16 = vpop.f32.mrf.mxu1 }
 0x8b2   :  { %v981_v10 = vsel %vm73_vm0, %v4011_v15, 0.0 }
 0x8b3   :  { %982 = vadd.xlane.f32.xlu1 %v981_v10  ;;  %v3054_v63 = vpop.f32.mrf.mxu1 }
 0x904   :  { %v971_v2 = vpop.xlane.xlu0 %970 }
 0x905   :  { %v984_v62 = vmul.f32 0.03125, %v971_v2 }
 0x907   :  { %v989_v17 = vsub.f32 %v3991_v56, %v984_v62 }
 0x908   :  { %v974_v18 = vpop.xlane.xlu1 %973 }
 0x909   :  { %v985_v19 = vmul.f32 0.03125, %v974_v18  ;;  %v994_v20 = vmul.f32 %v989_v17, %v989_v17 }
 0x90b   :  { %v990_v22 = vsub.f32 %v3996_v50, %v985_v19  ;;  %v999_v9 = vsel %vm73_vm0, %v994_v20, 0.0 }
 0x90c   :  { %1000 = vadd.xlane.f32.xlu0 %v999_v9 }
 0x90d   :  { %v995_v23 = vmul.f32 %v990_v22, %v990_v22 }
 0x90f   :  { %v977_v24 = vpop.xlane.xlu1 %976  ;;  %v1002_v31 = vsel %vm73_vm0, %v995_v23, 0.0 }
 0x910   :  { %v986_v44 = vmul.f32 0.03125, %v977_v24  ;;  %1003 = vadd.xlane.f32.xlu1 %v1002_v31  ;;  %v3327_v24 = vld [vmem:[%s4549_s15 + $0x38] sm:$0xff]   ;;  %v3328_v31 = vld [vmem:[%s4549_s15 + $0x30] sm:$0xff]  }
 0x911   :  { %3072 = vmatpush3.bf16.msra.mxu1 %v3327_v24 }
 0x912   :  { %v991_v21 = vsub.f32 %v4001_v6, %v986_v44  ;;  %3073 = vmatprep.subr.bf16.mxu1 %v3528_v38  ;;  %v3329_v44 = vld [vmem:[%s4549_s15 + $0x28] sm:$0xff]  }
 0x913   :  { %v980_v25 = vpop.xlane.xlu0 %979 }
 0x914   :  { %v987_v26 = vmul.f32 0.03125, %v980_v25  ;;  %v996_v27 = vmul.f32 %v991_v21, %v991_v21  ;;  %v3331_v25 = vld [vmem:[%s4549_s15 + $0x18] sm:$0xff]  }
 0x915   :  { %3074 = vmatpush3.bf16.msra.mxu1 %v3328_v31 }
 0x916   :  { %v992_v28 = vsub.f32 %v4006_v11, %v987_v26  ;;  %v1005_v29 = vsel %vm73_vm0, %v996_v27, 0.0  ;;  %3075 = vmatprep.subr.bf16.mxu1 %v3528_v38  ;;  %v3332_v26 = vld [vmem:[%s4549_s15 + $0x10] sm:$0xff]   ;;  %v3333_v27 = vld [vmem:[%s4549_s15 + $0x8] sm:$0xff]  }
 0x917   :  { %1006 = vadd.xlane.f32.xlu0 %v1005_v29  ;;  %v2739_v29 = vld [vmem:[%s4550_s14] ss:$0 sm:$0xff] }
 0x918   :  { %v997_v30 = vmul.f32 %v992_v28, %v992_v28 }
 0x919   :  { %3076 = vmatpush3.bf16.msra.mxu1 %v3329_v44  ;;  %v2758_v44 = vld [vmem:[%s4551_s16] ss:$0 sm:$0xff] }
 0x91a   :  { %v1008_v33 = vsel %vm73_vm0, %v997_v30, 0.0  ;;  %3077 = vmatprep.subr.bf16.mxu1 %v3528_v38 }
 0x91b   :  { %1009 = vadd.xlane.f32.xlu1 %v1008_v33 }
 0x93c   :  { %v983_v36 = vpop.xlane.xlu1 %982 }
 0x93d   :  { %v988_v40 = vmul.f32 0.03125, %v983_v36 }
 0x93f   :  { %v993_v41 = vsub.f32 %v4011_v15, %v988_v40 }
 0x941   :  { %v998_v32 = vmul.f32 %v993_v41, %v993_v41 }
 0x943   :  { %v1011_v39 = vsel %vm73_vm0, %v998_v32, 0.0 }
 0x944   :  { %1012 = vadd.xlane.f32.xlu0 %v1011_v39 }
 0x995   :  { %v1001_v37 = vpop.xlane.xlu0 %1000 }
 0x996   :  { %v1014_v43 = vmul.f32 0.03125, %v1001_v37 }
 0x998   :  { %v1019_v45 = vadd.f32 1e-05, %v1014_v43 }
 0x999   :  { %v1004_v42 = vpop.xlane.xlu1 %1003 }
 0x99a   :  { %3411 = vrsqrt.f32 %v1019_v45  ;;  %v1015_v46 = vmul.f32 0.03125, %v1004_v42 }
 0x99c   :  { %v1020_v47 = vadd.f32 1e-05, %v1015_v46 }
 0x99e   :  { %3413 = vrsqrt.f32 %v1020_v47 }
 0x9a0   :  { %v1007_v48 = vpop.xlane.xlu0 %1006 }
 0x9a1   :  { %v1016_v49 = vmul.f32 0.03125, %v1007_v48 }
 0x9a3   :  { %v1021_v52 = vadd.f32 1e-05, %v1016_v49 }
 0x9a4   :  { %v1010_v53 = vpop.xlane.xlu1 %1009 }
 0x9a5   :  { %3415 = vrsqrt.f32 %v1021_v52  ;;  %v1017_v54 = vmul.f32 0.03125, %v1010_v53 }
 0x9a7   :  { %v3412_v55 = vpop.eup %3411  ;;  %v1022_v60 = vadd.f32 1e-05, %v1017_v54 }
 0x9a8   :  { %v1029_v59 = vmul.f32 %v3412_v55, %v989_v17 }
 0x9a9   :  { %3417 = vrsqrt.f32 %v1022_v60 }
 0x9aa   :  { %v1040_v51 = vmul.f32 %v2737_v61, %v1029_v59 }
 0x9ab   :  { %v3414_v58 = vpop.eup %3413 }
 0x9ac   :  { %v1030_v0 = vmul.f32 %v3414_v58, %v990_v22  ;;  %v1051_v7 = vadd.f32 %v2738_v57, %v1040_v51 }
 0x9ae   :  { %v1041_v4 = vmul.f32 %v2737_v61, %v1030_v0 }
 0x9b0   :  { %v1052_v3 = vadd.f32 %v2738_v57, %v1041_v4 }
 0x9b2   :  { %v3416_v5 = vpop.eup %3415  ;;  %v1056_v8 = vpack.c.bf16 %v1052_v3, %v1051_v7 }
 0x9b3   :  { %v1031_v12 = vmul.f32 %v3416_v5, %v991_v21  ;;  %v3330_v21 = vld [vmem:[%s4549_s15 + $0x20] sm:$0xff]  }
 0x9b4   :  { %3060 = vmatmul.mubr.msk.bf16.vlgmr.msra.gmra.mxu0 %vm73_vm0, %v1056_v8  ;;  %3078 = vmatpush3.bf16.msra.mxu1 %v3330_v21 }
 0x9b5   :  { %3063 = vmatprep.mubr.msk.bf16.mxu0 %vm3529_vm1, %v3528_v38  ;;  %v1042_v14 = vmul.f32 %v2737_v61, %v1031_v12  ;;  %3079 = vmatprep.subr.bf16.mxu1 %v3528_v38 }
 0x9b6   :  { %v3418_v13 = vpop.eup %3417 }
 0x9b7   :  { %v1032_v1 = vmul.f32 %v3418_v13, %v992_v28  ;;  %v1053_v10 = vadd.f32 %v2738_v57, %v1042_v14  ;;  %v3334_v28 = vld [vmem:[%s4549_s15] sm:$0xff]  }
 0x9b8   :  { %3080 = vmatpush3.bf16.msra.mxu1 %v3331_v25 }
 0x9b9   :  { %v1043_v16 = vmul.f32 %v2737_v61, %v1032_v1  ;;  %3081 = vmatprep.subr.bf16.mxu1 %v3528_v38 }
 0x9bb   :  { %v1054_v63 = vadd.f32 %v2738_v57, %v1043_v16 }
 0x9bc   :  { %3082 = vmatpush3.bf16.msra.mxu1 %v3332_v26 }
 0x9bd   :  { %v1057_v2 = vpack.c.bf16 %v1054_v63, %v1053_v10  ;;  %3083 = vmatprep.subr.bf16.mxu1 %v3528_v38 }
 0x9bf   :  { %3064 = vmatmul.mubr.msk.bf16.gmra.mxu0 %vm73_vm0, %v1057_v2 }
 0x9c0   :  { %3067 = vmatprep.mubr.msk.bf16.mxu0 %vm3529_vm1, %v3528_v38  ;;  %3084 = vmatpush3.bf16.msra.mxu1 %v3333_v27 }
 0x9c1   :  { %3085 = vmatprep.subr.bf16.mxu1 %v3528_v38 }
 0x9c4   :  { %3086 = vmatpush3.bf16.msra.mxu1 %v3334_v28 }
 0x9c5   :  { %3133 = vmatprep.subr.bf16.mxu1 %v3528_v38 }
 0x9cd   :  { %v1013_v62 = vpop.xlane.xlu0 %1012 }
 0x9ce   :  { %v1018_v17 = vmul.f32 0.03125, %v1013_v62 }
 0x9d0   :  { %v1023_v18 = vadd.f32 1e-05, %v1018_v17 }
 0x9d2   :  { %3419 = vrsqrt.f32 %v1023_v18 }
 0x9df   :  { %v3420_v19 = vpop.eup %3419 }
 0x9e0   :  { %v1033_v20 = vmul.f32 %v3420_v19, %v993_v41 }
 0x9e2   :  { %v1044_v22 = vmul.f32 %v2737_v61, %v1033_v20 }
 0x9e4   :  { %v1055_v9 = vadd.f32 %v2738_v57, %v1044_v22 }
 0x9e6   :  { %v1058_v23 = vpack.c.bf16 %v1055_v9, %v1055_v9 }
 0x9e8   :  { %3068 = vmatmul.mubr.msk.bf16.gmra.mxu0 %vm73_vm0, %v1058_v23 }
 0x9e9   :  { %3103 = vmatprep.mubr.msk.bf16.mxu0 %vm3529_vm1, %v3528_v38 }
 0xa74   :  { %v1125_v30 = vpop.f32.mrf.mxu0 }
 0xa75   :  { %v1126_v33 = vadd.f32 %v2739_v29, %v1125_v30 }
 0xa76   :  { %v3061_v34 = vpop.f32.mrf.mxu0 }
 0xa77   :  { %v2745_v35 = vmul.f32 -1.702, %v1126_v33 }
 0xa78   :  { %v1128_v36 = vpop.f32.mrf.mxu0 }
 0xa79   :  { %v1157_v40 = vmul.f32 1.442695, %v2745_v35  ;;  %v1129_v41 = vadd.f32 %v2739_v29, %v1128_v36 }
 0xa7a   :  { %v3062_v32 = vpop.f32.mrf.mxu0 }
 0xa7b   :  { %3421 = vpow2.f32 %v1157_v40  ;;  %v2746_v39 = vmul.f32 -1.702, %v1129_v41 }
 0xa7d   :  { %v1159_v37 = vmul.f32 1.442695, %v2746_v39 }
 0xa7f   :  { %3423 = vpow2.f32 %v1159_v37  ;;  %v1133_v43 = vpop.f32.mrf.mxu0 }
 0xa80   :  { %v1134_v45 = vadd.f32 %v2739_v29, %v1133_v43 }
 0xa81   :  { %v3065_v42 = vpop.f32.mrf.mxu0 }
 0xa82   :  { %v2747_v46 = vmul.f32 -1.702, %v1134_v45 }
 0xa83   :  { %v1136_v47 = vpop.f32.mrf.mxu0 }
 0xa84   :  { %v1161_v48 = vmul.f32 1.442695, %v2747_v46  ;;  %v1137_v49 = vadd.f32 %v2739_v29, %v1136_v47 }
 0xa85   :  { %v3066_v52 = vpop.f32.mrf.mxu0 }
 0xa86   :  { %3425 = vpow2.f32 %v1161_v48  ;;  %v2748_v53 = vmul.f32 -1.702, %v1137_v49 }
 0xa88   :  { %v3422_v54 = vpop.eup %3421  ;;  %v1163_v55 = vmul.f32 1.442695, %v2748_v53 }
 0xa89   :  { %v1167_v60 = vadd.f32 1.0, %v3422_v54 }
 0xa8a   :  { %3427 = vpow2.f32 %v1163_v55 }
 0xa8b   :  { %3429 = vrcp.f32 %v1167_v60 }
 0xa8c   :  { %v3424_v59 = vpop.eup %3423 }
 0xa8d   :  { %v1168_v61 = vadd.f32 1.0, %v3424_v59 }
 0xa8f   :  { %3431 = vrcp.f32 %v1168_v61 }
 0xa93   :  { %v3426_v58 = vpop.eup %3425 }
 0xa94   :  { %v1169_v51 = vadd.f32 1.0, %v3426_v58 }
 0xa96   :  { %3433 = vrcp.f32 %v1169_v51 }
 0xa97   :  { %v3428_v0 = vpop.eup %3427 }
 0xa98   :  { %v1170_v57 = vadd.f32 1.0, %v3428_v0  ;;  %v3430_v4 = vpop.eup %3429 }
 0xa99   :  { %v1182_v3 = vmul.f32 %v3430_v4, %v1126_v33 }
 0xa9a   :  { %3435 = vrcp.f32 %v1170_v57 }
 0xa9c   :  { %v3432_v7 = vpop.eup %3431 }
 0xa9d   :  { %v1183_v5 = vmul.f32 %v3432_v7, %v1129_v41 }
 0xa9f   :  { %v1187_v8 = vpack.c.bf16 %v1183_v5, %v1182_v3 }
 0xaa1   :  { %3088 = vmatmul.mubr.bf16.vlgmr.msra.gmra.mxu1 %v1187_v8 }
 0xaa2   :  { %3091 = vmatprep.mubr.msk.bf16.mxu1 %vm3529_vm1, %v3528_v38 }
 0xaa3   :  { %v3434_v12 = vpop.eup %3433 }
 0xaa4   :  { %v1184_v1 = vmul.f32 %v3434_v12, %v1134_v45 }
 0xaa7   :  { %v3436_v13 = vpop.eup %3435 }
 0xaa8   :  { %v1185_v14 = vmul.f32 %v3436_v13, %v1137_v49  ;;  %v1141_v16 = vpop.f32.mrf.mxu0 }
 0xaa9   :  { %v1142_v10 = vadd.f32 %v2739_v29, %v1141_v16 }
 0xaaa   :  { %v3069_v63 = vpop.f32.mrf.mxu0  ;;  %v1188_v2 = vpack.c.bf16 %v1185_v14, %v1184_v1  ;;  %v3335_v1 = vld [vmem:[%s4568_s4 + $0x18] sm:$0xff]   ;;  %v3336_v14 = vld [vmem:[%s4568_s4 + $0x10] sm:$0xff]  }
 0xaab   :  { %v2749_v62 = vmul.f32 -1.702, %v1142_v10  ;;  %3100 = vmatpush3.bf16.msra.mxu0 %v3335_v1 }
 0xaac   :  { %v1144_v17 = vpop.f32.mrf.mxu0  ;;  %3092 = vmatmul.mubr.bf16.gmra.mxu1 %v1188_v2  ;;  %3101 = vmatprep.subr.bf16.mxu0 %v3528_v38 }
 0xaad   :  { %v1165_v18 = vmul.f32 1.442695, %v2749_v62  ;;  %3095 = vmatprep.mubr.msk.bf16.mxu1 %vm3529_vm1, %v3528_v38 }
 0xaae   :  { %v3070_v19 = vpop.f32.mrf.mxu0 }
 0xaaf   :  { %3437 = vpow2.f32 %v1165_v18  ;;  %3102 = vmatpush3.bf16.msra.mxu0 %v3336_v14 }
 0xab0   :  { %3115 = vmatprep.subr.bf16.mxu0 %v3528_v38 }
 0xabc   :  { %v3438_v20 = vpop.eup %3437 }
 0xabd   :  { %v1171_v22 = vadd.f32 1.0, %v3438_v20 }
 0xabf   :  { %3439 = vrcp.f32 %v1171_v22 }
 0xacc   :  { %v3440_v9 = vpop.eup %3439 }
 0xacd   :  { %v1186_v23 = vmul.f32 %v3440_v9, %v1142_v10 }
 0xacf   :  { %v1189_v24 = vpack.c.bf16 %v1186_v23, %v1186_v23 }
 0xad1   :  { %3096 = vmatmul.mubr.bf16.gmra.mxu1 %v1189_v24 }
 0xad2   :  { %3139 = vmatprep.mubr.msk.bf16.mxu1 %vm3529_vm1, %v3528_v38 }
 0xb61   :  { %v1288_v31 = vpop.f32.mrf.mxu1 }
 0xb62   :  { %v1310_v21 = vadd.f32 %v1288_v31, %v3991_v56 }
 0xb63   :  { %v3089_v25 = vpop.f32.mrf.mxu1 }
 0xb64   :  { %v4093_v26 = vadd.f32 %v2758_v44, %v1310_v21 }
 0xb65   :  { %v1291_v27 = vpop.f32.mrf.mxu1 }
 0xb66   :  { %v1311_v28 = vadd.f32 %v1291_v27, %v3996_v50  ;;  %v1331_v29 = vsel %vm73_vm0, %v4093_v26, 0.0  ;;  %v2761_v27 = vld [vmem:[%s4569_s28 + $0x1] ss:$0 sm:$0xff] }
 0xb67   :  { %1332 = vadd.xlane.f32.xlu1 %v1331_v29  ;;  %v3090_v30 = vpop.f32.mrf.mxu1 }
 0xb68   :  { %v4098_v33 = vadd.f32 %v2758_v44, %v1311_v28  ;;  %v2762_v30 = vld [vmem:[%s4541_s6 + $0x1] ss:$0 sm:$0xff] }
 0xb6a   :  { %v1334_v34 = vsel %vm73_vm0, %v4098_v33, 0.0 }
 0xb6b   :  { %1335 = vadd.xlane.f32.xlu0 %v1334_v34 }
 0xb6c   :  { %v1296_v35 = vpop.f32.mrf.mxu1 }
 0xb6d   :  { %v1312_v56 = vadd.f32 %v1296_v35, %v4001_v6 }
 0xb6e   :  { %v3093_v36 = vpop.f32.mrf.mxu1 }
 0xb6f   :  { %v4103_v40 = vadd.f32 %v2758_v44, %v1312_v56 }
 0xb70   :  { %v1299_v41 = vpop.f32.mrf.mxu1 }
 0xb71   :  { %v1313_v50 = vadd.f32 %v1299_v41, %v4006_v11  ;;  %v1337_v32 = vsel %vm73_vm0, %v4103_v40, 0.0 }
 0xb72   :  { %1338 = vadd.xlane.f32.xlu1 %v1337_v32  ;;  %v3094_v39 = vpop.f32.mrf.mxu1 }
 0xb73   :  { %v4108_v37 = vadd.f32 %v2758_v44, %v1313_v50 }
 0xb75   :  { %v1340_v43 = vsel %vm73_vm0, %v4108_v37, 0.0 }
 0xb76   :  { %1341 = vadd.xlane.f32.xlu0 %v1340_v43 }
 0xb91   :  { %v1304_v45 = vpop.f32.mrf.mxu1 }
 0xb92   :  { %v1314_v6 = vadd.f32 %v1304_v45, %v4011_v15 }
 0xb93   :  { %v3097_v42 = vpop.f32.mrf.mxu1 }
 0xb94   :  { %v4113_v46 = vadd.f32 %v2758_v44, %v1314_v6 }
 0xb95   :  { %v1307_v47 = vpop.f32.mrf.mxu1 }
 0xb96   :  { %v1343_v11 = vsel %vm73_vm0, %v4113_v46, 0.0 }
 0xb97   :  { %1344 = vadd.xlane.f32.xlu1 %v1343_v11  ;;  %v3098_v48 = vpop.f32.mrf.mxu1 }
 0xbf0   :  { %v1333_v49 = vpop.xlane.xlu1 %1332 }
 0xbf1   :  { %v1346_v52 = vmul.f32 0.03125, %v1333_v49 }
 0xbf3   :  { %v1351_v53 = vsub.f32 %v4093_v26, %v1346_v52 }
 0xbf4   :  { %v1336_v54 = vpop.xlane.xlu0 %1335 }
 0xbf5   :  { %v1347_v55 = vmul.f32 0.03125, %v1336_v54  ;;  %v1356_v60 = vmul.f32 %v1351_v53, %v1351_v53 }
 0xbf7   :  { %v1352_v59 = vsub.f32 %v4098_v33, %v1347_v55  ;;  %v1361_v15 = vsel %vm73_vm0, %v1356_v60, 0.0 }
 0xbf8   :  { %1362 = vadd.xlane.f32.xlu0 %v1361_v15 }
 0xbf9   :  { %v1357_v61 = vmul.f32 %v1352_v59, %v1352_v59 }
 0xbfb   :  { %v1339_v58 = vpop.xlane.xlu1 %1338  ;;  %v1364_v51 = vsel %vm73_vm0, %v1357_v61, 0.0 }
 0xbfc   :  { %v1348_v0 = vmul.f32 0.03125, %v1339_v58  ;;  %1365 = vadd.xlane.f32.xlu1 %v1364_v51  ;;  %v2768_v58 = vld [vmem:[%s4542_s8 + $0x1] ss:$0 sm:$0xff] }
 0xbfe   :  { %v1353_v57 = vsub.f32 %v4103_v40, %v1348_v0 }
 0xbff   :  { %v1342_v4 = vpop.xlane.xlu0 %1341 }
 0xc00   :  { %v1349_v7 = vmul.f32 0.03125, %v1342_v4  ;;  %v1358_v3 = vmul.f32 %v1353_v57, %v1353_v57 }
 0xc02   :  { %v1354_v5 = vsub.f32 %v4108_v37, %v1349_v7  ;;  %v1367_v8 = vsel %vm73_vm0, %v1358_v3, 0.0 }
 0xc03   :  { %1368 = vadd.xlane.f32.xlu0 %v1367_v8 }
 0xc04   :  { %v1359_v12 = vmul.f32 %v1354_v5, %v1354_v5 }
 0xc06   :  { %v1370_v13 = vsel %vm73_vm0, %v1359_v12, 0.0 }
 0xc07   :  { %1371 = vadd.xlane.f32.xlu1 %v1370_v13 }
 0xc20   :  { %v1345_v16 = vpop.xlane.xlu1 %1344 }
 0xc21   :  { %v1350_v10 = vmul.f32 0.03125, %v1345_v16 }
 0xc23   :  { %v1355_v63 = vsub.f32 %v4113_v46, %v1350_v10 }
 0xc25   :  { %v1360_v2 = vmul.f32 %v1355_v63, %v1355_v63 }
 0xc27   :  { %v1373_v62 = vsel %vm73_vm0, %v1360_v2, 0.0 }
 0xc28   :  { %1374 = vadd.xlane.f32.xlu0 %v1373_v62 }
 0xc81   :  { %v1363_v17 = vpop.xlane.xlu0 %1362 }
 0xc82   :  { %v1376_v18 = vmul.f32 0.03125, %v1363_v17 }
 0xc84   :  { %v1381_v19 = vadd.f32 1e-05, %v1376_v18 }
 0xc85   :  { %v1366_v20 = vpop.xlane.xlu1 %1365 }
 0xc86   :  { %3441 = vrsqrt.f32 %v1381_v19  ;;  %v1377_v22 = vmul.f32 0.03125, %v1366_v20 }
 0xc88   :  { %v1382_v9 = vadd.f32 1e-05, %v1377_v22 }
 0xc8a   :  { %3443 = vrsqrt.f32 %v1382_v9 }
 0xc8c   :  { %v1369_v23 = vpop.xlane.xlu0 %1368 }
 0xc8d   :  { %v1378_v24 = vmul.f32 0.03125, %v1369_v23 }
 0xc8f   :  { %v1383_v31 = vadd.f32 1e-05, %v1378_v24 }
 0xc90   :  { %v1372_v44 = vpop.xlane.xlu1 %1371 }
 0xc91   :  { %3445 = vrsqrt.f32 %v1383_v31  ;;  %v1379_v21 = vmul.f32 0.03125, %v1372_v44 }
 0xc93   :  { %v3442_v25 = vpop.eup %3441  ;;  %v1384_v28 = vadd.f32 1e-05, %v1379_v21 }
 0xc94   :  { %v1391_v29 = vmul.f32 %v3442_v25, %v1351_v53 }
 0xc95   :  { %3447 = vrsqrt.f32 %v1384_v28 }
 0xc96   :  { %v1402_v34 = vmul.f32 %v2761_v27, %v1391_v29 }
 0xc97   :  { %v3444_v35 = vpop.eup %3443 }
 0xc98   :  { %v1392_v56 = vmul.f32 %v3444_v35, %v1352_v59  ;;  %v1413_v36 = vadd.f32 %v2762_v30, %v1402_v34 }
 0xc9a   :  { %v1403_v41 = vmul.f32 %v2761_v27, %v1392_v56 }
 0xc9c   :  { %v1414_v50 = vadd.f32 %v2762_v30, %v1403_v41 }
 0xc9e   :  { %v3446_v32 = vpop.eup %3445  ;;  %v1418_v39 = vpack.c.bf16 %v1414_v50, %v1413_v36 }
 0xc9f   :  { %v1393_v43 = vmul.f32 %v3446_v32, %v1353_v57 }
 0xca0   :  { %3104 = vmatmul.mubr.msk.bf16.vlgmr.msra.gmra.mxu0 %vm73_vm0, %v1418_v39 }
 0xca1   :  { %3107 = vmatprep.mubr.msk.bf16.mxu0 %vm3529_vm1, %v3528_v38  ;;  %v1404_v45 = vmul.f32 %v2761_v27, %v1393_v43 }
 0xca2   :  { %v3448_v6 = vpop.eup %3447 }
 0xca3   :  { %v1394_v42 = vmul.f32 %v3448_v6, %v1354_v5  ;;  %v1415_v47 = vadd.f32 %v2762_v30, %v1404_v45 }
 0xca5   :  { %v1405_v11 = vmul.f32 %v2761_v27, %v1394_v42 }
 0xca7   :  { %v1416_v48 = vadd.f32 %v2762_v30, %v1405_v11 }
 0xca9   :  { %v1419_v49 = vpack.c.bf16 %v1416_v48, %v1415_v47 }
 0xcab   :  { %3108 = vmatmul.mubr.msk.bf16.gmra.mxu0 %vm73_vm0, %v1419_v49 }
 0xcac   :  { %3111 = vmatprep.mubr.msk.bf16.mxu0 %vm3529_vm1, %v3528_v38 }
 0xcb1   :  { %v1375_v52 = vpop.xlane.xlu0 %1374 }
 0xcb2   :  { %v1380_v53 = vmul.f32 0.03125, %v1375_v52 }
 0xcb4   :  { %v1385_v54 = vadd.f32 1e-05, %v1380_v53 }
 0xcb6   :  { %3449 = vrsqrt.f32 %v1385_v54 }
 0xcc3   :  { %v3450_v55 = vpop.eup %3449 }
 0xcc4   :  { %v1395_v60 = vmul.f32 %v3450_v55, %v1355_v63 }
 0xcc6   :  { %v1406_v59 = vmul.f32 %v2761_v27, %v1395_v60 }
 0xcc8   :  { %v1417_v15 = vadd.f32 %v2762_v30, %v1406_v59 }
 0xcca   :  { %v1420_v61 = vpack.c.bf16 %v1417_v15, %v1417_v15 }
 0xccc   :  { %3112 = vmatmul.mubr.msk.bf16.gmra.mxu0 %vm73_vm0, %v1420_v61 }
 0xccd   :  { %3121 = vmatprep.mubr.msk.bf16.mxu0 %vm3529_vm1, %v3528_v38 }
 0xd60   :  { %v1489_v51 = vpop.f32.mrf.mxu0 }
 0xd61   :  { %v1490_v57 = vadd.f32 %v2768_v58, %v1489_v51 }
 0xd62   :  { %v3105_v0 = vpop.f32.mrf.mxu0 }
 0xd63   :  { %v4153_v5 = vmul.f32 0.25, %v1490_v57 }
 0xd64   :  { %v1492_v4 = vpop.f32.mrf.mxu0 }
 0xd65   :  { %v1493_v7 = vadd.f32 %v2768_v58, %v1492_v4 }
 0xd66   :  { %v3106_v3 = vpop.f32.mrf.mxu0 }
 0xd67   :  { %v4155_v8 = vmul.f32 0.25, %v1493_v7  ;;  %v4157_v12 = vpack.c.bf16 %v1493_v7, %v1490_v57  ;;  %v3296_v21 = vpack.i.bf16 %v1493_v7, %v1490_v57 }
 0xd69   :  { %v1556_v13 = vpack.c.bf16 %v4155_v8, %v4153_v5  ;;  %v3301_v1 = vpack.i.bf16 %v4155_v8, %v4153_v5  ;;  %v3523_v8 = vld [vmem:[%s4543_s1] sm:$0xff] }
 0xd6b   :  { %v1497_v14 = vpop.f32.mrf.mxu0 }
 0xd6c   :  { %v1498_v10 = vadd.f32 %v2768_v58, %v1497_v14 }
 0xd6d   :  { %v3109_v16 = vpop.f32.mrf.mxu0 }
 0xd6e   :  { %v4163_v17 = vmul.f32 0.25, %v1498_v10 }
 0xd6f   :  { %v1500_v63 = vpop.f32.mrf.mxu0 }
 0xd70   :  { %v1501_v2 = vadd.f32 %v2768_v58, %v1500_v63 }
 0xd71   :  { %v3110_v62 = vpop.f32.mrf.mxu0 }
 0xd72   :  { %v4165_v18 = vmul.f32 0.25, %v1501_v2  ;;  %v3291_v19 = vpack.i.bf16 %v1501_v2, %v1498_v10  ;;  %v4167_v20 = vpack.c.bf16 %v1501_v2, %v1498_v10  ;;  %v3524_v10 = vld [vmem:[%s4543_s1 + $0x8] sm:$0xff] }
 0xd74   :  { %v1557_v22 = vpack.c.bf16 %v4165_v18, %v4163_v17  ;;  %3292 = vrot.lane.b32.xlu0 %v3291_v19, %s3530_s21  ;;  %v3306_v9 = vpack.i.bf16 %v4165_v18, %v4163_v17  ;;  %v3525_v18 = vld [vmem:[%s4543_s1 + $0x10] sm:$0xff] }
 0xd8c   :  { %v1505_v23 = vpop.f32.mrf.mxu0 }
 0xd8d   :  { %v1506_v24 = vadd.f32 %v2768_v58, %v1505_v23 }
 0xd8e   :  { %v3113_v31 = vpop.f32.mrf.mxu0 }
 0xd8f   :  { %1549 = vrot.lane.b32.xlu1 %v1506_v24, %s3530_s21  ;;  %v1515_v32 = vmul.f32 0.25, %v1506_v24  ;;  %v4191_v39 = vpack.c.bf16 %v1506_v24, %v1506_v24  ;;  %v3526_v24 = vld [vmem:[%s4543_s1 + $0x18] sm:$0xff] }
 0xd90   :  { %v1508_v44 = vpop.f32.mrf.mxu0 }
 0xd91   :  { %v1558_v3 = vpack.c.bf16 %v1515_v32, %v1515_v32 }
 0xd92   :  { %v3114_v25 = vpop.f32.mrf.mxu0 }
 0xd93   :  { %3297 = vrot.lane.b32.xlu1 %v3296_v21, %s3530_s21 }
 0xde6   :  { %v3293_v27 = vpop.permute.xlu0 %3292 }
 0xde7   :  { %v3295_v29 = vunpack.i.h.bf16 %v3293_v27  ;;  %v3294_v30 = vunpack.i.l.bf16 %v3293_v27 }
 0xde9   :  { %v4180_v56 = vpack.c.bf16 %v3295_v29, %v3294_v30 }
 0xe01   :  { %v1550_v28 = vpop.permute.xlu1 %1549 }
 0xe02   :  { %v4176_v34 = vpack.c.bf16 %v1550_v28, %v1550_v28 }
 0xe04   :  { %1658 = vrot.lane.b32.xlu1 %v4176_v34, %s3531_s3 }
 0xe05   :  { %v3298_v35 = vpop.permute.xlu1 %3297 }
 0xe06   :  { %v3300_v36 = vunpack.i.h.bf16 %v3298_v35  ;;  %v3299_v41 = vunpack.i.l.bf16 %v3298_v35 }
 0xe08   :  { %v4182_v50 = vpack.c.bf16 %v3300_v36, %v3299_v41  ;;  %1656 = vrot.lane.b32.xlu1 %v4180_v56, %s3531_s3 }
 0xe0a   :  { %1654 = vrot.lane.b32.xlu0 %v4182_v50, %s3531_s3 }
 0xe0c   :  { %3302 = vrot.lane.b32.xlu1 %v3301_v1, %s3530_s21 }
 0xe0e   :  { %3307 = vrot.lane.b32.xlu0 %v3306_v9, %s3530_s21 }
 0xe10   :  { %1529 = vrot.lane.b32.xlu1 %v1515_v32, %s3530_s21 }
 0xe12   :  { %1575 = vrot.lane.b32.xlu0 %v4191_v39, %s3531_s3 }
 0xe14   :  { %1573 = vrot.lane.b32.xlu1 %v4167_v20, %s3531_s3 }
 0xe16   :  { %1571 = vrot.lane.b32.xlu0 %v4157_v12, %s3531_s3 }
 0xe76   :  { %v1659_v43 = vpop.permute.xlu1 %1658 }
 0xe77   :  { %v1676_v45 = vsel %vm413_vm2, %v1659_v43, 0 }
 0xe78   :  { %3134 = vmatpush3.bf16.xpose.msra.mxu1 %v1676_v45 }
 0xe79   :  { %3135 = vmatprep.subr.bf16.mxu1 %v3528_v38 }
 0xe7a   :  { %v1657_v6 = vpop.permute.xlu1 %1656 }
 0xe7b   :  { %v1673_v11 = vsel %vm413_vm2, %v1657_v6, 0 }
 0xe7c   :  { %v1655_v42 = vpop.permute.xlu0 %1654 }
 0xe7d   :  { %v1670_v54 = vsel %vm413_vm2, %v1655_v42, 0 }
 0xe7e   :  { %v3303_v47 = vpop.permute.xlu1 %3302 }
 0xe7f   :  { %v3305_v55 = vunpack.i.h.bf16 %v3303_v47  ;;  %v3304_v60 = vunpack.i.l.bf16 %v3303_v47 }
 0xe80   :  { %3136 = vmatpush3.bf16.xpose.msra.mxu1 %v1673_v11  ;;  %v3308_v48 = vpop.permute.xlu0 %3307 }
 0xe81   :  { %3137 = vmatprep.subr.bf16.mxu1 %v3528_v38  ;;  %v1559_v15 = vpack.c.bf16 %v3305_v55, %v3304_v60  ;;  %v3310_v58 = vunpack.i.h.bf16 %v3308_v48  ;;  %v3309_v51 = vunpack.i.l.bf16 %v3308_v48 }
 0xe82   :  { %v1530_v49 = vpop.permute.xlu1 %1529 }
 0xe83   :  { %v1560_v57 = vpack.c.bf16 %v3310_v58, %v3309_v51  ;;  %v1561_v7 = vpack.c.bf16 %v1530_v49, %v1530_v49 }
 0xe84   :  { %v1576_v52 = vpop.permute.xlu0 %1575 }
 0xe85   :  { %v1593_v53 = vsel %vm413_vm2, %v1576_v52, 0 }
 0xe86   :  { %3116 = vmatpush3.bf16.xpose.msra.mxu0 %v1593_v53  ;;  %v1574_v59 = vpop.permute.xlu1 %1573 }
 0xe87   :  { %3117 = vmatprep.subr.bf16.mxu0 %v3528_v38  ;;  %v1590_v61 = vsel %vm413_vm2, %v1574_v59, 0 }
 0xe88   :  { %3138 = vmatpush3.bf16.xpose.msra.mxu1 %v1670_v54  ;;  %v1572_v0 = vpop.permute.xlu0 %1571  ;;  %v3527_v54 = vld [vmem:[%s4543_s1 + $0x20] sm:$0xff] }
 0xe89   :  { %3169 = vmatprep.subr.bf16.mxu1 %v3528_v38  ;;  %v1587_v4 = vsel %vm413_vm2, %v1572_v0, 0 }
 0xe8e   :  { %3118 = vmatpush3.bf16.xpose.msra.mxu0 %v1590_v61 }
 0xe8f   :  { %3140 = vmatmul.mubr.msk.bf16.vlgmr.msra.gmra.mxu1 %vm413_vm2, %v1559_v15  ;;  %3119 = vmatprep.subr.bf16.mxu0 %v3528_v38 }
 0xe90   :  { %3143 = vmatprep.mubr.msk.bf16.mxu1 %vm3529_vm1, %v3528_v38 }
 0xe96   :  { %3120 = vmatpush3.bf16.xpose.msra.mxu0 %v1587_v4 }
 0xe97   :  { %3144 = vmatmul.mubr.msk.bf16.gmra.mxu1 %vm413_vm2, %v1560_v57  ;;  %3151 = vmatprep.subr.bf16.mxu0 %v3528_v38 }
 0xe98   :  { %3147 = vmatprep.mubr.msk.bf16.mxu1 %vm3529_vm1, %v3528_v38 }
 0xe9d   :  { %3122 = vmatmul.mubr.msk.bf16.vlgmr.msra.gmra.mxu0 %vm413_vm2, %v1556_v13 }
 0xe9e   :  { %3125 = vmatprep.mubr.msk.bf16.mxu0 %vm3529_vm1, %v3528_v38 }
 0xe9f   :  { %3148 = vmatmul.mubr.msk.bf16.gmra.mxu1 %vm413_vm2, %v1561_v7 }
 0xea0   :  { %3175 = vmatprep.mubr.msk.bf16.mxu1 %vm3529_vm1, %v3528_v38 }
 0xea5   :  { %3126 = vmatmul.mubr.msk.bf16.gmra.mxu0 %vm413_vm2, %v1557_v22 }
 0xea6   :  { %3129 = vmatprep.mubr.msk.bf16.mxu0 %vm3529_vm1, %v3528_v38 }
 0xead   :  { %3130 = vmatmul.mubr.msk.bf16.gmra.mxu0 %vm413_vm2, %v1558_v3 }
 0xeae   :  { %3157 = vmatprep.mubr.msk.bf16.mxu0 %vm3529_vm1, %v3528_v38 }
 0xf4f   :  { %v1712_v5 = vpop.f32.mrf.mxu1 }
 0xf50   :  { %v1713_v13 = vadd.f32 %v3523_v8, %v1712_v5 }
 0xf51   :  { %v3141_v1 = vpop.f32.mrf.mxu1 }
 0xf52   :  { %v1749_v14 = vsel %vm571_vm3, %v1713_v13, -inf }
 0xf53   :  { %1750 = vmax.xlane.f32.xlu1 %v1749_v14  ;;  %v1715_v16 = vpop.f32.mrf.mxu1 }
 0xf54   :  { %v1716_v63 = vadd.f32 %v3524_v10, %v1715_v16 }
 0xf55   :  { %v3142_v2 = vpop.f32.mrf.mxu1 }
 0xf56   :  { %v1752_v62 = vsel %vm571_vm3, %v1716_v63, -inf }
 0xf57   :  { %1753 = vmax.xlane.f32.xlu0 %v1752_v62  ;;  %v1720_v17 = vpop.f32.mrf.mxu1 }
 0xf58   :  { %v1721_v19 = vadd.f32 %v3525_v18, %v1720_v17 }
 0xf59   :  { %v3145_v22 = vpop.f32.mrf.mxu1 }
 0xf5a   :  { %v1755_v9 = vsel %vm571_vm3, %v1721_v19, -inf }
 0xf5b   :  { %1756 = vmax.xlane.f32.xlu0 %v1755_v9  ;;  %v1723_v23 = vpop.f32.mrf.mxu1 }
 0xf5c   :  { %v1724_v31 = vadd.f32 %v3526_v24, %v1723_v23 }
 0xf5d   :  { %v1629_v44 = vpop.f32.mrf.mxu0  ;;  %v3146_v21 = vpop.f32.mrf.mxu1 }
 0xf5e   :  { %v4250_v25 = vadd.f32 %v3523_v8, %v1629_v44  ;;  %v1758_v27 = vsel %vm571_vm3, %v1724_v31, -inf }
 0xf5f   :  { %v3123_v28 = vpop.f32.mrf.mxu0  ;;  %1759 = vmax.xlane.f32.xlu0 %v1758_v27  ;;  %v1728_v29 = vpop.f32.mrf.mxu1 }
 0xf60   :  { %v1734_v41 = vsel %vm571_vm3, %v4250_v25, -inf  ;;  %v1729_v55 = vadd.f32 %v3527_v54, %v1728_v29 }
 0xf61   :  { %v1632_v30 = vpop.f32.mrf.mxu0  ;;  %v3149_v35 = vpop.f32.mrf.mxu1 }
 0xf62   :  { %v4253_v36 = vadd.f32 %v3524_v10, %v1632_v30  ;;  %v1761_v51 = vsel %vm571_vm3, %v1729_v55, -inf }
 0xf63   :  { %v3124_v32 = vpop.f32.mrf.mxu0  ;;  %1735 = vmax.xlane.f32.xlu0 %v1734_v41  ;;  %v1731_v43 = vpop.f32.mrf.mxu1 }
 0xf64   :  { %v1737_v45 = vsel %vm571_vm3, %v4253_v36, -inf }
 0xf65   :  { %v1637_v6 = vpop.f32.mrf.mxu0  ;;  %1738 = vmax.xlane.f32.xlu1 %v1737_v45  ;;  %v3150_v42 = vpop.f32.mrf.mxu1 }
 0xf66   :  { %v4259_v47 = vadd.f32 %v3525_v18, %v1637_v6 }
 0xf67   :  { %v3127_v11 = vpop.f32.mrf.mxu0 }
 0xf68   :  { %v1740_v48 = vsel %vm571_vm3, %v4259_v47, -inf }
 0xf69   :  { %v1640_v49 = vpop.f32.mrf.mxu0  ;;  %1741 = vmax.xlane.f32.xlu0 %v1740_v48 }
 0xf6a   :  { %v4263_v52 = vadd.f32 %v3526_v24, %v1640_v49 }
 0xf6b   :  { %v3128_v53 = vpop.f32.mrf.mxu0 }
 0xf6c   :  { %v1743_v60 = vsel %vm571_vm3, %v4263_v52, -inf }
 0xf6d   :  { %v1645_v59 = vpop.f32.mrf.mxu0  ;;  %1744 = vmax.xlane.f32.xlu1 %v1743_v60 }
 0xf6e   :  { %v4270_v15 = vadd.f32 %v3527_v54, %v1645_v59 }
 0xf6f   :  { %v3131_v61 = vpop.f32.mrf.mxu0 }
 0xf70   :  { %v1746_v58 = vsel %vm571_vm3, %v4270_v15, -inf }
 0xf71   :  { %v1648_v0 = vpop.f32.mrf.mxu0  ;;  %1747 = vmax.xlane.f32.xlu0 %v1746_v58  ;;  %1762 = vmax.xlane.f32.xlu1 %v1761_v51 }
 0xf73   :  { %v3132_v57 = vpop.f32.mrf.mxu0 }
 0xf82   :  { %1930 = vrot.lane.b32.xlu1 %v4176_v34, %s3532_s0 }
 0xfdc   :  { %v1751_v4 = vpop.xlane.xlu1 %1750 }
 0xfdd   :  { %v1769_v7 = vsub.f32 %v1713_v13, %v1751_v4 }
 0xfdf   :  { %v1784_v3 = vmul.f32 1.442695, %v1769_v7 }
 0xfe0   :  { %v1754_v5 = vpop.xlane.xlu0 %1753 }
 0xfe1   :  { %3451 = vpow2.f32 %v1784_v3  ;;  %v1770_v8 = vsub.f32 %v1716_v63, %v1754_v5 }
 0xfe3   :  { %v1786_v1 = vmul.f32 1.442695, %v1770_v8 }
 0xfe4   :  { %v1757_v14 = vpop.xlane.xlu0 %1756 }
 0xfe5   :  { %3453 = vpow2.f32 %v1786_v1  ;;  %v1771_v16 = vsub.f32 %v1721_v19, %v1757_v14 }
 0xfe7   :  { %v1788_v10 = vmul.f32 1.442695, %v1771_v16 }
 0xfe8   :  { %v1760_v2 = vpop.xlane.xlu0 %1759 }
 0xfe9   :  { %3455 = vpow2.f32 %v1788_v10  ;;  %v1772_v62 = vsub.f32 %v1724_v31, %v1760_v2 }
 0xfeb   :  { %v1790_v17 = vmul.f32 1.442695, %v1772_v62 }
 0xfec   :  { %v1736_v28 = vpop.xlane.xlu0 %1735 }
 0xfed   :  { %3457 = vpow2.f32 %v1790_v17  ;;  %v1764_v35 = vsub.f32 %v4250_v25, %v1736_v28 }
 0xfee   :  { %v4277_v18 = vpop.eup %3451  ;;  %v1739_v22 = vpop.xlane.xlu1 %1738 }
 0xfef   :  { %v1809_v34 = vsel %vm571_vm3, %v4277_v18, 0.0  ;;  %v1774_v43 = vmul.f32 1.442695, %v1764_v35  ;;  %v1765_v45 = vsub.f32 %v4253_v36, %v1739_v22 }
 0xff0   :  { %1810 = vadd.xlane.f32.xlu1 %v1809_v34 }
 0xff1   :  { %v1776_v42 = vmul.f32 1.442695, %v1765_v45 }
 0xff2   :  { %v4281_v13 = vpop.eup %3453  ;;  %v1742_v30 = vpop.xlane.xlu0 %1741 }
 0xff3   :  { %v1812_v63 = vsel %vm571_vm3, %v4281_v13, 0.0  ;;  %v1766_v41 = vsub.f32 %v4259_v47, %v1742_v30 }
 0xff4   :  { %1813 = vadd.xlane.f32.xlu0 %v1812_v63 }
 0xff5   :  { %v1778_v6 = vmul.f32 1.442695, %v1766_v41 }
 0xff6   :  { %v4285_v19 = vpop.eup %3455  ;;  %v1745_v9 = vpop.xlane.xlu1 %1744 }
 0xff7   :  { %v1815_v23 = vsel %vm571_vm3, %v4285_v19, 0.0 }
 0xff8   :  { %1816 = vadd.xlane.f32.xlu1 %v1815_v23 }
 0xffa   :  { %v4289_v24 = vpop.eup %3457  ;;  %v1763_v31 = vpop.xlane.xlu1 %1762 }
 0xffb   :  { %v1818_v44 = vsel %vm571_vm3, %v4289_v24, 0.0  ;;  %v1773_v29 = vsub.f32 %v1729_v55, %v1763_v31  ;;  %v1748_v60 = vpop.xlane.xlu0 %1747 }
 0xffc   :  { %1819 = vadd.xlane.f32.xlu0 %v1818_v44  ;;  %v1768_v59 = vsub.f32 %v4270_v15, %v1748_v60 }
 0xffd   :  { %v1792_v32 = vmul.f32 1.442695, %v1773_v29 }
 0xffe   :  { %v1931_v21 = vpop.permute.xlu1 %1930  ;;  %v1782_v61 = vmul.f32 1.442695, %v1768_v59 }
 0xfff   :  { %v1944_v27 = vsel %vm705_vm4, %v1931_v21, 0  ;;  %3459 = vpow2.f32 %v1792_v32 }
0x1000   :  { %3170 = vmatpush3.bf16.msra.mxu1 %v1944_v27  ;;  %3461 = vpow2.f32 %v1774_v43 }
0x1001   :  { %3171 = vmatprep.subr.bf16.mxu1 %v3528_v38  ;;  %3463 = vpow2.f32 %v1778_v6 }
0x1002   :  { %3465 = vpow2.f32 %v1776_v42 }
0x1009   :  { %1926 = vrot.lane.b32.xlu1 %v4182_v50, %s3532_s0  ;;  %v1767_v50 = vsub.f32 %v4263_v52, %v1745_v9 }
0x100b   :  { %v1780_v11 = vmul.f32 1.442695, %v1767_v50 }
0x100d   :  { %3467 = vpow2.f32 %v1780_v11  ;;  %v3337_v11 = vld [vmem:[%s4544_s9 + $0x18] sm:$0xff]  }
0x100e   :  { %3469 = vpow2.f32 %v1782_v61 }
0x1012   :  { %1928 = vrot.lane.b32.xlu0 %v4180_v56, %s3532_s0  ;;  %v4303_v56 = vpop.eup %3459 }
0x1013   :  { %v4305_v48 = vpop.eup %3461  ;;  %v1821_v25 = vsel %vm571_vm3, %v4303_v56, 0.0 }
0x1014   :  { %v4309_v47 = vpop.eup %3463  ;;  %v1794_v36 = vsel %vm571_vm3, %v4305_v48, 0.0 }
0x1015   :  { %v1800_v49 = vsel %vm571_vm3, %v4309_v47, 0.0  ;;  %v4315_v52 = vpop.eup %3465 }
0x1016   :  { %v1797_v53 = vsel %vm571_vm3, %v4315_v52, 0.0 }
0x101a   :  { %v4319_v54 = vpop.eup %3467 }
0x101b   :  { %v1803_v55 = vsel %vm571_vm3, %v4319_v54, 0.0  ;;  %v4330_v58 = vpop.eup %3469 }
0x101c   :  { %v1806_v51 = vsel %vm571_vm3, %v4330_v58, 0.0 }
0x102d   :  { %1822 = vadd.xlane.f32.xlu1 %v1821_v25 }
0x1031   :  { %1795 = vadd.xlane.f32.xlu0 %v1794_v36  ;;  %1801 = vadd.xlane.f32.xlu1 %v1800_v49 }
0x1035   :  { %1798 = vadd.xlane.f32.xlu0 %v1797_v53 }
0x1039   :  { %1804 = vadd.xlane.f32.xlu0 %v1803_v55 }
0x1042   :  { %1854 = vrot.lane.b32.xlu1 %v4191_v39, %s3532_s0 }
0x1046   :  { %1850 = vrot.lane.b32.xlu1 %v4157_v12, %s3532_s0 }
0x104f   :  { %1852 = vrot.lane.b32.xlu0 %v4167_v20, %s3532_s0 }
0x106a   :  { %1807 = vadd.xlane.f32.xlu1 %v1806_v51 }
0x1079   :  { %v1811_v0 = vpop.xlane.xlu1 %1810 }
0x107a   :  { %3471 = vrcp.f32 %v1811_v0 }
0x107d   :  { %v1814_v39 = vpop.xlane.xlu0 %1813 }
0x107e   :  { %3473 = vrcp.f32 %v1814_v39 }
0x1081   :  { %v1817_v57 = vpop.xlane.xlu1 %1816 }
0x1082   :  { %3475 = vrcp.f32 %v1817_v57 }
0x1085   :  { %v1820_v12 = vpop.xlane.xlu0 %1819  ;;  %v1927_v5 = vpop.permute.xlu1 %1926 }
0x1086   :  { %3477 = vrcp.f32 %v1820_v12 }
0x1087   :  { %v3472_v4 = vpop.eup %3471 }
0x1088   :  { %v1839_v7 = vmul.f32 %v3472_v4, %v4277_v18 }
0x1089   :  { %v1929_v20 = vpop.permute.xlu0 %1928 }
0x108a   :  { %3172 = vmatpush3.bf16.msra.mxu1 %v1929_v20 }
0x108b   :  { %v3474_v15 = vpop.eup %3473  ;;  %3173 = vmatprep.subr.bf16.mxu1 %v3528_v38 }
0x108c   :  { %v1840_v3 = vmul.f32 %v3474_v15, %v4281_v13 }
0x108e   :  { %v1847_v8 = vpack.c.bf16 %v1840_v3, %v1839_v7  ;;  %3174 = vmatpush3.bf16.msra.mxu1 %v1927_v5 }
0x108f   :  { %3203 = vmatprep.subr.bf16.mxu1 %v3528_v38  ;;  %v3476_v1 = vpop.eup %3475 }
0x1090   :  { %v1841_v16 = vmul.f32 %v3476_v1, %v4285_v19 }
0x1091   :  { %3176 = vmatmul.mubr.msk.bf16.vlgmr.msra.gmra.mxu1 %vm571_vm3, %v1847_v8 }
0x1092   :  { %3179 = vmatprep.mubr.msk.bf16.mxu1 %vm3529_vm1, %v3528_v38 }
0x1093   :  { %v3478_v14 = vpop.eup %3477 }
0x1094   :  { %v1842_v10 = vmul.f32 %v3478_v14, %v4289_v24 }
0x1096   :  { %v1848_v2 = vpack.c.bf16 %v1842_v10, %v1841_v16 }
0x1099   :  { %3180 = vmatmul.mubr.msk.bf16.gmra.mxu1 %vm571_vm3, %v1848_v2 }
0x109a   :  { %3183 = vmatprep.mubr.msk.bf16.mxu1 %vm3529_vm1, %v3528_v38 }
0x10b6   :  { %v1823_v62 = vpop.xlane.xlu1 %1822 }
0x10b7   :  { %3479 = vrcp.f32 %v1823_v62 }
0x10ba   :  { %v1796_v17 = vpop.xlane.xlu0 %1795  ;;  %v1802_v18 = vpop.xlane.xlu1 %1801 }
0x10bb   :  { %3481 = vrcp.f32 %v1796_v17 }
0x10be   :  { %v1799_v34 = vpop.xlane.xlu0 %1798  ;;  %v1855_v13 = vpop.permute.xlu1 %1854 }
0x10bf   :  { %3483 = vrcp.f32 %v1799_v34  ;;  %v1868_v22 = vsel %vm705_vm4, %v1855_v13, 0 }
0x10c0   :  { %3152 = vmatpush3.bf16.msra.mxu0 %v1868_v22 }
0x10c1   :  { %3153 = vmatprep.subr.bf16.mxu0 %v3528_v38 }
0x10c2   :  { %v1805_v63 = vpop.xlane.xlu0 %1804  ;;  %v1851_v44 = vpop.permute.xlu1 %1850 }
0x10c3   :  { %3485 = vrcp.f32 %v1805_v63 }
0x10c4   :  { %v3480_v19 = vpop.eup %3479  ;;  %3487 = vrcp.f32 %v1802_v18 }
0x10c5   :  { %v1843_v9 = vmul.f32 %v3480_v19, %v4303_v56  ;;  %v3338_v56 = vld [vmem:[%s4544_s9 + $0x10] sm:$0xff]  }
0x10c6   :  { %v1853_v23 = vpop.permute.xlu0 %1852 }
0x10c7   :  { %3154 = vmatpush3.bf16.msra.mxu0 %v1853_v23  ;;  %v1849_v24 = vpack.c.bf16 %v1843_v9, %v1843_v9 }
0x10c8   :  { %3155 = vmatprep.subr.bf16.mxu0 %v3528_v38  ;;  %v3482_v31 = vpop.eup %3481 }
0x10c9   :  { %3184 = vmatmul.mubr.msk.bf16.gmra.mxu1 %vm571_vm3, %v1849_v24  ;;  %v1834_v27 = vmul.f32 %v3482_v31, %v4305_v48 }
0x10ca   :  { %3207 = vmatprep.mubr.msk.bf16.mxu1 %vm3529_vm1, %v3528_v38 }
0x10cb   :  { %3156 = vmatpush3.bf16.msra.mxu0 %v1851_v44  ;;  %v2796_v44 = vld [vmem:[%s4545_s10 + $0x1] ss:$0 sm:$0xff] }
0x10cc   :  { %v3484_v21 = vpop.eup %3483  ;;  %3187 = vmatprep.subr.bf16.mxu0 %v3528_v38 }
0x10cd   :  { %v1835_v28 = vmul.f32 %v3484_v21, %v4315_v52 }
0x10cf   :  { %v1844_v29 = vpack.c.bf16 %v1835_v28, %v1834_v27 }
0x10d0   :  { %v3486_v30 = vpop.eup %3485 }
0x10d1   :  { %3158 = vmatmul.mubr.msk.bf16.vlgmr.msra.gmra.mxu0 %vm571_vm3, %v1844_v29  ;;  %v3488_v35 = vpop.eup %3487  ;;  %v1837_v41 = vmul.f32 %v3486_v30, %v4319_v54 }
0x10d2   :  { %3161 = vmatprep.mubr.msk.bf16.mxu0 %vm3529_vm1, %v3528_v38  ;;  %v1836_v32 = vmul.f32 %v3488_v35, %v4309_v47  ;;  %3188 = vmatpush3.bf16.msra.mxu0 %v3337_v11 }
0x10d3   :  { %3189 = vmatprep.subr.bf16.mxu0 %v3528_v38 }
0x10d4   :  { %v1845_v43 = vpack.c.bf16 %v1837_v41, %v1836_v32 }
0x10d6   :  { %3190 = vmatpush3.bf16.msra.mxu0 %v3338_v56 }
0x10d7   :  { %3219 = vmatprep.subr.bf16.mxu0 %v3528_v38 }
0x10d9   :  { %3162 = vmatmul.mubr.msk.bf16.gmra.mxu0 %vm571_vm3, %v1845_v43 }
0x10da   :  { %3165 = vmatprep.mubr.msk.bf16.mxu0 %vm3529_vm1, %v3528_v38 }
0x10f3   :  { %v1808_v45 = vpop.xlane.xlu1 %1807 }
0x10f4   :  { %3489 = vrcp.f32 %v1808_v45 }
0x1101   :  { %v3490_v6 = vpop.eup %3489 }
0x1102   :  { %v1838_v42 = vmul.f32 %v3490_v6, %v4330_v58 }
0x1104   :  { %v1846_v50 = vpack.c.bf16 %v1838_v42, %v1838_v42 }
0x1106   :  { %3166 = vmatmul.mubr.msk.bf16.gmra.mxu0 %vm571_vm3, %v1846_v50 }
0x1107   :  { %3191 = vmatprep.mubr.msk.bf16.mxu0 %vm3529_vm1, %v3528_v38 }
0x1151   :  { %v1980_v48 = vpop.f32.mrf.mxu1 }
0x1153   :  { %v3177_v25 = vpop.f32.mrf.mxu1 }
0x1155   :  { %v1983_v47 = vpop.f32.mrf.mxu1 }
0x1156   :  { %v3311_v36 = vpack.i.bf16 %v1983_v47, %v1980_v48 }
0x1157   :  { %v3178_v49 = vpop.f32.mrf.mxu1 }
0x1158   :  { %3312 = vrot.lane.b32.xlu0 %v3311_v36, %s3533_s7 }
0x1159   :  { %v1988_v52 = vpop.f32.mrf.mxu1 }
0x115b   :  { %v3181_v53 = vpop.f32.mrf.mxu1 }
0x115d   :  { %v1991_v54 = vpop.f32.mrf.mxu1 }
0x115e   :  { %v3316_v55 = vpack.i.bf16 %v1991_v54, %v1988_v52 }
0x115f   :  { %v3182_v60 = vpop.f32.mrf.mxu1 }
0x1160   :  { %3317 = vrot.lane.b32.xlu0 %v3316_v55, %s3533_s7 }
0x1189   :  { %v1996_v59 = vpop.f32.mrf.mxu1 }
0x118a   :  { %2015 = vrot.lane.b32.xlu0 %v1996_v59, %s3533_s7 }
0x118b   :  { %v3185_v61 = vpop.f32.mrf.mxu1 }
0x118d   :  { %v1999_v58 = vpop.f32.mrf.mxu1 }
0x118f   :  { %v3186_v51 = vpop.f32.mrf.mxu1 }
0x1191   :  { %v1904_v0 = vpop.f32.mrf.mxu0 }
0x1193   :  { %v3159_v39 = vpop.f32.mrf.mxu0 }
0x1195   :  { %v1907_v57 = vpop.f32.mrf.mxu0 }
0x1197   :  { %v3160_v12 = vpop.f32.mrf.mxu0 }
0x1199   :  { %v1912_v4 = vpop.f32.mrf.mxu0 }
0x119b   :  { %v3163_v20 = vpop.f32.mrf.mxu0 }
0x119d   :  { %v1915_v15 = vpop.f32.mrf.mxu0 }
0x119f   :  { %v3164_v7 = vpop.f32.mrf.mxu0 }
0x11c6   :  { %v1920_v3 = vpop.f32.mrf.mxu0 }
0x11c8   :  { %v3167_v5 = vpop.f32.mrf.mxu0 }
0x11ca   :  { %v1923_v8 = vpop.f32.mrf.mxu0  ;;  %v3313_v1 = vpop.permute.xlu0 %3312 }
0x11cb   :  { %v3315_v14 = vunpack.i.h.bf16 %v3313_v1  ;;  %v3314_v16 = vunpack.i.l.bf16 %v3313_v1 }
0x11cc   :  { %v3168_v10 = vpop.f32.mrf.mxu0 }
0x11cd   :  { %v2023_v2 = vsel %vm413_vm2, %v1907_v57, %v3315_v14  ;;  %v2022_v62 = vsel %vm413_vm2, %v1904_v0, %v3314_v16  ;;  %v3339_v14 = vld [vmem:[%s4546_s13 + $0x18] sm:$0xff]   ;;  %v3340_v16 = vld [vmem:[%s4546_s13 + $0x10] sm:$0xff]  }
0x11ce   :  { %v2027_v17 = vpack.c.bf16 %v2023_v2, %v2022_v62  ;;  %3204 = vmatpush3.bf16.msra.mxu1 %v3339_v14 }
0x11cf   :  { %3205 = vmatprep.subr.bf16.mxu1 %v3528_v38 }
0x11d0   :  { %3192 = vmatmul.mubr.msk.bf16.vlgmr.msra.gmra.mxu0 %vm73_vm0, %v2027_v17 }
0x11d1   :  { %3195 = vmatprep.mubr.msk.bf16.mxu0 %vm3529_vm1, %v3528_v38 }
0x11d2   :  { %v3318_v18 = vpop.permute.xlu0 %3317  ;;  %3206 = vmatpush3.bf16.msra.mxu1 %v3340_v16 }
0x11d3   :  { %v3320_v34 = vunpack.i.h.bf16 %v3318_v18  ;;  %v3319_v13 = vunpack.i.l.bf16 %v3318_v18  ;;  %3247 = vmatprep.subr.bf16.mxu1 %v3528_v38 }
0x11d5   :  { %v2025_v22 = vsel %vm413_vm2, %v1915_v15, %v3320_v34  ;;  %v2024_v63 = vsel %vm413_vm2, %v1912_v4, %v3319_v13 }
0x11d6   :  { %v2028_v19 = vpack.c.bf16 %v2025_v22, %v2024_v63 }
0x11d8   :  { %3196 = vmatmul.mubr.msk.bf16.gmra.mxu0 %vm73_vm0, %v2028_v19 }
0x11d9   :  { %3199 = vmatprep.mubr.msk.bf16.mxu0 %vm3529_vm1, %v3528_v38 }
0x11fc   :  { %v2016_v9 = vpop.permute.xlu0 %2015 }
0x11fd   :  { %v2026_v23 = vsel %vm413_vm2, %v1920_v3, %v2016_v9 }
0x11fe   :  { %v2029_v24 = vpack.c.bf16 %v2026_v23, %v2026_v23 }
0x1200   :  { %3200 = vmatmul.mubr.msk.bf16.gmra.mxu0 %vm73_vm0, %v2029_v24 }
0x1201   :  { %3235 = vmatprep.mubr.msk.bf16.mxu0 %vm3529_vm1, %v3528_v38 }
0x1290   :  { %v2090_v31 = vpop.f32.mrf.mxu0 }
0x1291   :  { %v2112_v21 = vadd.f32 %v2090_v31, %v4093_v26 }
0x1292   :  { %v3193_v27 = vpop.f32.mrf.mxu0 }
0x1293   :  { %v4397_v28 = vadd.f32 %v2796_v44, %v2112_v21 }
0x1294   :  { %v2093_v29 = vpop.f32.mrf.mxu0 }
0x1295   :  { %v2113_v30 = vadd.f32 %v2093_v29, %v4098_v33  ;;  %v2134_v35 = vsel %vm73_vm0, %v4397_v28, 0.0 }
0x1296   :  { %v3194_v41 = vpop.f32.mrf.mxu0  ;;  %2135 = vadd.xlane.f32.xlu0 %v2134_v35  ;;  %v2799_v35 = vld [vmem:[%s4547_s11 + $0x1] ss:$0 sm:$0xff] }
0x1297   :  { %v4402_v32 = vadd.f32 %v2796_v44, %v2113_v30 }
0x1298   :  { %v2098_v43 = vpop.f32.mrf.mxu0 }
0x1299   :  { %v2114_v45 = vadd.f32 %v2098_v43, %v4103_v40  ;;  %v2137_v6 = vsel %vm73_vm0, %v4402_v32, 0.0 }
0x129a   :  { %2138 = vadd.xlane.f32.xlu1 %v2137_v6  ;;  %v3197_v26 = vpop.f32.mrf.mxu0  ;;  %v2800_v6 = vld [vmem:[%s4548_s12 + $0x1] ss:$0 sm:$0xff] }
0x129b   :  { %v4407_v42 = vadd.f32 %v2796_v44, %v2114_v45 }
0x129c   :  { %v2101_v50 = vpop.f32.mrf.mxu0 }
0x129d   :  { %v2115_v33 = vadd.f32 %v2101_v50, %v4108_v37  ;;  %v2140_v11 = vsel %vm73_vm0, %v4407_v42, 0.0 }
0x129e   :  { %2141 = vadd.xlane.f32.xlu1 %v2140_v11  ;;  %v3198_v56 = vpop.f32.mrf.mxu0 }
0x129f   :  { %v4412_v48 = vadd.f32 %v2796_v44, %v2115_v33 }
0x12a1   :  { %v2143_v40 = vsel %vm73_vm0, %v4412_v48, 0.0 }
0x12a2   :  { %2144 = vadd.xlane.f32.xlu1 %v2143_v40 }
0x12c0   :  { %v2106_v25 = vpop.f32.mrf.mxu0 }
0x12c1   :  { %v2116_v47 = vadd.f32 %v2106_v25, %v4113_v46 }
0x12c2   :  { %v3201_v36 = vpop.f32.mrf.mxu0 }
0x12c3   :  { %v4417_v49 = vadd.f32 %v2796_v44, %v2116_v47 }
0x12c4   :  { %v2109_v52 = vpop.f32.mrf.mxu0 }
0x12c5   :  { %v2146_v37 = vsel %vm73_vm0, %v4417_v49, 0.0 }
0x12c6   :  { %2147 = vadd.xlane.f32.xlu0 %v2146_v37  ;;  %v3202_v53 = vpop.f32.mrf.mxu0 }
0x131f   :  { %v2136_v54 = vpop.xlane.xlu0 %2135 }
0x1320   :  { %v2149_v55 = vmul.f32 0.03125, %v2136_v54 }
0x1322   :  { %v2154_v60 = vsub.f32 %v4397_v28, %v2149_v55 }
0x1323   :  { %v2139_v59 = vpop.xlane.xlu1 %2138 }
0x1324   :  { %v2150_v61 = vmul.f32 0.03125, %v2139_v59  ;;  %v2159_v58 = vmul.f32 %v2154_v60, %v2154_v60 }
0x1326   :  { %v2155_v51 = vsub.f32 %v4402_v32, %v2150_v61  ;;  %v2164_v46 = vsel %vm73_vm0, %v2159_v58, 0.0 }
0x1327   :  { %v2142_v0 = vpop.xlane.xlu1 %2141  ;;  %2165 = vadd.xlane.f32.xlu1 %v2164_v46 }
0x1328   :  { %v2151_v39 = vmul.f32 0.03125, %v2142_v0  ;;  %v2160_v57 = vmul.f32 %v2155_v51, %v2155_v51 }
0x132a   :  { %v2156_v12 = vsub.f32 %v4407_v42, %v2151_v39  ;;  %v2167_v4 = vsel %vm73_vm0, %v2160_v57, 0.0  ;;  %v3341_v39 = vld [vmem:[%s4549_s15 + $0x78] sm:$0xff]   ;;  %v3342_v57 = vld [vmem:[%s4549_s15 + $0x70] sm:$0xff]  }
0x132b   :  { %v2145_v20 = vpop.xlane.xlu1 %2144  ;;  %2168 = vadd.xlane.f32.xlu0 %v2167_v4  ;;  %3220 = vmatpush3.bf16.msra.mxu0 %v3341_v39  ;;  %v3344_v4 = vld [vmem:[%s4549_s15 + $0x60] sm:$0xff]  }
0x132c   :  { %v2152_v15 = vmul.f32 0.03125, %v2145_v20  ;;  %v2161_v7 = vmul.f32 %v2156_v12, %v2156_v12  ;;  %3221 = vmatprep.subr.bf16.mxu0 %v3528_v38  ;;  %v3345_v20 = vld [vmem:[%s4549_s15 + $0x58] sm:$0xff]  }
0x132e   :  { %v2157_v3 = vsub.f32 %v4412_v48, %v2152_v15  ;;  %v2170_v5 = vsel %vm73_vm0, %v2161_v7, 0.0  ;;  %v3346_v15 = vld [vmem:[%s4549_s15 + $0x50] sm:$0xff]   ;;  %v3347_v7 = vld [vmem:[%s4549_s15 + $0x48] sm:$0xff]  }
0x132f   :  { %2171 = vadd.xlane.f32.xlu1 %v2170_v5  ;;  %3222 = vmatpush3.bf16.msra.mxu0 %v3342_v57  ;;  %v2497_v5 = vlaneseq }
0x1330   :  { %v2162_v8 = vmul.f32 %v2157_v3, %v2157_v3  ;;  %3223 = vmatprep.subr.bf16.mxu0 %v3528_v38 }
0x1332   :  { %v2173_v1 = vsel %vm73_vm0, %v2162_v8, 0.0  ;;  %v2498_v8 = vshrl.u32 %v2497_v5, 7 }
0x1333   :  { %2174 = vadd.xlane.f32.xlu0 %v2173_v1  ;;  %v2496_v1 = vld [vmem:[%s4552_s2] sm:$0x3] }
0x1334   :  { %v2499_v14 = vsub.s32 0, %v2498_v8  ;;  %v2522_v16 = vsub.s32 1, %v2498_v8 }
0x134f   :  { %v2148_v10 = vpop.xlane.xlu0 %2147 }
0x1350   :  { %v2153_v2 = vmul.f32 0.03125, %v2148_v10  ;;  %v2500_v10 = vrot.slane %v2496_v1, %v2499_v14 }
0x1352   :  { %v2158_v62 = vsub.f32 %v4417_v49, %v2153_v2  ;;  %2502 = vbcast.lane.b32.xlu0 %v2500_v10, 256  ;;  %v2523_v2 = vrot.slane %v2496_v1, %v2522_v16 }
0x1354   :  { %v2163_v17 = vmul.f32 %v2158_v62, %v2158_v62 }
0x1356   :  { %v2176_v18 = vsel %vm73_vm0, %v2163_v17, 0.0  ;;  %2510 = vbcast.lane.b32.xlu0 %v2500_v10, 272 }
0x1357   :  { %2177 = vadd.xlane.f32.xlu1 %v2176_v18 }
0x135a   :  { %2514 = vbcast.lane.b32.xlu0 %v2500_v10, 280 }
0x135e   :  { %2518 = vbcast.lane.b32.xlu0 %v2500_v10, 288 }
0x1368   :  { %2506 = vbcast.lane.b32.xlu1 %v2500_v10, 264 }
0x136c   :  { %2525 = vbcast.lane.b32.xlu1 %v2523_v2, 256 }
0x1370   :  { %2529 = vbcast.lane.b32.xlu1 %v2523_v2, 264 }
0x1374   :  { %2533 = vbcast.lane.b32.xlu1 %v2523_v2, 272 }
0x1378   :  { %2537 = vbcast.lane.b32.xlu1 %v2523_v2, 280 }
0x137c   :  { %2541 = vbcast.lane.b32.xlu1 %v2523_v2, 288 }
0x13b0   :  { %v2166_v34 = vpop.xlane.xlu1 %2165 }
0x13b1   :  { %v2179_v13 = vmul.f32 0.03125, %v2166_v34 }
0x13b3   :  { %v2184_v22 = vadd.f32 1e-05, %v2179_v13 }
0x13b4   :  { %v2169_v63 = vpop.xlane.xlu0 %2168 }
0x13b5   :  { %3491 = vrsqrt.f32 %v2184_v22  ;;  %v2180_v19 = vmul.f32 0.03125, %v2169_v63 }
0x13b7   :  { %v2185_v9 = vadd.f32 1e-05, %v2180_v19 }
0x13b8   :  { %v2172_v23 = vpop.xlane.xlu1 %2171 }
0x13b9   :  { %3493 = vrsqrt.f32 %v2185_v9  ;;  %v2181_v24 = vmul.f32 0.03125, %v2172_v23 }
0x13bb   :  { %v2186_v31 = vadd.f32 1e-05, %v2181_v24 }
0x13bc   :  { %v2175_v44 = vpop.xlane.xlu0 %2174 }
0x13bd   :  { %3495 = vrsqrt.f32 %v2186_v31  ;;  %v2182_v21 = vmul.f32 0.03125, %v2175_v44 }
0x13bf   :  { %v2187_v27 = vadd.f32 1e-05, %v2182_v21 }
0x13c1   :  { %3497 = vrsqrt.f32 %v2187_v27 }
0x13c2   :  { %v3492_v29 = vpop.eup %3491 }
0x13c3   :  { %v2194_v30 = vmul.f32 %v3492_v29, %v2154_v60 }
0x13c5   :  { %v2205_v43 = vmul.f32 %v2799_v35, %v2194_v30 }
0x13c6   :  { %v3494_v41 = vpop.eup %3493 }
0x13c7   :  { %v2195_v45 = vmul.f32 %v3494_v41, %v2155_v51  ;;  %v2216_v33 = vadd.f32 %v2800_v6, %v2205_v43 }
0x13c9   :  { %v2206_v26 = vmul.f32 %v2799_v35, %v2195_v45 }
0x13ca   :  { %v3496_v50 = vpop.eup %3495 }
0x13cb   :  { %v2217_v11 = vadd.f32 %v2800_v6, %v2206_v26  ;;  %v2196_v56 = vmul.f32 %v3496_v50, %v2156_v12  ;;  %v3343_v12 = vld [vmem:[%s4549_s15 + $0x68] sm:$0xff]  }
0x13cc   :  { %3224 = vmatpush3.bf16.msra.mxu0 %v3343_v12 }
0x13cd   :  { %v2221_v40 = vpack.c.bf16 %v2217_v11, %v2216_v33  ;;  %v2207_v36 = vmul.f32 %v2799_v35, %v2196_v56  ;;  %3225 = vmatprep.subr.bf16.mxu0 %v3528_v38 }
0x13ce   :  { %v3498_v25 = vpop.eup %3497 }
0x13cf   :  { %3208 = vmatmul.mubr.msk.bf16.vlgmr.msra.gmra.mxu1 %vm73_vm0, %v2221_v40  ;;  %v2197_v47 = vmul.f32 %v3498_v25, %v2157_v3  ;;  %v2218_v37 = vadd.f32 %v2800_v6, %v2207_v36  ;;  %v3348_v3 = vld [vmem:[%s4549_s15 + $0x40] sm:$0xff]  }
0x13d0   :  { %3211 = vmatprep.mubr.msk.bf16.mxu1 %vm3529_vm1, %v3528_v38  ;;  %3226 = vmatpush3.bf16.msra.mxu0 %v3344_v4 }
0x13d1   :  { %v2208_v52 = vmul.f32 %v2799_v35, %v2197_v47  ;;  %3227 = vmatprep.subr.bf16.mxu0 %v3528_v38 }
0x13d3   :  { %v2219_v53 = vadd.f32 %v2800_v6, %v2208_v52 }
0x13d4   :  { %3228 = vmatpush3.bf16.msra.mxu0 %v3345_v20 }
0x13d5   :  { %v2222_v54 = vpack.c.bf16 %v2219_v53, %v2218_v37  ;;  %3229 = vmatprep.subr.bf16.mxu0 %v3528_v38 }
0x13d7   :  { %3212 = vmatmul.mubr.msk.bf16.gmra.mxu1 %vm73_vm0, %v2222_v54 }
0x13d8   :  { %3215 = vmatprep.mubr.msk.bf16.mxu1 %vm3529_vm1, %v3528_v38  ;;  %3230 = vmatpush3.bf16.msra.mxu0 %v3346_v15 }
0x13d9   :  { %3231 = vmatprep.subr.bf16.mxu0 %v3528_v38 }
0x13dc   :  { %3232 = vmatpush3.bf16.msra.mxu0 %v3347_v7 }
0x13dd   :  { %3233 = vmatprep.subr.bf16.mxu0 %v3528_v38 }
0x13e0   :  { %v2178_v55 = vpop.xlane.xlu1 %2177  ;;  %3234 = vmatpush3.bf16.msra.mxu0 %v3348_v3 }
0x13e1   :  { %v2183_v60 = vmul.f32 0.03125, %v2178_v55 }
0x13e3   :  { %v2188_v59 = vadd.f32 1e-05, %v2183_v60 }
0x13e4   :  { %v2507_v2 = vpop.permute.xlu1 %2506 }
0x13e5   :  { %3499 = vrsqrt.f32 %v2188_v59 }
0x13f2   :  { %v3500_v61 = vpop.eup %3499 }
0x13f3   :  { %v2198_v58 = vmul.f32 %v3500_v61, %v2158_v62  ;;  %v2806_v62 = vld [vmem:[%s4550_s14 + $0x1] ss:$0 sm:$0xff] }
0x13f5   :  { %v2209_v51 = vmul.f32 %v2799_v35, %v2198_v58 }
0x13f7   :  { %v2220_v46 = vadd.f32 %v2800_v6, %v2209_v51 }
0x13f9   :  { %v2223_v0 = vpack.c.bf16 %v2220_v46, %v2220_v46 }
0x13fb   :  { %3216 = vmatmul.mubr.msk.bf16.gmra.mxu1 %vm73_vm0, %v2223_v0 }
0x13fc   :  { %3251 = vmatprep.mubr.msk.bf16.mxu1 %vm3529_vm1, %v3528_v38 }
0x148f   :  { %v2292_v17 = vpop.f32.mrf.mxu1 }
0x1490   :  { %v2293_v18 = vadd.f32 %v2806_v62, %v2292_v17 }
0x1491   :  { %v3209_v34 = vpop.f32.mrf.mxu1 }
0x1492   :  { %v2812_v13 = vmul.f32 -1.702, %v2293_v18 }
0x1493   :  { %v2295_v22 = vpop.f32.mrf.mxu1 }
0x1494   :  { %v2324_v63 = vmul.f32 1.442695, %v2812_v13  ;;  %v2296_v19 = vadd.f32 %v2806_v62, %v2295_v22  ;;  %v2503_v13 = vpop.permute.xlu0 %2502 }
0x1495   :  { %v3210_v9 = vpop.f32.mrf.mxu1 }
0x1496   :  { %3501 = vpow2.f32 %v2324_v63  ;;  %v2813_v23 = vmul.f32 -1.702, %v2296_v19 }
0x1497   :  { %v2300_v24 = vpop.f32.mrf.mxu1 }
0x1498   :  { %v2326_v31 = vmul.f32 1.442695, %v2813_v23  ;;  %v2301_v44 = vadd.f32 %v2806_v62, %v2300_v24  ;;  %v2511_v24 = vpop.permute.xlu0 %2510 }
0x1499   :  { %v3213_v21 = vpop.f32.mrf.mxu1 }
0x149a   :  { %3503 = vpow2.f32 %v2326_v31  ;;  %v2814_v27 = vmul.f32 -1.702, %v2301_v44 }
0x149b   :  { %v2303_v29 = vpop.f32.mrf.mxu1 }
0x149c   :  { %v2328_v30 = vmul.f32 1.442695, %v2814_v27  ;;  %v2304_v35 = vadd.f32 %v2806_v62, %v2303_v29 }
0x149d   :  { %v3214_v41 = vpop.f32.mrf.mxu1 }
0x149e   :  { %3505 = vpow2.f32 %v2328_v30  ;;  %v2815_v43 = vmul.f32 -1.702, %v2304_v35 }
0x14a0   :  { %v2330_v45 = vmul.f32 1.442695, %v2815_v43  ;;  %v2515_v43 = vpop.permute.xlu0 %2514 }
0x14a2   :  { %3507 = vpow2.f32 %v2330_v45 }
0x14a3   :  { %v3502_v6 = vpop.eup %3501 }
0x14a4   :  { %v2334_v26 = vadd.f32 1.0, %v3502_v6 }
0x14a6   :  { %3509 = vrcp.f32 %v2334_v26 }
0x14a7   :  { %v3504_v50 = vpop.eup %3503 }
0x14a8   :  { %v2335_v33 = vadd.f32 1.0, %v3504_v50 }
0x14aa   :  { %3511 = vrcp.f32 %v2335_v33 }
0x14ab   :  { %v3506_v11 = vpop.eup %3505 }
0x14ac   :  { %v2336_v56 = vadd.f32 1.0, %v3506_v11 }
0x14ae   :  { %3513 = vrcp.f32 %v2336_v56 }
0x14af   :  { %v3508_v40 = vpop.eup %3507 }
0x14b0   :  { %v2337_v25 = vadd.f32 1.0, %v3508_v40 }
0x14b2   :  { %3515 = vrcp.f32 %v2337_v25 }
0x14b3   :  { %v3510_v47 = vpop.eup %3509 }
0x14b4   :  { %v2349_v52 = vmul.f32 %v3510_v47, %v2293_v18  ;;  %v2526_v18 = vpop.permute.xlu1 %2525 }
0x14b7   :  { %v3512_v36 = vpop.eup %3511 }
0x14b8   :  { %v2350_v37 = vmul.f32 %v3512_v36, %v2296_v19  ;;  %v2530_v34 = vpop.permute.xlu1 %2529  ;;  %v2842_v19 = vld [vmem:[%s4551_s16 + $0x1] ss:$0 sm:$0xff] }
0x14ba   :  { %v2354_v53 = vpack.c.bf16 %v2350_v37, %v2349_v52 }
0x14bb   :  { %v2308_v54 = vpop.f32.mrf.mxu1  ;;  %v3514_v60 = vpop.eup %3513 }
0x14bc   :  { %v2309_v55 = vadd.f32 %v2806_v62, %v2308_v54  ;;  %3236 = vmatmul.mubr.bf16.vlgmr.msra.gmra.mxu0 %v2354_v53  ;;  %v2351_v46 = vmul.f32 %v3514_v60, %v2301_v44  ;;  %v2534_v23 = vpop.permute.xlu1 %2533  ;;  %v2519_v54 = vpop.permute.xlu0 %2518 }
0x14bd   :  { %v3217_v59 = vpop.f32.mrf.mxu1  ;;  %3239 = vmatprep.mubr.msk.bf16.mxu0 %vm3529_vm1, %v3528_v38 }
0x14be   :  { %v2816_v61 = vmul.f32 -1.702, %v2309_v55 }
0x14bf   :  { %v3516_v58 = vpop.eup %3515  ;;  %v2311_v51 = vpop.f32.mrf.mxu1 }
0x14c0   :  { %v2352_v0 = vmul.f32 %v3516_v58, %v2304_v35  ;;  %v2332_v39 = vmul.f32 1.442695, %v2816_v61 }
0x14c1   :  { %v3218_v57 = vpop.f32.mrf.mxu1 }
0x14c2   :  { %3517 = vpow2.f32 %v2332_v39  ;;  %v2355_v12 = vpack.c.bf16 %v2352_v0, %v2351_v46 }
0x14c4   :  { %3240 = vmatmul.mubr.bf16.gmra.mxu0 %v2355_v12 }
0x14c5   :  { %3243 = vmatprep.mubr.msk.bf16.mxu0 %vm3529_vm1, %v3528_v38 }
0x14cf   :  { %v3518_v4 = vpop.eup %3517 }
0x14d0   :  { %v2338_v20 = vadd.f32 1.0, %v3518_v4 }
0x14d2   :  { %3519 = vrcp.f32 %v2338_v20 }
0x14df   :  { %v3520_v15 = vpop.eup %3519 }
0x14e0   :  { %v2353_v7 = vmul.f32 %v3520_v15, %v2309_v55 }
0x14e2   :  { %v2356_v3 = vpack.c.bf16 %v2353_v7, %v2353_v7 }
0x14e4   :  { %3244 = vmatmul.mubr.bf16.gmra.mxu0 %v2356_v3 }
0x157c   :  { %v2456_v5 = vpop.f32.mrf.mxu0 }
0x157d   :  { %v2478_v63 = vadd.f32 %v2456_v5, %v4397_v28 }
0x157e   :  { %v3237_v8 = vpop.f32.mrf.mxu0 }
0x157f   :  { %v2491_v21 = vadd.f32 %v2842_v19, %v2478_v63 }
0x1580   :  { %v2459_v1 = vpop.f32.mrf.mxu0 }
0x1581   :  { %v2479_v22 = vadd.f32 %v2459_v1, %v4402_v32  ;;  %v2548_v41 = vmul.f32 %v2526_v18, %v2491_v21  ;;  %v2538_v32 = vpop.permute.xlu1 %2537  ;;  %v2543_v28 = vmul.f32 %v2503_v13, %v2491_v21 }
0x1582   :  { %v3238_v14 = vpop.f32.mrf.mxu0 }
0x1583   :  { %v2492_v31 = vadd.f32 %v2842_v19, %v2479_v22  ;;  %v2568_v11 = vsel %vm73_vm0, %v2548_v41, 0.0  ;;  %v2553_v56 = vsel %vm73_vm0, %v2543_v28, 0.0  ;;  %v2843_v28 = vld [vmem:[%s4554_s17] ss:$0 sm:$0xff] }
0x1584   :  { %v2464_v16 = vpop.f32.mrf.mxu0 }
0x1585   :  { %v2480_v9 = vadd.f32 %v2464_v16, %v4407_v42  ;;  %v2544_v29 = vmul.f32 %v2507_v2, %v2492_v31  ;;  %v2549_v30 = vmul.f32 %v2530_v34, %v2492_v31  ;;  %v2542_v36 = vpop.permute.xlu1 %2541 }
0x1586   :  { %v3241_v10 = vpop.f32.mrf.mxu0 }
0x1587   :  { %v2493_v27 = vadd.f32 %v2842_v19, %v2480_v9  ;;  %v2569_v26 = vsel %vm73_vm0, %v2549_v30, 0.0  ;;  %v2554_v42 = vsel %vm73_vm0, %v2544_v29, 0.0  ;;  %v3349_v29 = vld [vmem:[%s4553_s19 + $0x8] sm:$0xff]   ;;  %v3350_v30 = vld [vmem:[%s4553_s19] sm:$0xff]  }
0x1588   :  { %v2467_v62 = vpop.f32.mrf.mxu0  ;;  %v2570_v52 = vadd.f32 %v2569_v26, %v2568_v11  ;;  %v2555_v37 = vadd.f32 %v2554_v42, %v2553_v56  ;;  %3248 = vmatpush3.bf16.msra.mxu1 %v3349_v29  ;;  %v2844_v26 = vld [vmem:[%s4555_s18] ss:$0 sm:$0xff] }
0x1589   :  { %v2481_v44 = vadd.f32 %v2467_v62, %v4412_v48  ;;  %v2550_v45 = vmul.f32 %v2534_v23, %v2493_v27  ;;  %v2545_v6 = vmul.f32 %v2511_v24, %v2493_v27  ;;  %3249 = vmatprep.subr.bf16.mxu1 %v3528_v38 }
0x158a   :  { %v3242_v17 = vpop.f32.mrf.mxu0 }
0x158b   :  { %v2494_v35 = vadd.f32 %v2842_v19, %v2481_v44  ;;  %v2571_v40 = vsel %vm73_vm0, %v2550_v45, 0.0  ;;  %v2556_v25 = vsel %vm73_vm0, %v2545_v6, 0.0 }
0x158c   :  { %v2572_v61 = vadd.f32 %v2571_v40, %v2570_v52  ;;  %v2557_v58 = vadd.f32 %v2556_v25, %v2555_v37  ;;  %3250 = vmatpush3.bf16.msra.mxu1 %v3350_v30 }
0x158d   :  { %v2551_v50 = vmul.f32 %v2538_v32, %v2494_v35  ;;  %v2546_v33 = vmul.f32 %v2515_v43, %v2494_v35 }
0x158f   :  { %v2573_v55 = vsel %vm73_vm0, %v2551_v50, 0.0  ;;  %v2558_v60 = vsel %vm73_vm0, %v2546_v33, 0.0 }
0x1590   :  { %v2574_v39 = vadd.f32 %v2573_v55, %v2572_v61  ;;  %v2559_v57 = vadd.f32 %v2558_v60, %v2557_v58 }
0x15a4   :  { %v2472_v48 = vpop.f32.mrf.mxu0 }
0x15a5   :  { %v2482_v47 = vadd.f32 %v2472_v48, %v4417_v49 }
0x15a6   :  { %v3245_v53 = vpop.f32.mrf.mxu0 }
0x15a7   :  { %v2495_v59 = vadd.f32 %v2842_v19, %v2482_v47 }
0x15a8   :  { %v2475_v51 = vpop.f32.mrf.mxu0 }
0x15a9   :  { %v2552_v46 = vmul.f32 %v2542_v36, %v2495_v59  ;;  %v2547_v0 = vmul.f32 %v2519_v54, %v2495_v59 }
0x15aa   :  { %v3246_v12 = vpop.f32.mrf.mxu0 }
0x15ab   :  { %v2575_v49 = vsel %vm73_vm0, %v2552_v46, 0.0  ;;  %v2560_v4 = vsel %vm73_vm0, %v2547_v0, 0.0 }
0x15ac   :  { %v2576_v20 = vadd.f32 %v2575_v49, %v2574_v39  ;;  %v2561_v15 = vadd.f32 %v2560_v4, %v2559_v57 }
0x15ae   :  { %v2577_v7 = vrot.slane %v2576_v20, 4  ;;  %v2562_v3 = vrot.slane %v2561_v15, 4 }
0x15b0   :  { %v2578_v5 = vadd.f32 %v2577_v7, %v2576_v20  ;;  %v2563_v8 = vadd.f32 %v2562_v3, %v2561_v15 }
0x15b2   :  { %v2579_v1 = vrot.slane %v2578_v5, 2  ;;  %v2564_v14 = vrot.slane %v2563_v8, 2 }
0x15b4   :  { %v2580_v16 = vadd.f32 %v2579_v1, %v2578_v5  ;;  %v2565_v10 = vadd.f32 %v2564_v14, %v2563_v8 }
0x15b6   :  { %v2566_v2 = vrot.slane %v2565_v10, 1  ;;  %v2581_v62 = vrot.slane %v2580_v16, 1 }
0x15b8   :  { %v2567_v17 = vadd.f32 %v2566_v2, %v2565_v10  ;;  %v2582_v18 = vadd.f32 %v2581_v62, %v2580_v16 }
0x15ba   :  { %v2588_v34 = vsel %vm2587_vm5, %v2582_v18, %v2567_v17 }
0x15bb   :  { %v2591_v13 = vsel %vm2590_vm6, %v2588_v34, 0.0 }
0x15bc   :  { %2592 = vadd.xlane.f32.xlu0 %v2591_v13 }
0x1645   :  { %v2593_v22 = vpop.xlane.xlu0 %2592 }
0x1646   :  { %v2594_v63 = vmul.f32 0.03125, %v2593_v22 }
0x1648   :  { %v2596_v19 = vrot.slane %v2594_v63, 1  ;;  %v2599_v9 = vsub.f32 %v2567_v17, %v2594_v63 }
0x164a   :  { %v2600_v23 = vsub.f32 %v2582_v18, %v2596_v19  ;;  %v2601_v31 = vmul.f32 %v2599_v9, %v2599_v9 }
0x164c   :  { %v2602_v24 = vmul.f32 %v2600_v23, %v2600_v23 }
0x164e   :  { %v2605_v44 = vrot.slane %v2602_v24, 7 }
0x1650   :  { %v2606_v21 = vsel %vm2587_vm5, %v2605_v44, %v2601_v31 }
0x1651   :  { %v2608_v27 = vsel %vm2590_vm6, %v2606_v21, 0.0 }
0x1652   :  { %2609 = vadd.xlane.f32.xlu1 %v2608_v27 }
0x16db   :  { %v2610_v35 = vpop.xlane.xlu1 %2609 }
0x16dc   :  { %v2611_v41 = vmul.f32 0.03125, %v2610_v35 }
0x16de   :  { %v2612_v32 = vadd.f32 1e-05, %v2611_v41 }
0x16e0   :  { %3521 = vrsqrt.f32 %v2612_v32 }
0x16ed   :  { %v3522_v43 = vpop.eup %3521 }
0x16ee   :  { %v2615_v45 = vrot.slane %v3522_v43, 1  ;;  %v2618_v6 = vmul.f32 %v3522_v43, %v2599_v9 }
0x16f0   :  { %v2619_v42 = vmul.f32 %v2615_v45, %v2600_v23  ;;  %v2626_v50 = vmul.f32 %v2843_v28, %v2618_v6 }
0x16f2   :  { %v2627_v33 = vmul.f32 %v2843_v28, %v2619_v42  ;;  %v2634_v38 = vadd.f32 %v2844_v26, %v2626_v50 }
0x16f4   :  { %v2635_v11 = vadd.f32 %v2844_v26, %v2627_v33  ;;  %v2636_v48 = vpack.c.bf16 %v2634_v38, %v2634_v38 }
0x16f6   :  { %v2637_v56 = vpack.c.bf16 %v2635_v11, %v2635_v11  ;;  %v2644_v25 = vunpack.c.l.b16 %v2636_v48 }
0x16f8   :  { %v2645_v40 = vunpack.c.l.b16 %v2637_v56 }
0x16fa   :  { %v2646_v47 = vrot.slane %v2645_v40, 7 }
0x16fc   :  { %v2647_v36 = vsel %vm2587_vm5, %v2646_v47, %v2644_v25 }
0x16fd   :  { %v2648_v52 = vpack.c.b16 %v2647_v36, %v2647_v36 }
0x16ff   :  { %3252 = vmatmul.mubr.msk.bf16.vlgmr.msra.gmra.mxu1 %vm73_vm0, %v2648_v52 }
0x17bf   :  { %v2698_v37 = vpop.f32.mrf.mxu1 }
0x17c0   :  { %2704 = vst.msk [vmem:[%s4556_s20] sm:$0x3] %vm2590_vm6, %v2698_v37 }
0x17c1   :  { %v3253_v53 = vpop.f32.mrf.mxu1 }
0x17c3   :  { %v2701_v54 = vpop.f32.mrf.mxu1 }
0x17c5   :  { %v3254_v55 = vpop.f32.mrf.mxu1 }

</bundles_post_ra>
